<compile_context>
chip_gen: v5e
topology: v5e:2x2
jax: 0.10.0
libtpu: 0.0.40
codegen_flags: <defaults>
</compile_context>

<pallas_src>
import functools

import jax
import jax.numpy as jnp
from jax.experimental import pallas as pl
from jax.experimental.pallas import tpu as pltpu

EMB = 256  # embedding_size / LSTM hidden size from the PyTorch module


def _round_up(x, m):
    return ((x + m - 1) // m) * m


def _seq2seq_kernel(n_chunks, cb,
                    x_ref, we_ref, be_ref,
                    wih0_ref, b0_ref,
                    wih1_ref, b1_ref,
                    wd_ref, bd_ref,
                    out_ref):
    """One (tb, onehot_p) batch tile, processed as `n_chunks` independent
    sub-chunks of `cb` rows (lets the scheduler overlap MXU and EUP work)."""
    for c in range(n_chunks):                       # static unroll, independent chains
        rows = pl.ds(c * cb, cb)

        # --- encode: Linear(onehot, 256) + Dropout(eval=identity) + ReLU ---
        x = x_ref[rows, :]                                                   # (cb, onehot_p) bf16
        e = jnp.dot(x, we_ref[...], preferred_element_type=jnp.float32) + be_ref[...]
        e = jnp.maximum(e, 0.0)                                              # (cb, EMB) f32

        # --- 2-layer LSTM, seq_len == 1, h0 = c0 = 0 ---
        # Gates packed [i | g | o] (forget gate dropped: f*c_prev == 0).
        # Bias refs hold (b_ih + b_hh), pre-summed in the wrapper, kept in f32.
        def cell(inp_f32, wih_ref, b_ref):
            g = jnp.dot(inp_f32.astype(jnp.bfloat16), wih_ref[...],
                        preferred_element_type=jnp.float32) + b_ref[...]     # (cb, 3*EMB)
            i_g = jax.nn.sigmoid(g[:, 0 * EMB:1 * EMB])
            g_g = jnp.tanh(g[:, 1 * EMB:2 * EMB])
            o_g = jax.nn.sigmoid(g[:, 2 * EMB:3 * EMB])
            return o_g * jnp.tanh(i_g * g_g)                                 # (cb, EMB) f32

        h1 = cell(cell(e, wih0_ref, b0_ref), wih1_ref, b1_ref)               # == out[:, 0, :]

        # --- decode: 0.5 pre-folded into wd/bd, so res == tanh(z) ---
        z = jnp.dot(h1.astype(jnp.bfloat16), wd_ref[...],
                    preferred_element_type=jnp.float32) + bd_ref[...]
        out_ref[rows, :] = jnp.tanh(z).astype(out_ref.dtype)                 # bf16 store


def init_params(key, onehot):
    """Deterministic init mimicking PyTorch uniform(-1/sqrt(fan_in), 1/sqrt(fan_in)).

    Full PyTorch 4-gate [i|f|g|o] layout (transposed).  lstm.weight_hh_l{0,1}
    are omitted: with seq_len==1 and zero initial state W_hh @ h_prev == 0.
    """
    ks = jax.random.split(key, 10)

    def u(k, shape, fan_in):
        bound = 1.0 / float(fan_in) ** 0.5
        return jax.random.uniform(k, shape, jnp.float32, -bound, bound)

    we   = u(ks[0], (onehot, EMB), onehot)                              # encode.Linear.weight^T
    be   = u(ks[1], (1, EMB), onehot)                                   # encode.Linear.bias
    wih0 = u(ks[2], (EMB, 4 * EMB), EMB)                                # lstm.weight_ih_l0^T
    b0   = u(ks[3], (1, 4 * EMB), EMB) + u(ks[4], (1, 4 * EMB), EMB)    # b_ih_l0 + b_hh_l0
    wih1 = u(ks[5], (EMB, 4 * EMB), EMB)                                # lstm.weight_ih_l1^T
    b1   = u(ks[6], (1, 4 * EMB), EMB) + u(ks[7], (1, 4 * EMB), EMB)    # b_ih_l1 + b_hh_l1
    wd   = u(ks[8], (EMB, onehot), EMB)                                 # decode.Linear.weight^T
    bd   = u(ks[9], (1, onehot), EMB)                                   # decode.Linear.bias
    return (we, be, wih0, b0, wih1, b1, wd, bd)


def prepare_kernel_params(params):
    """One-time (offline) weight prep:
       * drop dead forget-gate quarter ([i|f|g|o] -> [i|g|o])
       * fold the 0.5 of tanh(0.5*z) into decode weights/bias
       * pad onehot dims to a multiple of 128 (lane-dense loads/stores)
       * cast matmul weights to bf16 (biases stay f32).
    """
    we, be, wih0, b0, wih1, b1, wd, bd = params
    onehot = we.shape[0]
    onehot_p = _round_up(onehot, 128)

    def drop_f(a):
        return jnp.concatenate(
            [a[..., 0 * EMB:1 * EMB], a[..., 2 * EMB:4 * EMB]], axis=-1)

    wd = 0.5 * wd                                   # exact in bf16 (exponent shift)
    bd = 0.5 * bd
    if onehot_p != onehot:
        we = jnp.pad(we, ((0, onehot_p - onehot), (0, 0)))   # zero rows -> padded x lanes no-op
        wd = jnp.pad(wd, ((0, 0), (0, onehot_p - onehot)))
        bd = jnp.pad(bd, ((0, 0), (0, onehot_p - onehot)))   # tanh(0)=0 in discarded region

    return (we.astype(jnp.bfloat16), be,
            drop_f(wih0).astype(jnp.bfloat16), drop_f(b0),
            drop_f(wih1).astype(jnp.bfloat16), drop_f(b1),
            wd.astype(jnp.bfloat16), bd)


@functools.partial(jax.jit, static_argnames=("tile_b", "weight_buffers"))
def _forward(x, kparams, *, tile_b, weight_buffers):
    we, be, wih0, b0, wih1, b1, wd, bd = kparams
    B, onehot = x.shape
    onehot_p = we.shape[0]
    assert onehot <= onehot_p and wd.shape[1] == onehot_p

    # --- batch tiling: sublane-aligned, prefer >= 2 grid steps (v7x megacore) ---
    b_pad = _round_up(B, 8)
    tb = min(tile_b, b_pad)
    if b_pad // tb < 2 and b_pad >= 16:
        tb = max(8, (b_pad // 2) // 8 * 8)
    b_pad = _round_up(b_pad, tb)

    xp = x.astype(jnp.bfloat16)
    if onehot_p != onehot:
        xp = jnp.pad(xp, ((0, 0), (0, onehot_p - onehot)))
    if b_pad != B:
        xp = jnp.pad(xp, ((0, b_pad - B), (0, 0)))

    # split large batch tiles into 2 independent sub-chunks (MXU/EUP overlap)
    n_chunks = 2 if (tb >= 256 and tb % 16 == 0) else 1
    cb = tb // n_chunks

    def batch_spec(last):
        return pl.BlockSpec((tb, last), lambda i: (i, 0))

    if weight_buffers > 0:
        def weight_spec(shape):
            # constant index_map + single buffer: one VMEM-resident copy, no re-DMA
            return pl.BlockSpec(shape, lambda i: (0, 0),
                                pipeline_mode=pl.Buffered(weight_buffers))
    else:
        def weight_spec(shape):
            return pl.BlockSpec(shape, lambda i: (0, 0))

    def nbytes(a):
        return a.size * a.dtype.itemsize

    # VMEM budget: weights counted once (single-buffered), 2x only for the
    # batch-varying x/out tiles (both bf16), plus f32 intermediates + headroom.
    weight_bytes = (nbytes(we) + nbytes(be) + nbytes(wih0) + nbytes(b0)
                    + nbytes(wih1) + nbytes(b1) + nbytes(wd) + nbytes(bd))
    weight_copies = weight_buffers if weight_buffers > 0 else 2
    io_bytes = 2 * tb * onehot_p * 2 + 2 * tb * onehot_p * 2
    scratch_bytes = n_chunks * cb * (EMB + 3 * EMB + onehot_p) * 4
    need = weight_copies * weight_bytes + io_bytes + scratch_bytes + (4 << 20)
    try:
        cap = int(pltpu.get_tpu_info().vmem_capacity_bytes) - (8 << 20)
    except Exception:  # pragma: no cover - conservative fallback
        cap = 64 << 20
    cap = max(cap, 16 << 20)
    vmem_limit = int(min(max(need, 8 << 20), cap))

    kernel = functools.partial(_seq2seq_kernel, n_chunks, cb)
    out = pl.pallas_call(
        kernel,
        out_shape=jax.ShapeDtypeStruct((b_pad, onehot_p), jnp.bfloat16),
        grid=(b_pad // tb,),
        in_specs=[batch_spec(onehot_p),
                  weight_spec(we.shape), weight_spec(be.shape),
                  weight_spec(wih0.shape), weight_spec(b0.shape),
                  weight_spec(wih1.shape), weight_spec(b1.shape),
                  weight_spec(wd.shape), weight_spec(bd.shape)],
        out_specs=batch_spec(onehot_p),
        compiler_params=pltpu.CompilerParams(
            dimension_semantics=("parallel",),       # batch tiles split across TCs (v7x)
            vmem_limit_bytes=vmem_limit),
    )(xp, we, be, wih0, b0, wih1, b1, wd, bd)

    return out[:B, :onehot]


def seq2seq_forward(x, kparams, *, tile_b=256):
    """Forward pass.  Prefers single-buffered (VMEM-resident) weights; falls
    back to default double-buffered BlockSpecs if this JAX build rejects
    pipeline_mode on pallas_call inputs."""
    try:
        return _forward(x, kparams, tile_b=tile_b, weight_buffers=1)
    except Exception:
        return _forward(x, kparams, tile_b=tile_b, weight_buffers=0)


def reference_forward(x, kparams):
    """Pure-JAX reference mirroring the kernel math (bf16 weights/activations,
    f32 accumulation), matching the PyTorch eval-mode forward."""
    we, be, wih0, b0, wih1, b1, wd, bd = kparams
    onehot = x.shape[1]
    onehot_p = we.shape[0]
    if onehot_p != onehot:
        x = jnp.pad(x, ((0, 0), (0, onehot_p - onehot)))

    def bf(a):
        return a.astype(jnp.bfloat16).astype(jnp.float32)

    e = jnp.maximum(bf(x) @ bf(we) + be, 0.0)

    def cell(inp, wih, b):
        g = bf(inp) @ bf(wih) + b
        i = jax.nn.sigmoid(g[:, 0 * EMB:1 * EMB])
        gg = jnp.tanh(g[:, 1 * EMB:2 * EMB])
        o = jax.nn.sigmoid(g[:, 2 * EMB:3 * EMB])
        return o * jnp.tanh(i * gg)

    h1 = cell(cell(e, wih0, b0), wih1, b1)
    z = bf(h1) @ bf(wd) + bd                     # 0.5 already folded into wd/bd
    return jnp.tanh(z)[:, :onehot]


if __name__ == "__main__":
    key = jax.random.PRNGKey(0)
    pkey, xkey = jax.random.split(key)

    onehot_num = 128   # onehot_size (lane-aligned, small demo size)
    batch = 8

    params = init_params(pkey, onehot_num)
    kparams = prepare_kernel_params(params)
    x = jax.random.uniform(xkey, (batch, onehot_num), jnp.float32)

    out = seq2seq_forward(x, kparams)
    jax.block_until_ready(out)

    ref = reference_forward(x, kparams)
    assert out.shape == (batch, onehot_num)
    assert out.dtype == jnp.bfloat16
    assert jnp.allclose(out.astype(jnp.float32), ref, atol=1e-2, rtol=1e-2), \
        "mismatch vs JAX reference"

    print("KERNEL_OK")
</pallas_src>

<mosaic_0001>
module attributes {stable_mosaic.version = 11 : i64} {
  func.func @_seq2seq_kernel(%arg0: i32, %arg1: memref<8x128xbf16, #tpu.memory_space<vmem>>, %arg2: memref<128x256xbf16, #tpu.memory_space<vmem>>, %arg3: memref<1x256xf32, #tpu.memory_space<vmem>>, %arg4: memref<256x768xbf16, #tpu.memory_space<vmem>>, %arg5: memref<1x768xf32, #tpu.memory_space<vmem>>, %arg6: memref<256x768xbf16, #tpu.memory_space<vmem>>, %arg7: memref<1x768xf32, #tpu.memory_space<vmem>>, %arg8: memref<256x128xbf16, #tpu.memory_space<vmem>>, %arg9: memref<1x128xf32, #tpu.memory_space<vmem>>, %arg10: memref<8x128xbf16, #tpu.memory_space<vmem>>) attributes {dimension_semantics = [#tpu.dimension_semantics<parallel>], iteration_bounds = array<i64: 1>, scalar_prefetch = 0 : i64, scratch_operands = 0 : i64, tpu.core_type = #tpu.core_type<tc>, window_params = [{transform_indices = @transform_0, window_bounds = array<i64: 8, 128>}, {pipeline_mode = #tpu.pipeline_mode<synchronous>, transform_indices = @transform_1, window_bounds = array<i64: 128, 256>}, {pipeline_mode = #tpu.pipeline_mode<synchronous>, transform_indices = @transform_2, window_bounds = array<i64: 1, 256>}, {pipeline_mode = #tpu.pipeline_mode<synchronous>, transform_indices = @transform_3, window_bounds = array<i64: 256, 768>}, {pipeline_mode = #tpu.pipeline_mode<synchronous>, transform_indices = @transform_4, window_bounds = array<i64: 1, 768>}, {pipeline_mode = #tpu.pipeline_mode<synchronous>, transform_indices = @transform_5, window_bounds = array<i64: 256, 768>}, {pipeline_mode = #tpu.pipeline_mode<synchronous>, transform_indices = @transform_6, window_bounds = array<i64: 1, 768>}, {pipeline_mode = #tpu.pipeline_mode<synchronous>, transform_indices = @transform_7, window_bounds = array<i64: 256, 128>}, {pipeline_mode = #tpu.pipeline_mode<synchronous>, transform_indices = @transform_8, window_bounds = array<i64: 1, 128>}, {transform_indices = @transform_9, window_bounds = array<i64: 8, 128>}]} {
    %c0 = arith.constant 0 : index
    %c0_0 = arith.constant 0 : index
    %0 = vector.load %arg1[%c0, %c0_0] : memref<8x128xbf16, #tpu.memory_space<vmem>>, vector<8x128xbf16>
    %c0_1 = arith.constant 0 : index
    %c0_2 = arith.constant 0 : index
    %1 = vector.load %arg2[%c0_1, %c0_2] : memref<128x256xbf16, #tpu.memory_space<vmem>>, vector<128x256xbf16>
    %cst = arith.constant dense<0.000000e+00> : vector<8x256xf32>
    %2 = tpu.matmul %0, %1, %cst {dimension_numbers = #tpu.dot_dimension_numbers<[1], [0], [0], [1], [0, 0, 1, 1], [], []>} : vector<8x128xbf16>, vector<128x256xbf16>, vector<8x256xf32> -> vector<8x256xf32>
    %c0_3 = arith.constant 0 : index
    %c0_4 = arith.constant 0 : index
    %3 = vector.load %arg3[%c0_3, %c0_4] : memref<1x256xf32, #tpu.memory_space<vmem>>, vector<1x256xf32>
    %4 = vector.broadcast %3 : vector<1x256xf32> to vector<8x256xf32>
    %5 = arith.addf %2, %4 : vector<8x256xf32>
    %cst_5 = arith.constant 0.000000e+00 : f32
    %6 = vector.broadcast %cst_5 : f32 to vector<8x256xf32>
    %7 = arith.maximumf %5, %6 : vector<8x256xf32>
    %8 = arith.truncf %7 : vector<8x256xf32> to vector<8x256xbf16>
    %c0_6 = arith.constant 0 : index
    %c0_7 = arith.constant 0 : index
    %9 = vector.load %arg4[%c0_6, %c0_7] : memref<256x768xbf16, #tpu.memory_space<vmem>>, vector<256x768xbf16>
    %cst_8 = arith.constant dense<0.000000e+00> : vector<8x768xf32>
    %10 = tpu.matmul %8, %9, %cst_8 {dimension_numbers = #tpu.dot_dimension_numbers<[1], [0], [0], [1], [0, 0, 1, 1], [], []>} : vector<8x256xbf16>, vector<256x768xbf16>, vector<8x768xf32> -> vector<8x768xf32>
    %c0_9 = arith.constant 0 : index
    %c0_10 = arith.constant 0 : index
    %11 = vector.load %arg5[%c0_9, %c0_10] : memref<1x768xf32, #tpu.memory_space<vmem>>, vector<1x768xf32>
    %12 = vector.broadcast %11 : vector<1x768xf32> to vector<8x768xf32>
    %13 = arith.addf %10, %12 : vector<8x768xf32>
    %14 = vector.extract_strided_slice %13 {offsets = [0, 0], sizes = [8, 256], strides = [1, 1]} : vector<8x768xf32> to vector<8x256xf32>
    %15 = arith.negf %14 : vector<8x256xf32>
    %16 = math.exp %15 : vector<8x256xf32>
    %cst_11 = arith.constant 1.000000e+00 : f32
    %17 = vector.broadcast %cst_11 : f32 to vector<8x256xf32>
    %18 = arith.addf %17, %16 : vector<8x256xf32>
    %19 = arith.divf %17, %18 : vector<8x256xf32>
    %20 = vector.extract_strided_slice %13 {offsets = [0, 256], sizes = [8, 256], strides = [1, 1]} : vector<8x768xf32> to vector<8x256xf32>
    %21 = math.tanh %20 : vector<8x256xf32>
    %22 = vector.extract_strided_slice %13 {offsets = [0, 512], sizes = [8, 256], strides = [1, 1]} : vector<8x768xf32> to vector<8x256xf32>
    %23 = arith.negf %22 : vector<8x256xf32>
    %24 = math.exp %23 : vector<8x256xf32>
    %cst_12 = arith.constant 1.000000e+00 : f32
    %25 = vector.broadcast %cst_12 : f32 to vector<8x256xf32>
    %26 = arith.addf %25, %24 : vector<8x256xf32>
    %27 = arith.divf %25, %26 : vector<8x256xf32>
    %28 = arith.mulf %19, %21 : vector<8x256xf32>
    %29 = math.tanh %28 : vector<8x256xf32>
    %30 = arith.mulf %27, %29 : vector<8x256xf32>
    %31 = arith.truncf %30 : vector<8x256xf32> to vector<8x256xbf16>
    %c0_13 = arith.constant 0 : index
    %c0_14 = arith.constant 0 : index
    %32 = vector.load %arg6[%c0_13, %c0_14] : memref<256x768xbf16, #tpu.memory_space<vmem>>, vector<256x768xbf16>
    %cst_15 = arith.constant dense<0.000000e+00> : vector<8x768xf32>
    %33 = tpu.matmul %31, %32, %cst_15 {dimension_numbers = #tpu.dot_dimension_numbers<[1], [0], [0], [1], [0, 0, 1, 1], [], []>} : vector<8x256xbf16>, vector<256x768xbf16>, vector<8x768xf32> -> vector<8x768xf32>
    %c0_16 = arith.constant 0 : index
    %c0_17 = arith.constant 0 : index
    %34 = vector.load %arg7[%c0_16, %c0_17] : memref<1x768xf32, #tpu.memory_space<vmem>>, vector<1x768xf32>
    %35 = vector.broadcast %34 : vector<1x768xf32> to vector<8x768xf32>
    %36 = arith.addf %33, %35 : vector<8x768xf32>
    %37 = vector.extract_strided_slice %36 {offsets = [0, 0], sizes = [8, 256], strides = [1, 1]} : vector<8x768xf32> to vector<8x256xf32>
    %38 = arith.negf %37 : vector<8x256xf32>
    %39 = math.exp %38 : vector<8x256xf32>
    %cst_18 = arith.constant 1.000000e+00 : f32
    %40 = vector.broadcast %cst_18 : f32 to vector<8x256xf32>
    %41 = arith.addf %40, %39 : vector<8x256xf32>
    %42 = arith.divf %40, %41 : vector<8x256xf32>
    %43 = vector.extract_strided_slice %36 {offsets = [0, 256], sizes = [8, 256], strides = [1, 1]} : vector<8x768xf32> to vector<8x256xf32>
    %44 = math.tanh %43 : vector<8x256xf32>
    %45 = vector.extract_strided_slice %36 {offsets = [0, 512], sizes = [8, 256], strides = [1, 1]} : vector<8x768xf32> to vector<8x256xf32>
    %46 = arith.negf %45 : vector<8x256xf32>
    %47 = math.exp %46 : vector<8x256xf32>
    %cst_19 = arith.constant 1.000000e+00 : f32
    %48 = vector.broadcast %cst_19 : f32 to vector<8x256xf32>
    %49 = arith.addf %48, %47 : vector<8x256xf32>
    %50 = arith.divf %48, %49 : vector<8x256xf32>
    %51 = arith.mulf %42, %44 : vector<8x256xf32>
    %52 = math.tanh %51 : vector<8x256xf32>
    %53 = arith.mulf %50, %52 : vector<8x256xf32>
    %54 = arith.truncf %53 : vector<8x256xf32> to vector<8x256xbf16>
    %c0_20 = arith.constant 0 : index
    %c0_21 = arith.constant 0 : index
    %55 = vector.load %arg8[%c0_20, %c0_21] : memref<256x128xbf16, #tpu.memory_space<vmem>>, vector<256x128xbf16>
    %cst_22 = arith.constant dense<0.000000e+00> : vector<8x128xf32>
    %56 = tpu.matmul %54, %55, %cst_22 {dimension_numbers = #tpu.dot_dimension_numbers<[1], [0], [0], [1], [0, 0, 1, 1], [], []>} : vector<8x256xbf16>, vector<256x128xbf16>, vector<8x128xf32> -> vector<8x128xf32>
    %c0_23 = arith.constant 0 : index
    %c0_24 = arith.constant 0 : index
    %57 = vector.load %arg9[%c0_23, %c0_24] : memref<1x128xf32, #tpu.memory_space<vmem>>, vector<1x128xf32>
    %58 = vector.broadcast %57 : vector<1x128xf32> to vector<8x128xf32>
    %59 = arith.addf %56, %58 : vector<8x128xf32>
    %60 = math.tanh %59 : vector<8x128xf32>
    %61 = arith.truncf %60 : vector<8x128xf32> to vector<8x128xbf16>
    %c0_25 = arith.constant 0 : index
    %c0_26 = arith.constant 0 : index
    %62 = vector.load %arg10[%c0_25, %c0_26] : memref<8x128xbf16, #tpu.memory_space<vmem>>, vector<8x128xbf16>
    tpu.vector_store %arg10[%c0_25, %c0_26], %61 {strides = array<i32>} : memref<8x128xbf16, #tpu.memory_space<vmem>>, vector<8x128xbf16>,
    return
  }
  func.func @transform_0(%arg0: i32) -> (i32, i32) {
    %c0_i32 = arith.constant 0 : i32
    %c0_i32_0 = arith.constant 0 : i32
    return %arg0, %c0_i32 : i32, i32
  }
  func.func @transform_1(%arg0: i32) -> (i32, i32) {
    %c0_i32 = arith.constant 0 : i32
    %c0_i32_0 = arith.constant 0 : i32
    %c0_i32_1 = arith.constant 0 : i32
    return %c0_i32, %c0_i32_0 : i32, i32
  }
  func.func @transform_2(%arg0: i32) -> (i32, i32) {
    %c0_i32 = arith.constant 0 : i32
    %c0_i32_0 = arith.constant 0 : i32
    %c0_i32_1 = arith.constant 0 : i32
    return %c0_i32, %c0_i32_0 : i32, i32
  }
  func.func @transform_3(%arg0: i32) -> (i32, i32) {
    %c0_i32 = arith.constant 0 : i32
    %c0_i32_0 = arith.constant 0 : i32
    %c0_i32_1 = arith.constant 0 : i32
    return %c0_i32, %c0_i32_0 : i32, i32
  }
  func.func @transform_4(%arg0: i32) -> (i32, i32) {
    %c0_i32 = arith.constant 0 : i32
    %c0_i32_0 = arith.constant 0 : i32
    %c0_i32_1 = arith.constant 0 : i32
    return %c0_i32, %c0_i32_0 : i32, i32
  }
  func.func @transform_5(%arg0: i32) -> (i32, i32) {
    %c0_i32 = arith.constant 0 : i32
    %c0_i32_0 = arith.constant 0 : i32
    %c0_i32_1 = arith.constant 0 : i32
    return %c0_i32, %c0_i32_0 : i32, i32
  }
  func.func @transform_6(%arg0: i32) -> (i32, i32) {
    %c0_i32 = arith.constant 0 : i32
    %c0_i32_0 = arith.constant 0 : i32
    %c0_i32_1 = arith.constant 0 : i32
    return %c0_i32, %c0_i32_0 : i32, i32
  }
  func.func @transform_7(%arg0: i32) -> (i32, i32) {
    %c0_i32 = arith.constant 0 : i32
    %c0_i32_0 = arith.constant 0 : i32
    %c0_i32_1 = arith.constant 0 : i32
    return %c0_i32, %c0_i32_0 : i32, i32
  }
  func.func @transform_8(%arg0: i32) -> (i32, i32) {
    %c0_i32 = arith.constant 0 : i32
    %c0_i32_0 = arith.constant 0 : i32
    %c0_i32_1 = arith.constant 0 : i32
    return %c0_i32, %c0_i32_0 : i32, i32
  }
  func.func @transform_9(%arg0: i32) -> (i32, i32) {
    %c0_i32 = arith.constant 0 : i32
    %c0_i32_0 = arith.constant 0 : i32
    return %arg0, %c0_i32 : i32, i32
  }
}

module attributes {stable_mosaic.version = 11 : i64} {
  func.func @_seq2seq_kernel(%arg0: i32, %arg1: memref<8x128xbf16, #tpu.memory_space<vmem>>, %arg2: memref<128x256xbf16, #tpu.memory_space<vmem>>, %arg3: memref<1x256xf32, #tpu.memory_space<vmem>>, %arg4: memref<256x768xbf16, #tpu.memory_space<vmem>>, %arg5: memref<1x768xf32, #tpu.memory_space<vmem>>, %arg6: memref<256x768xbf16, #tpu.memory_space<vmem>>, %arg7: memref<1x768xf32, #tpu.memory_space<vmem>>, %arg8: memref<256x128xbf16, #tpu.memory_space<vmem>>, %arg9: memref<1x128xf32, #tpu.memory_space<vmem>>, %arg10: memref<8x128xbf16, #tpu.memory_space<vmem>>) attributes {dimension_semantics = [#tpu.dimension_semantics<parallel>], iteration_bounds = array<i64: 1>, scalar_prefetch = 0 : i64, scratch_operands = 0 : i64, tpu.core_type = #tpu.core_type<tc>, window_params = [{transform_indices = @transform_0, window_bounds = array<i64: 8, 128>}, {pipeline_mode = #tpu.pipeline_mode<synchronous>, transform_indices = @transform_1, window_bounds = array<i64: 128, 256>}, {pipeline_mode = #tpu.pipeline_mode<synchronous>, transform_indices = @transform_2, window_bounds = array<i64: 1, 256>}, {pipeline_mode = #tpu.pipeline_mode<synchronous>, transform_indices = @transform_3, window_bounds = array<i64: 256, 768>}, {pipeline_mode = #tpu.pipeline_mode<synchronous>, transform_indices = @transform_4, window_bounds = array<i64: 1, 768>}, {pipeline_mode = #tpu.pipeline_mode<synchronous>, transform_indices = @transform_5, window_bounds = array<i64: 256, 768>}, {pipeline_mode = #tpu.pipeline_mode<synchronous>, transform_indices = @transform_6, window_bounds = array<i64: 1, 768>}, {pipeline_mode = #tpu.pipeline_mode<synchronous>, transform_indices = @transform_7, window_bounds = array<i64: 256, 128>}, {pipeline_mode = #tpu.pipeline_mode<synchronous>, transform_indices = @transform_8, window_bounds = array<i64: 1, 128>}, {transform_indices = @transform_9, window_bounds = array<i64: 8, 128>}]} {
    %c0 = arith.constant 0 : index
    %c0_0 = arith.constant 0 : index
    %0 = vector.load %arg1[%c0, %c0_0] : memref<8x128xbf16, #tpu.memory_space<vmem>>, vector<8x128xbf16>
    %c0_1 = arith.constant 0 : index
    %c0_2 = arith.constant 0 : index
    %1 = vector.load %arg2[%c0_1, %c0_2] : memref<128x256xbf16, #tpu.memory_space<vmem>>, vector<128x256xbf16>
    %cst = arith.constant dense<0.000000e+00> : vector<8x256xf32>
    %2 = tpu.matmul %0, %1, %cst {dimension_numbers = #tpu.dot_dimension_numbers<[1], [0], [0], [1], [0, 0, 1, 1], [], []>} : vector<8x128xbf16>, vector<128x256xbf16>, vector<8x256xf32> -> vector<8x256xf32>
    %c0_3 = arith.constant 0 : index
    %c0_4 = arith.constant 0 : index
    %3 = vector.load %arg3[%c0_3, %c0_4] : memref<1x256xf32, #tpu.memory_space<vmem>>, vector<1x256xf32>
    %4 = vector.broadcast %3 : vector<1x256xf32> to vector<8x256xf32>
    %5 = arith.addf %2, %4 : vector<8x256xf32>
    %cst_5 = arith.constant 0.000000e+00 : f32
    %6 = vector.broadcast %cst_5 : f32 to vector<8x256xf32>
    %7 = arith.maximumf %5, %6 : vector<8x256xf32>
    %8 = arith.truncf %7 : vector<8x256xf32> to vector<8x256xbf16>
    %c0_6 = arith.constant 0 : index
    %c0_7 = arith.constant 0 : index
    %9 = vector.load %arg4[%c0_6, %c0_7] : memref<256x768xbf16, #tpu.memory_space<vmem>>, vector<256x768xbf16>
    %cst_8 = arith.constant dense<0.000000e+00> : vector<8x768xf32>
    %10 = tpu.matmul %8, %9, %cst_8 {dimension_numbers = #tpu.dot_dimension_numbers<[1], [0], [0], [1], [0, 0, 1, 1], [], []>} : vector<8x256xbf16>, vector<256x768xbf16>, vector<8x768xf32> -> vector<8x768xf32>
    %c0_9 = arith.constant 0 : index
    %c0_10 = arith.constant 0 : index
    %11 = vector.load %arg5[%c0_9, %c0_10] : memref<1x768xf32, #tpu.memory_space<vmem>>, vector<1x768xf32>
    %12 = vector.broadcast %11 : vector<1x768xf32> to vector<8x768xf32>
    %13 = arith.addf %10, %12 : vector<8x768xf32>
    %14 = vector.extract_strided_slice %13 {offsets = [0, 0], sizes = [8, 256], strides = [1, 1]} : vector<8x768xf32> to vector<8x256xf32>
    %15 = arith.negf %14 : vector<8x256xf32>
    %16 = math.exp %15 : vector<8x256xf32>
    %cst_11 = arith.constant 1.000000e+00 : f32
    %17 = vector.broadcast %cst_11 : f32 to vector<8x256xf32>
    %18 = arith.addf %17, %16 : vector<8x256xf32>
    %19 = arith.divf %17, %18 : vector<8x256xf32>
    %20 = vector.extract_strided_slice %13 {offsets = [0, 256], sizes = [8, 256], strides = [1, 1]} : vector<8x768xf32> to vector<8x256xf32>
    %21 = math.tanh %20 : vector<8x256xf32>
    %22 = vector.extract_strided_slice %13 {offsets = [0, 512], sizes = [8, 256], strides = [1, 1]} : vector<8x768xf32> to vector<8x256xf32>
    %23 = arith.negf %22 : vector<8x256xf32>
    %24 = math.exp %23 : vector<8x256xf32>
    %cst_12 = arith.constant 1.000000e+00 : f32
    %25 = vector.broadcast %cst_12 : f32 to vector<8x256xf32>
    %26 = arith.addf %25, %24 : vector<8x256xf32>
    %27 = arith.divf %25, %26 : vector<8x256xf32>
    %28 = arith.mulf %19, %21 : vector<8x256xf32>
    %29 = math.tanh %28 : vector<8x256xf32>
    %30 = arith.mulf %27, %29 : vector<8x256xf32>
    %31 = arith.truncf %30 : vector<8x256xf32> to vector<8x256xbf16>
    %c0_13 = arith.constant 0 : index
    %c0_14 = arith.constant 0 : index
    %32 = vector.load %arg6[%c0_13, %c0_14] : memref<256x768xbf16, #tpu.memory_space<vmem>>, vector<256x768xbf16>
    %cst_15 = arith.constant dense<0.000000e+00> : vector<8x768xf32>
    %33 = tpu.matmul %31, %32, %cst_15 {dimension_numbers = #tpu.dot_dimension_numbers<[1], [0], [0], [1], [0, 0, 1, 1], [], []>} : vector<8x256xbf16>, vector<256x768xbf16>, vector<8x768xf32> -> vector<8x768xf32>
    %c0_16 = arith.constant 0 : index
    %c0_17 = arith.constant 0 : index
    %34 = vector.load %arg7[%c0_16, %c0_17] : memref<1x768xf32, #tpu.memory_space<vmem>>, vector<1x768xf32>
    %35 = vector.broadcast %34 : vector<1x768xf32> to vector<8x768xf32>
    %36 = arith.addf %33, %35 : vector<8x768xf32>
    %37 = vector.extract_strided_slice %36 {offsets = [0, 0], sizes = [8, 256], strides = [1, 1]} : vector<8x768xf32> to vector<8x256xf32>
    %38 = arith.negf %37 : vector<8x256xf32>
    %39 = math.exp %38 : vector<8x256xf32>
    %cst_18 = arith.constant 1.000000e+00 : f32
    %40 = vector.broadcast %cst_18 : f32 to vector<8x256xf32>
    %41 = arith.addf %40, %39 : vector<8x256xf32>
    %42 = arith.divf %40, %41 : vector<8x256xf32>
    %43 = vector.extract_strided_slice %36 {offsets = [0, 256], sizes = [8, 256], strides = [1, 1]} : vector<8x768xf32> to vector<8x256xf32>
    %44 = math.tanh %43 : vector<8x256xf32>
    %45 = vector.extract_strided_slice %36 {offsets = [0, 512], sizes = [8, 256], strides = [1, 1]} : vector<8x768xf32> to vector<8x256xf32>
    %46 = arith.negf %45 : vector<8x256xf32>
    %47 = math.exp %46 : vector<8x256xf32>
    %cst_19 = arith.constant 1.000000e+00 : f32
    %48 = vector.broadcast %cst_19 : f32 to vector<8x256xf32>
    %49 = arith.addf %48, %47 : vector<8x256xf32>
    %50 = arith.divf %48, %49 : vector<8x256xf32>
    %51 = arith.mulf %42, %44 : vector<8x256xf32>
    %52 = math.tanh %51 : vector<8x256xf32>
    %53 = arith.mulf %50, %52 : vector<8x256xf32>
    %54 = arith.truncf %53 : vector<8x256xf32> to vector<8x256xbf16>
    %c0_20 = arith.constant 0 : index
    %c0_21 = arith.constant 0 : index
    %55 = vector.load %arg8[%c0_20, %c0_21] : memref<256x128xbf16, #tpu.memory_space<vmem>>, vector<256x128xbf16>
    %cst_22 = arith.constant dense<0.000000e+00> : vector<8x128xf32>
    %56 = tpu.matmul %54, %55, %cst_22 {dimension_numbers = #tpu.dot_dimension_numbers<[1], [0], [0], [1], [0, 0, 1, 1], [], []>} : vector<8x256xbf16>, vector<256x128xbf16>, vector<8x128xf32> -> vector<8x128xf32>
    %c0_23 = arith.constant 0 : index
    %c0_24 = arith.constant 0 : index
    %57 = vector.load %arg9[%c0_23, %c0_24] : memref<1x128xf32, #tpu.memory_space<vmem>>, vector<1x128xf32>
    %58 = vector.broadcast %57 : vector<1x128xf32> to vector<8x128xf32>
    %59 = arith.addf %56, %58 : vector<8x128xf32>
    %60 = math.tanh %59 : vector<8x128xf32>
    %61 = arith.truncf %60 : vector<8x128xf32> to vector<8x128xbf16>
    %c0_25 = arith.constant 0 : index
    %c0_26 = arith.constant 0 : index
    %62 = vector.load %arg10[%c0_25, %c0_26] : memref<8x128xbf16, #tpu.memory_space<vmem>>, vector<8x128xbf16>
    tpu.vector_store %arg10[%c0_25, %c0_26], %61 {strides = array<i32>} : memref<8x128xbf16, #tpu.memory_space<vmem>>, vector<8x128xbf16>,
    return
  }
  func.func @transform_0(%arg0: i32) -> (i32, i32) {
    %c0_i32 = arith.constant 0 : i32
    %c0_i32_0 = arith.constant 0 : i32
    return %arg0, %c0_i32 : i32, i32
  }
  func.func @transform_1(%arg0: i32) -> (i32, i32) {
    %c0_i32 = arith.constant 0 : i32
    %c0_i32_0 = arith.constant 0 : i32
    %c0_i32_1 = arith.constant 0 : i32
    return %c0_i32, %c0_i32_0 : i32, i32
  }
  func.func @transform_2(%arg0: i32) -> (i32, i32) {
    %c0_i32 = arith.constant 0 : i32
    %c0_i32_0 = arith.constant 0 : i32
    %c0_i32_1 = arith.constant 0 : i32
    return %c0_i32, %c0_i32_0 : i32, i32
  }
  func.func @transform_3(%arg0: i32) -> (i32, i32) {
    %c0_i32 = arith.constant 0 : i32
    %c0_i32_0 = arith.constant 0 : i32
    %c0_i32_1 = arith.constant 0 : i32
    return %c0_i32, %c0_i32_0 : i32, i32
  }
  func.func @transform_4(%arg0: i32) -> (i32, i32) {
    %c0_i32 = arith.constant 0 : i32
    %c0_i32_0 = arith.constant 0 : i32
    %c0_i32_1 = arith.constant 0 : i32
    return %c0_i32, %c0_i32_0 : i32, i32
  }
  func.func @transform_5(%arg0: i32) -> (i32, i32) {
    %c0_i32 = arith.constant 0 : i32
    %c0_i32_0 = arith.constant 0 : i32
    %c0_i32_1 = arith.constant 0 : i32
    return %c0_i32, %c0_i32_0 : i32, i32
  }
  func.func @transform_6(%arg0: i32) -> (i32, i32) {
    %c0_i32 = arith.constant 0 : i32
    %c0_i32_0 = arith.constant 0 : i32
    %c0_i32_1 = arith.constant 0 : i32
    return %c0_i32, %c0_i32_0 : i32, i32
  }
  func.func @transform_7(%arg0: i32) -> (i32, i32) {
    %c0_i32 = arith.constant 0 : i32
    %c0_i32_0 = arith.constant 0 : i32
    %c0_i32_1 = arith.constant 0 : i32
    return %c0_i32, %c0_i32_0 : i32, i32
  }
  func.func @transform_8(%arg0: i32) -> (i32, i32) {
    %c0_i32 = arith.constant 0 : i32
    %c0_i32_0 = arith.constant 0 : i32
    %c0_i32_1 = arith.constant 0 : i32
    return %c0_i32, %c0_i32_0 : i32, i32
  }
  func.func @transform_9(%arg0: i32) -> (i32, i32) {
    %c0_i32 = arith.constant 0 : i32
    %c0_i32_0 = arith.constant 0 : i32
    return %arg0, %c0_i32 : i32, i32
  }
}

</mosaic_0001>

<bundles_post_ra>
// kernel: _forward.1
= control target key start
LH: loop header
LB: loop body
LE: loop exit
PB: predicated region body
PF: predicated region fallthrough
CT: control target
= control target key end

     0   :  { %14 = vsyncpa [#allocation3], 0  ;;  %s3629_s0 = inlined_call_operand.vmem [shape: bf16[8,128], index: 0, kind: input, shape index: {}]   ;;  %s3630_s1 = inlined_call_operand.hbm [shape: bf16[128,256], index: 1, kind: input, shape index: {}]   ;;  %s3631_s2 = inlined_call_operand.hbm [shape: f32[1,256], index: 2, kind: input, shape index: {}]   ;;  %s3632_s3 = inlined_call_operand.hbm [shape: bf16[256,768], index: 3, kind: input, shape index: {}]   ;;  %s3633_s4 = inlined_call_operand.vmem [shape: f32[1,768], index: 4, kind: input, shape index: {}]   ;;  %s3634_s5 = inlined_call_operand.hbm [shape: bf16[256,768], index: 5, kind: input, shape index: {}]   ;;  %s3635_s6 = inlined_call_operand.vmem [shape: f32[1,768], index: 6, kind: input, shape index: {}]   ;;  %s3636_s7 = inlined_call_operand.hbm [shape: bf16[256,128], index: 7, kind: input, shape index: {}]   ;;  %s3637_s8 = inlined_call_operand.vmem [shape: f32[1,128], index: 8, kind: input, shape index: {}]   ;;  %s3638_s9 = inlined_call_operand.hbm [shape: bf16[8,128], index: 9, kind: output, shape index: {}]  }
   0x1   :  { %15 = vsyncpa [#allocation6], 0 }
   0x2   :  { %16 = vsyncpa [#allocation9], 0  ;;  %s38_s11 = sshll.u32 %s3631_s2, 4  ;;  %s39_s11 = int_to_ptr.hbm [resolvable:$true] %s38_s11 }
   0x3   :  { %17 = vsyncpa [#allocation4], 0  ;;  %s3429_s12 = smov [#allocation5]   ;;  %s63_s16 = sshll.u32 %s3634_s5, 4  ;;  %s64_s16 = int_to_ptr.hbm [resolvable:$true] %s63_s16 }
   0x4   :  { %s40_s13 = sshll.u32 %s3429_s12, 4  ;;  %s3430_s17 = smov [#allocation8]   ;;  %s41_s13 = int_to_ptr.vmem [resolvable:$true] %s40_s13 }
   0x5   :  { %43 = dma.hbm_to_vmem [thread:$0]  %s39_s11, 32, %s41_s13, [#allocation6]  }
   0x6   :  { %s65_s18 = sshll.u32 %s3430_s17, 4  ;;  %s24_s21 = sshll.u32 %s3630_s1, 4  ;;  %s66_s18 = int_to_ptr.vmem [resolvable:$true] %s65_s18  ;;  %s25_s21 = int_to_ptr.hbm [resolvable:$true] %s24_s21 }
   0x7   :  { %s3431_s2 = smov 384   ;;  %s3432_s22 = smov 24  }
   0x8   :  { %71 = dma.hbm_to_vmem [thread:$0]  %s64_s16, 12288, %s66_s18, [#allocation9], %s3431_s2, %s3431_s2, %s3432_s22  }
   0x9   :  { %s3433_s23 = smov [#allocation2]   ;;  %s48_s27 = sshll.u32 %s3632_s3, 4  ;;  %s49_s27 = int_to_ptr.hbm [resolvable:$true] %s48_s27 }
   0xa   :  { %s26_s24 = sshll.u32 %s3433_s23, 4  ;;  %s3434_s5 = smov 128   ;;  %s27_s24 = int_to_ptr.vmem [resolvable:$true] %s26_s24 }
   0xb   :  { %s3435_s28 = smov 8   ;;  %s3436_s29 = smov [#allocation7]  }
   0xc   :  { %32 = dma.hbm_to_vmem [thread:$0]  %s25_s21, 2048, %s27_s24, [#allocation3], %s3434_s5, %s3434_s5, %s3435_s28  }
   0xd   :  { %s50_s30 = sshll.u32 %s3436_s29, 4  ;;  %s78_s11 = sshll.u32 %s3636_s7, 4  ;;  %s51_s30 = int_to_ptr.vmem [resolvable:$true] %s50_s30  ;;  %s79_s11 = int_to_ptr.hbm [resolvable:$true] %s78_s11 }
   0xe   :  { %56 = dma.hbm_to_vmem [thread:$0]  %s49_s27, 12288, %s51_s30, [#allocation6], %s3431_s2, %s3431_s2, %s3432_s22  }
   0xf   :  { %s3437_s12 = smov [#allocation10]   ;;  %s3438_s14 = smov 64  }
  0x10   :  { %s80_s13 = sshll.u32 %s3437_s12, 4  ;;  %s3439_s15 = smov 4   ;;  %s81_s13 = int_to_ptr.vmem [resolvable:$true] %s80_s13 }
  0x11   :  { %86 = dma.hbm_to_vmem [thread:$0]  %s79_s11, 2048, %s81_s13, [#allocation9], %s3438_s14, %s3438_s14, %s3439_s15  }
  0x12   :  { %3421 = dma.done.wait [#allocation3], 2048  }
  0x13   :  { %3422 = vsyncadd [#allocation3], 4294965248 }
  0x14   :  { %3423 = dma.done.wait [#allocation6], 12320  }
  0x15   :  { %3424 = vsyncadd [#allocation6], 4294954976 }
  0x16   :  { %3425 = dma.done.wait [#allocation9], 14336  }
  0x17   :  { %3426 = vsyncadd [#allocation9], 4294952960  ;;  %v2144_v0 = vld [vmem:[#allocation2 + $0x70] sm:$0xf]  ;;  %v3005_v1 = vld [vmem:[#allocation2 + $0x74] sm:$0xf0] }
  0x18   :  { %v3004_v2 = vld [vmem:[#allocation2 + $0x74] sm:$0xf]  ;;  %v2145_v3 = vor.u32 %v3005_v1, %v2144_v0  ;;  %v2146_v4 = vld [vmem:[#allocation2 + $0x78] sm:$0xf0]  ;;  %v2136_v5 = vld [vmem:[#allocation2 + $0x60] sm:$0xf] }
  0x19   :  { %v3003_v6 = vld [vmem:[#allocation2 + $0x64] sm:$0xf0]  ;;  %v2149_v7 = vor.u32 %v3004_v2, %v2146_v4  ;;  %v3002_v8 = vld [vmem:[#allocation2 + $0x64] sm:$0xf]  ;;  %v2138_v9 = vld [vmem:[#allocation2 + $0x68] sm:$0xf0] }
  0x1a   :  { %212 = vmatpush.bf16.msra.mxu0 %v2145_v3  ;;  %v2137_v10 = vor.u32 %v3003_v6, %v2136_v5  ;;  %v2141_v11 = vor.u32 %v3002_v8, %v2138_v9  ;;  %v2128_v12 = vld [vmem:[#allocation2 + $0x50] sm:$0xf]  ;;  %v3001_v13 = vld [vmem:[#allocation2 + $0x54] sm:$0xf0]  ;;  %v3000_v14 = vld [vmem:[#allocation2 + $0x54] sm:$0xf] }
  0x1b   :  { %225 = vmatpush.bf16.msra.mxu1 %v2149_v7  ;;  %v2130_v15 = vld [vmem:[#allocation2 + $0x58] sm:$0xf0]  ;;  %v2129_v16 = vor.u32 %v3001_v13, %v2128_v12  ;;  %v2120_v18 = vld [vmem:[#allocation2 + $0x40] sm:$0xf]  ;;  %v2999_v19 = vld [vmem:[#allocation2 + $0x44] sm:$0xf0] }
  0x1c   :  { %v2133_v17 = vor.u32 %v3000_v14, %v2130_v15  ;;  %v2998_v20 = vld [vmem:[#allocation2 + $0x44] sm:$0xf]  ;;  %v2122_v21 = vld [vmem:[#allocation2 + $0x48] sm:$0xf0]  ;;  %v2121_v22 = vor.u32 %v2999_v19, %v2120_v18  ;;  %v2320_v23 = vld [vmem:[#allocation7 + $0x150] sm:$0xf] }
  0x1d   :  { %v3051_v24 = vld [vmem:[#allocation7 + $0x164] sm:$0xf0]  ;;  %v2512_v25 = vld [vmem:[#allocation7 + $0x2d0] sm:$0xf]  ;;  %v2125_v26 = vor.u32 %v2998_v20, %v2122_v21  ;;  %v2997_v28 = vld [vmem:[#allocation2 + $0x34] sm:$0xf0] }
  0x1e   :  { %213 = vmatpush.bf16.msra.mxu0 %v2137_v10  ;;  %v2112_v27 = vld [vmem:[#allocation2 + $0x30] sm:$0xf]  ;;  %v2321_v29 = vor.u32 %v3051_v24, %v2320_v23  ;;  %v3099_v30 = vld [vmem:[#allocation7 + $0x2e4] sm:$0xf0]  ;;  %v2996_v31 = vld [vmem:[#allocation2 + $0x34] sm:$0xf] }
  0x1f   :  { %226 = vmatpush.bf16.msra.mxu1 %v2141_v11  ;;  %v2114_v32 = vld [vmem:[#allocation2 + $0x38] sm:$0xf0]  ;;  %v2513_v33 = vor.u32 %v3099_v30, %v2512_v25  ;;  %v2296_v34 = vld [vmem:[#allocation7 + $0x120] sm:$0xf]  ;;  %v2113_v38 = vor.u32 %v2997_v28, %v2112_v27  ;;  %v2995_v40 = vld [vmem:[#allocation2 + $0x24] sm:$0xf0] }
  0x20   :  { %832 = vmatpush.bf16.msra.mxu2 %v2321_v29  ;;  %v3045_v35 = vld [vmem:[#allocation7 + $0x134] sm:$0xf0]  ;;  %v2488_v36 = vld [vmem:[#allocation7 + $0x2a0] sm:$0xf]  ;;  %v2117_v43 = vor.u32 %v2996_v31, %v2114_v32  ;;  %v2272_v45 = vld [vmem:[#allocation7 + $0xf0] sm:$0xf] }
  0x21   :  { %v3093_v37 = vld [vmem:[#allocation7 + $0x2b4] sm:$0xf0]  ;;  %v2104_v39 = vld [vmem:[#allocation2 + $0x20] sm:$0xf]  ;;  %845 = vmatpush.bf16.msra.mxu3 %v2513_v33  ;;  %v2297_v41 = vor.u32 %v3045_v35, %v2296_v34  ;;  %v2994_v44 = vld [vmem:[#allocation2 + $0x24] sm:$0xf] }
  0x22   :  { %214 = vmatpush.bf16.msra.mxu0 %v2129_v16  ;;  %v2489_v42 = vor.u32 %v3093_v37, %v2488_v36  ;;  %v3039_v46 = vld [vmem:[#allocation7 + $0x104] sm:$0xf0]  ;;  %v2464_v48 = vld [vmem:[#allocation7 + $0x270] sm:$0xf]  ;;  %v2105_v51 = vor.u32 %v2995_v40, %v2104_v39  ;;  %v2248_v54 = vld [vmem:[#allocation7 + $0xc0] sm:$0xf] }
  0x23   :  { %227 = vmatpush.bf16.msra.mxu1 %v2133_v17  ;;  %v2106_v47 = vld [vmem:[#allocation2 + $0x28] sm:$0xf0]  ;;  %v2273_v50 = vor.u32 %v3039_v46, %v2272_v45  ;;  %v2096_v52 = vld [vmem:[#allocation2 + $0x10] sm:$0xf]  ;;  %v3033_v55 = vld [vmem:[#allocation7 + $0xd4] sm:$0xf0] }
  0x24   :  { %v3087_v49 = vld [vmem:[#allocation7 + $0x284] sm:$0xf0]  ;;  %833 = vmatpush.bf16.msra.mxu2 %v2297_v41  ;;  %v2109_v56 = vor.u32 %v2994_v44, %v2106_v47  ;;  %v2993_v57 = vld [vmem:[#allocation2 + $0x14] sm:$0xf0]  ;;  %v2440_v58 = vld [vmem:[#allocation7 + $0x240] sm:$0xf]  ;;  %v2249_v63 = vor.u32 %v3033_v55, %v2248_v54 }
  0x25   :  { %846 = vmatpush.bf16.msra.mxu3 %v2489_v42  ;;  %v2465_v53 = vor.u32 %v3087_v49, %v2464_v48  ;;  %v3081_v59 = vld [vmem:[#allocation7 + $0x254] sm:$0xf0]  ;;  %v2992_v60 = vld [vmem:[#allocation2 + $0x14] sm:$0xf]  ;;  %v2088_v62 = vld [vmem:[#allocation2] sm:$0xf]  ;;  %v2097_v0 = vor.u32 %v2993_v57, %v2096_v52 }
  0x26   :  { %215 = vmatpush.bf16.msra.mxu0 %v2121_v22  ;;  %v2098_v61 = vld [vmem:[#allocation2 + $0x18] sm:$0xf0]  ;;  %v2991_v1 = vld [vmem:[#allocation2 + $0x4] sm:$0xf0]  ;;  %v2441_v2 = vor.u32 %v3081_v59, %v2440_v58  ;;  %v2224_v3 = vld [vmem:[#allocation7 + $0x90] sm:$0xf] }
  0x27   :  { %228 = vmatpush.bf16.msra.mxu1 %v2125_v26  ;;  %v3027_v4 = vld [vmem:[#allocation7 + $0xa4] sm:$0xf0]  ;;  %v2101_v5 = vor.u32 %v2992_v60, %v2098_v61  ;;  %v2990_v6 = vld [vmem:[#allocation2 + $0x4] sm:$0xf]  ;;  %v2416_v7 = vld [vmem:[#allocation7 + $0x210] sm:$0xf]  ;;  %v2089_v15 = vor.u32 %v2991_v1, %v2088_v62 }
  0x28   :  { %834 = vmatpush.bf16.msra.mxu2 %v2273_v50  ;;  %v3075_v8 = vld [vmem:[#allocation7 + $0x224] sm:$0xf0]  ;;  %v3048_v10 = vld [vmem:[#allocation7 + $0x154] sm:$0xf]  ;;  %v2322_v11 = vld [vmem:[#allocation7 + $0x168] sm:$0xf0]  ;;  %v2225_v14 = vor.u32 %v3027_v4, %v2224_v3 }
  0x29   :  { %847 = vmatpush.bf16.msra.mxu3 %v2465_v53  ;;  %v2090_v9 = vld [vmem:[#allocation2 + $0x8] sm:$0xf0]  ;;  %v3096_v12 = vld [vmem:[#allocation7 + $0x2d4] sm:$0xf]  ;;  %v2417_v16 = vor.u32 %v3075_v8, %v2416_v7  ;;  %v2200_v17 = vld [vmem:[#allocation7 + $0x60] sm:$0xf]  ;;  %v2325_v20 = vor.u32 %v3048_v10, %v2322_v11 }
  0x2a   :  { %216 = vmatpush.bf16.msra.mxu0 %v2113_v38  ;;  %v2514_v13 = vld [vmem:[#allocation7 + $0x2e8] sm:$0xf0]  ;;  %v3021_v18 = vld [vmem:[#allocation7 + $0x74] sm:$0xf0]  ;;  %v2093_v19 = vor.u32 %v2990_v6, %v2090_v9  ;;  %v2392_v21 = vld [vmem:[#allocation7 + $0x1e0] sm:$0xf] }
  0x2b   :  { %229 = vmatpush.bf16.msra.mxu1 %v2117_v43  ;;  %v3069_v22 = vld [vmem:[#allocation7 + $0x1f4] sm:$0xf0]  ;;  %v2517_v23 = vor.u32 %v3096_v12, %v2514_v13  ;;  %v3042_v24 = vld [vmem:[#allocation7 + $0x124] sm:$0xf]  ;;  %v2298_v25 = vld [vmem:[#allocation7 + $0x138] sm:$0xf0]  ;;  %v2201_v28 = vor.u32 %v3021_v18, %v2200_v17 }
  0x2c   :  { %835 = vmatpush.bf16.msra.mxu2 %v2249_v63  ;;  %v3090_v26 = vld [vmem:[#allocation7 + $0x2a4] sm:$0xf]  ;;  %v2490_v27 = vld [vmem:[#allocation7 + $0x2b8] sm:$0xf0]  ;;  %v2393_v30 = vor.u32 %v3069_v22, %v2392_v21  ;;  %v2176_v31 = vld [vmem:[#allocation7 + $0x30] sm:$0xf]  ;;  %v2301_v33 = vor.u32 %v3042_v24, %v2298_v25 }
  0x2d   :  { %848 = vmatpush.bf16.msra.mxu3 %v2441_v2  ;;  %v109_v29 = vld [vmem:[%s3629_s0] sm:$0xf]  ;;  %v3015_v32 = vld [vmem:[#allocation7 + $0x44] sm:$0xf0]  ;;  %v2368_v34 = vld [vmem:[#allocation7 + $0x1b0] sm:$0xf]  ;;  %v2493_v36 = vor.u32 %v3090_v26, %v2490_v27 }
  0x2e   :  { %217 = vmatpush.bf16.msra.mxu0 %v2105_v51  ;;  %v3063_v35 = vld [vmem:[#allocation7 + $0x1c4] sm:$0xf0]  ;;  %v3036_v37 = vld [vmem:[#allocation7 + $0xf4] sm:$0xf]  ;;  %v2274_v38 = vld [vmem:[#allocation7 + $0x108] sm:$0xf0]  ;;  %v2177_v41 = vor.u32 %v3015_v32, %v2176_v31 }
  0x2f   :  { %230 = vmatpush.bf16.msra.mxu1 %v2109_v56  ;;  %v3084_v39 = vld [vmem:[#allocation7 + $0x274] sm:$0xf]  ;;  %v2466_v40 = vld [vmem:[#allocation7 + $0x288] sm:$0xf0]  ;;  %v3030_v42 = vld [vmem:[#allocation7 + $0xc4] sm:$0xf]  ;;  %v2369_v43 = vor.u32 %v3063_v35, %v2368_v34  ;;  %v2277_v47 = vor.u32 %v3036_v37, %v2274_v38 }
  0x30   :  { %836 = vmatpush.bf16.msra.mxu2 %v2225_v14  ;;  %v2152_v44 = vld [vmem:[#allocation7] sm:$0xf]  ;;  %v3009_v45 = vld [vmem:[#allocation7 + $0x14] sm:$0xf0]  ;;  %v3052_v50 = vld [vmem:[#allocation7 + $0x16c] sm:$0xf0]  ;;  %v2469_v51 = vor.u32 %v3084_v39, %v2466_v40 }
  0x31   :  { %849 = vmatpush.bf16.msra.mxu3 %v2417_v16  ;;  %v2344_v46 = vld [vmem:[#allocation7 + $0x180] sm:$0xf]  ;;  %v3057_v48 = vld [vmem:[#allocation7 + $0x194] sm:$0xf0]  ;;  %v2250_v52 = vld [vmem:[#allocation7 + $0xd8] sm:$0xf0]  ;;  %v2153_v57 = vor.u32 %v3009_v45, %v2152_v44 }
  0x32   :  { %218 = vmatpush.bf16.msra.mxu0 %v2097_v0  ;;  %v2328_v49 = vld [vmem:[#allocation7 + $0x158] sm:$0xf]  ;;  %v3100_v54 = vld [vmem:[#allocation7 + $0x2ec] sm:$0xf0]  ;;  %v3078_v55 = vld [vmem:[#allocation7 + $0x244] sm:$0xf]  ;;  %v2345_v58 = vor.u32 %v3057_v48, %v2344_v46  ;;  %v2253_v60 = vor.u32 %v3030_v42, %v2250_v52 }
  0x33   :  { %231 = vmatpush.bf16.msra.mxu1 %v2101_v5  ;;  %v2520_v53 = vld [vmem:[#allocation7 + $0x2d8] sm:$0xf]  ;;  %v2442_v56 = vld [vmem:[#allocation7 + $0x258] sm:$0xf0]  ;;  %v2329_v59 = vor.u32 %v3052_v50, %v2328_v49  ;;  %v3024_v61 = vld [vmem:[#allocation7 + $0x94] sm:$0xf] }
  0x34   :  { %837 = vmatpush.bf16.msra.mxu2 %v2201_v28  ;;  %v2521_v62 = vor.u32 %v3100_v54, %v2520_v53  ;;  %v2304_v63 = vld [vmem:[#allocation7 + $0x128] sm:$0xf]  ;;  %v3046_v0 = vld [vmem:[#allocation7 + $0x13c] sm:$0xf0]  ;;  %v2445_v1 = vor.u32 %v3078_v55, %v2442_v56  ;;  %v2226_v2 = vld [vmem:[#allocation7 + $0xa8] sm:$0xf0] }
  0x35   :  { %850 = vmatpush.bf16.msra.mxu3 %v2393_v30  ;;  %v2496_v3 = vld [vmem:[#allocation7 + $0x2a8] sm:$0xf]  ;;  %v3094_v4 = vld [vmem:[#allocation7 + $0x2bc] sm:$0xf0]  ;;  %v3072_v5 = vld [vmem:[#allocation7 + $0x214] sm:$0xf]  ;;  %v2305_v8 = vor.u32 %v3046_v0, %v2304_v63  ;;  %v2229_v9 = vor.u32 %v3024_v61, %v2226_v2 }
  0x36   :  { %219 = vmatpush.bf16.msra.mxu0 %v2089_v15  ;;  %v2418_v6 = vld [vmem:[#allocation7 + $0x228] sm:$0xf0]  ;;  %v3018_v7 = vld [vmem:[#allocation7 + $0x64] sm:$0xf]  ;;  %v2202_v10 = vld [vmem:[#allocation7 + $0x78] sm:$0xf0]  ;;  %v2497_v11 = vor.u32 %v3094_v4, %v2496_v3 }
  0x37   :  { %232 = vmatpush.bf16.msra.mxu1 %v2093_v19  ;;  %v2280_v12 = vld [vmem:[#allocation7 + $0xf8] sm:$0xf]  ;;  %v3040_v13 = vld [vmem:[#allocation7 + $0x10c] sm:$0xf0]  ;;  %v2421_v14 = vor.u32 %v3072_v5, %v2418_v6  ;;  %v3066_v17 = vld [vmem:[#allocation7 + $0x1e4] sm:$0xf] }
  0x38   :  { %838 = vmatpush.bf16.msra.mxu2 %v2177_v41  ;;  %v2472_v15 = vld [vmem:[#allocation7 + $0x278] sm:$0xf]  ;;  %v3088_v16 = vld [vmem:[#allocation7 + $0x28c] sm:$0xf0]  ;;  %v2394_v18 = vld [vmem:[#allocation7 + $0x1f8] sm:$0xf0]  ;;  %v2281_v19 = vor.u32 %v3040_v13, %v2280_v12 }
  0x39   :  { %220 = vmatmul.bf16.vlgmr.msra.gmra.mxu0 %v109_v29  ;;  %851 = vmatpush.bf16.msra.mxu3 %v2369_v43  ;;  %v3012_v21 = vld [vmem:[#allocation7 + $0x34] sm:$0xf]  ;;  %v2473_v22 = vor.u32 %v3088_v16, %v2472_v15  ;;  %v3034_v24 = vld [vmem:[#allocation7 + $0xdc] sm:$0xf0]  ;;  %v2397_v25 = vor.u32 %v3066_v17, %v2394_v18  ;;  %v2178_v26 = vld [vmem:[#allocation7 + $0x48] sm:$0xf0] }
  0x3a   :  { %858 = vmatpush.bf16.msrb.mxu0 %v2325_v20  ;;  %233 = vmatmul.bf16.vlgmr.msra.gmra.mxu1 %v109_v29  ;;  %v2205_v20 = vor.u32 %v3018_v7, %v2202_v10  ;;  %v2448_v27 = vld [vmem:[#allocation7 + $0x248] sm:$0xf]  ;;  %v3082_v28 = vld [vmem:[#allocation7 + $0x25c] sm:$0xf0]  ;;  %v3060_v29 = vld [vmem:[#allocation7 + $0x1b4] sm:$0xf] }
  0x3b   :  { %871 = vmatpush.bf16.msrb.mxu1 %v2517_v23  ;;  %v2256_v23 = vld [vmem:[#allocation7 + $0xc8] sm:$0xf]  ;;  %v2370_v30 = vld [vmem:[#allocation7 + $0x1c8] sm:$0xf0]  ;;  %v3006_v31 = vld [vmem:[#allocation7 + $0x4] sm:$0xf]  ;;  %v2449_v35 = vor.u32 %v3082_v28, %v2448_v27 }
  0x3c   :  { %839 = vmatpush.bf16.msra.mxu2 %v2153_v57  ;;  %v2257_v32 = vor.u32 %v3034_v24, %v2256_v23  ;;  %v2154_v34 = vld [vmem:[#allocation7 + $0x18] sm:$0xf0]  ;;  %v3028_v37 = vld [vmem:[#allocation7 + $0xac] sm:$0xf0]  ;;  %v2373_v38 = vor.u32 %v3060_v29, %v2370_v30  ;;  %v3054_v39 = vld [vmem:[#allocation7 + $0x184] sm:$0xf] }
  0x3d   :  { %852 = vmatpush.bf16.msra.mxu3 %v2345_v58  ;;  %v2424_v40 = vld [vmem:[#allocation7 + $0x218] sm:$0xf]  ;;  %v3076_v41 = vld [vmem:[#allocation7 + $0x22c] sm:$0xf0]  ;;  %v2346_v42 = vld [vmem:[#allocation7 + $0x198] sm:$0xf0]  ;;  %v2157_v48 = vor.u32 %v3006_v31, %v2154_v34 }
  0x3e   :  { %859 = vmatpush.bf16.msrb.mxu0 %v2301_v33  ;;  %v2181_v33 = vor.u32 %v3012_v21, %v2178_v26  ;;  %v3049_v43 = vld [vmem:[#allocation7 + $0x15c] sm:$0xf]  ;;  %v2330_v44 = vld [vmem:[#allocation7 + $0x170] sm:$0xf0]  ;;  %v2425_v49 = vor.u32 %v3076_v41, %v2424_v40  ;;  %v2208_v50 = vld [vmem:[#allocation7 + $0x68] sm:$0xf]  ;;  %v2349_v52 = vor.u32 %v3054_v39, %v2346_v42 }
  0x3f   :  { %872 = vmatpush.bf16.msrb.mxu1 %v2493_v36  ;;  %v2232_v36 = vld [vmem:[#allocation7 + $0x98] sm:$0xf]  ;;  %v3097_v45 = vld [vmem:[#allocation7 + $0x2dc] sm:$0xf]  ;;  %v2522_v46 = vld [vmem:[#allocation7 + $0x2f0] sm:$0xf0]  ;;  %v2333_v53 = vor.u32 %v3049_v43, %v2330_v44 }
  0x40   :  { %884 = vmatpush.bf16.msrb.mxu2 %v2329_v59  ;;  %v2400_v54 = vld [vmem:[#allocation7 + $0x1e8] sm:$0xf]  ;;  %v3070_v55 = vld [vmem:[#allocation7 + $0x1fc] sm:$0xf0]  ;;  %v2525_v56 = vor.u32 %v3097_v45, %v2522_v46  ;;  %v3043_v57 = vld [vmem:[#allocation7 + $0x12c] sm:$0xf] }
  0x41   :  { %897 = vmatpush.bf16.msrb.mxu3 %v2521_v62  ;;  %v2306_v58 = vld [vmem:[#allocation7 + $0x140] sm:$0xf0]  ;;  %v3091_v59 = vld [vmem:[#allocation7 + $0x2ac] sm:$0xf]  ;;  %v2401_v62 = vor.u32 %v3070_v55, %v2400_v54  ;;  %v2282_v2 = vld [vmem:[#allocation7 + $0x110] sm:$0xf0] }
  0x42   :  { %860 = vmatpush.bf16.msrb.mxu0 %v2277_v47  ;;  %v2233_v47 = vor.u32 %v3028_v37, %v2232_v36  ;;  %v2309_v63 = vor.u32 %v3043_v57, %v2306_v58  ;;  %v3085_v3 = vld [vmem:[#allocation7 + $0x27c] sm:$0xf]  ;;  %v2474_v4 = vld [vmem:[#allocation7 + $0x290] sm:$0xf0]  ;;  %v3031_v7 = vld [vmem:[#allocation7 + $0xcc] sm:$0xf] }
  0x43   :  { %873 = vmatpush.bf16.msrb.mxu1 %v2469_v51  ;;  %v3022_v51 = vld [vmem:[#allocation7 + $0x7c] sm:$0xf0]  ;;  %v2477_v6 = vor.u32 %v3085_v3, %v2474_v4  ;;  %v2450_v10 = vld [vmem:[#allocation7 + $0x260] sm:$0xf0]  ;;  %v3025_v13 = vld [vmem:[#allocation7 + $0x9c] sm:$0xf] }
  0x44   :  { %885 = vmatpush.bf16.msrb.mxu2 %v2305_v8  ;;  %v2209_v61 = vor.u32 %v3022_v51, %v2208_v50  ;;  %v2258_v8 = vld [vmem:[#allocation7 + $0xe0] sm:$0xf0]  ;;  %v3073_v15 = vld [vmem:[#allocation7 + $0x21c] sm:$0xf]  ;;  %v2426_v16 = vld [vmem:[#allocation7 + $0x230] sm:$0xf0] }
  0x45   :  { %898 = vmatpush.bf16.msrb.mxu3 %v2497_v11  ;;  %v2261_v11 = vor.u32 %v3031_v7, %v2258_v8  ;;  %v2429_v18 = vor.u32 %v3073_v15, %v2426_v16  ;;  %v3067_v21 = vld [vmem:[#allocation7 + $0x1ec] sm:$0xf]  ;;  %v3016_v26 = vld [vmem:[#allocation7 + $0x4c] sm:$0xf0]  ;;  %v2376_v27 = vld [vmem:[#allocation7 + $0x1b8] sm:$0xf] }
  0x46   :  { %861 = vmatpush.bf16.msrb.mxu0 %v2253_v60  ;;  %v2498_v60 = vld [vmem:[#allocation7 + $0x2c0] sm:$0xf0]  ;;  %v3064_v29 = vld [vmem:[#allocation7 + $0x1cc] sm:$0xf0]  ;;  %v3013_v30 = vld [vmem:[#allocation7 + $0x3c] sm:$0xf] }
  0x47   :  { %874 = vmatpush.bf16.msrb.mxu1 %v2445_v1  ;;  %v2501_v0 = vor.u32 %v3091_v59, %v2498_v60  ;;  %v3037_v1 = vld [vmem:[#allocation7 + $0xfc] sm:$0xf]  ;;  %v2186_v31 = vld [vmem:[#allocation7 + $0x50] sm:$0xf0]  ;;  %v2160_v37 = vld [vmem:[#allocation7 + $0x8] sm:$0xf] }
  0x48   :  { %886 = vmatpush.bf16.msrb.mxu2 %v2281_v19  ;;  %v2285_v5 = vor.u32 %v3037_v1, %v2282_v2  ;;  %v3019_v19 = vld [vmem:[#allocation7 + $0x6c] sm:$0xf]  ;;  %v3061_v34 = vld [vmem:[#allocation7 + $0x1bc] sm:$0xf]  ;;  %v2352_v39 = vld [vmem:[#allocation7 + $0x188] sm:$0xf] }
  0x49   :  { %899 = vmatpush.bf16.msrb.mxu3 %v2473_v22  ;;  %v2402_v22 = vld [vmem:[#allocation7 + $0x200] sm:$0xf0]  ;;  %v3058_v41 = vld [vmem:[#allocation7 + $0x19c] sm:$0xf0]  ;;  %v3007_v42 = vld [vmem:[#allocation7 + $0xc] sm:$0xf] }
  0x4a   :  { %862 = vmatpush.bf16.msrb.mxu0 %v2229_v9  ;;  %v3079_v9 = vld [vmem:[#allocation7 + $0x24c] sm:$0xf]  ;;  %v2405_v24 = vor.u32 %v3067_v21, %v2402_v22  ;;  %v2162_v43 = vld [vmem:[#allocation7 + $0x20] sm:$0xf0]  ;;  %v2353_v44 = vor.u32 %v3058_v41, %v2352_v39  ;;  %v2336_v55 = vld [vmem:[#allocation7 + $0x160] sm:$0xf] }
  0x4b   :  { %875 = vmatpush.bf16.msrb.mxu1 %v2421_v14  ;;  %v2453_v12 = vor.u32 %v3079_v9, %v2450_v10  ;;  %v2234_v14 = vld [vmem:[#allocation7 + $0xb0] sm:$0xf0]  ;;  %v2165_v45 = vor.u32 %v3007_v42, %v2162_v43  ;;  %v3055_v46 = vld [vmem:[#allocation7 + $0x18c] sm:$0xf]  ;;  %v2528_v57 = vld [vmem:[#allocation7 + $0x2e0] sm:$0xf] }
  0x4c   :  { %887 = vmatpush.bf16.msrb.mxu2 %v2257_v32  ;;  %v2237_v17 = vor.u32 %v3025_v13, %v2234_v14  ;;  %v2377_v32 = vor.u32 %v3064_v29, %v2376_v27  ;;  %v3101_v59 = vld [vmem:[#allocation7 + $0x2f4] sm:$0xf0]  ;;  %v3050_v60 = vld [vmem:[#allocation7 + $0x164] sm:$0xf]  ;;  %v2504_v10 = vld [vmem:[#allocation7 + $0x2b0] sm:$0xf] }
  0x4d   :  { %900 = vmatpush.bf16.msrb.mxu3 %v2449_v35  ;;  %v2378_v35 = vld [vmem:[#allocation7 + $0x1d0] sm:$0xf0]  ;;  %v2529_v4 = vor.u32 %v3101_v59, %v2528_v57  ;;  %v2314_v13 = vld [vmem:[#allocation7 + $0x148] sm:$0xf0]  ;;  %v3041_v21 = vld [vmem:[#allocation7 + $0x114] sm:$0xf0] }
  0x4e   :  { %863 = vmatpush.bf16.msrb.mxu0 %v2205_v20  ;;  %v2210_v20 = vld [vmem:[#allocation7 + $0x80] sm:$0xf0]  ;;  %v2381_v36 = vor.u32 %v3061_v34, %v2378_v35  ;;  %v3092_v14 = vld [vmem:[#allocation7 + $0x2b4] sm:$0xf]  ;;  %v2506_v15 = vld [vmem:[#allocation7 + $0x2c8] sm:$0xf0] }
  0x4f   :  { %876 = vmatpush.bf16.msrb.mxu1 %v2397_v25  ;;  %v2213_v23 = vor.u32 %v3019_v19, %v2210_v20  ;;  %v2184_v25 = vld [vmem:[#allocation7 + $0x38] sm:$0xf]  ;;  %v2288_v20 = vld [vmem:[#allocation7 + $0x100] sm:$0xf]  ;;  %v2290_v27 = vld [vmem:[#allocation7 + $0x118] sm:$0xf0] }
  0x50   :  { %888 = vmatpush.bf16.msrb.mxu2 %v2233_v47  ;;  %v2185_v28 = vor.u32 %v3016_v26, %v2184_v25  ;;  %v2354_v47 = vld [vmem:[#allocation7 + $0x1a0] sm:$0xf0]  ;;  %v3089_v25 = vld [vmem:[#allocation7 + $0x294] sm:$0xf0]  ;;  %v2482_v29 = vld [vmem:[#allocation7 + $0x298] sm:$0xf0] }
  0x51   :  { %901 = vmatpush.bf16.msrb.mxu3 %v2425_v49  ;;  %v126_v49 = vld [vmem:[#allocation5] sm:$0x3]  ;;  %v3038_v26 = vld [vmem:[#allocation7 + $0x104] sm:$0xf]  ;;  %v2266_v39 = vld [vmem:[#allocation7 + $0xe8] sm:$0xf0] }
  0x52   :  { %864 = vmatpush.bf16.msrb.mxu0 %v2181_v33  ;;  %v2189_v33 = vor.u32 %v3013_v30, %v2186_v31  ;;  %v128_v50 = vperm.slane %v126_v49, 0  ;;  %v129_v51 = vperm.slane %v126_v49, 1  ;;  %v2289_v30 = vor.u32 %v3041_v21, %v2288_v20  ;;  %v2458_v41 = vld [vmem:[#allocation7 + $0x268] sm:$0xf0]  ;;  %v3077_v49 = vld [vmem:[#allocation7 + $0x234] sm:$0xf0] }
  0x53   :  { %877 = vmatpush.bf16.msrb.mxu1 %v2373_v38  ;;  %v3010_v38 = vld [vmem:[#allocation7 + $0x1c] sm:$0xf0]  ;;  %v2293_v34 = vor.u32 %v3038_v26, %v2290_v27  ;;  %v3023_v57 = vld [vmem:[#allocation7 + $0x84] sm:$0xf0]  ;;  %v3056_v26 = vld [vmem:[#allocation7 + $0x194] sm:$0xf] }
  0x54   :  { %889 = vmatpush.bf16.msrb.mxu2 %v2209_v61  ;;  %v2161_v40 = vor.u32 %v3010_v38, %v2160_v37  ;;  %v2338_v61 = vld [vmem:[#allocation7 + $0x178] sm:$0xf0]  ;;  %v3083_v37 = vld [vmem:[#allocation7 + $0x264] sm:$0xf0]  ;;  %v3032_v38 = vld [vmem:[#allocation7 + $0xd4] sm:$0xf] }
  0x55   :  { %902 = vmatpush.bf16.msrb.mxu3 %v2401_v62  ;;  %v2341_v8 = vor.u32 %v3050_v60, %v2338_v61  ;;  %v2408_v60 = vld [vmem:[#allocation7 + $0x1f0] sm:$0xf]  ;;  %v3071_v61 = vld [vmem:[#allocation7 + $0x204] sm:$0xf0]  ;;  %v2362_v27 = vld [vmem:[#allocation7 + $0x1a8] sm:$0xf0] }
  0x56   :  { %865 = vmatpush.bf16.msrb.mxu0 %v2157_v48  ;;  %v2357_v48 = vor.u32 %v3055_v46, %v2354_v47  ;;  %v2269_v46 = vor.u32 %v3032_v38, %v2266_v39  ;;  %v2876_v38 = vld [vmem:[#allocation8 + $0x2a0] sm:$0xf]  ;;  %v3189_v39 = vld [vmem:[#allocation8 + $0x2b4] sm:$0xf0]  ;;  %s3440_s19 = smov [#allocation11]   ;;  %s2074_s22 = sshll.u32 %s3638_s9, 4  ;;  %s2075_s22 = int_to_ptr.hbm [resolvable:$true] %s2074_s22 }
  0x57   :  { %878 = vmatpush.bf16.msrb.mxu1 %v2349_v52  ;;  %s2072_s20 = sshll.u32 %s3440_s19, 4  ;;  %s2073_s20 = int_to_ptr.vmem [resolvable:$true] %s2072_s20 }
  0x58   :  { %890 = vmatpush.bf16.msrb.mxu2 %v2185_v28  ;;  %v3086_v28 = vld [vmem:[#allocation7 + $0x284] sm:$0xf] }
  0x59   :  { %903 = vmatpush.bf16.msrb.mxu3 %v2377_v32  ;;  %v2264_v32 = vld [vmem:[#allocation7 + $0xd0] sm:$0xf]  ;;  %v2485_v35 = vor.u32 %v3086_v28, %v2482_v29 }
  0x5a   :  { %910 = vmatpush.bf16.msra.mxu0 %v2333_v53 }
  0x5b   :  { %923 = vmatpush.bf16.msra.mxu1 %v2525_v56  ;;  %v3053_v56 = vld [vmem:[#allocation7 + $0x174] sm:$0xf0] }
  0x5c   :  { %891 = vmatpush.bf16.msrb.mxu2 %v2161_v40  ;;  %v2337_v3 = vor.u32 %v3053_v56, %v2336_v55  ;;  %v3080_v40 = vld [vmem:[#allocation7 + $0x254] sm:$0xf]  ;;  %v2216_v56 = vld [vmem:[#allocation7 + $0x70] sm:$0xf] }
  0x5d   :  { %904 = vmatpush.bf16.msrb.mxu3 %v2353_v44  ;;  %v2240_v44 = vld [vmem:[#allocation7 + $0xa0] sm:$0xf]  ;;  %v2461_v47 = vor.u32 %v3080_v40, %v2458_v41  ;;  %v3186_v40 = vld [vmem:[#allocation8 + $0x2a4] sm:$0xf]  ;;  %v2877_v41 = vor.u32 %v3189_v39, %v2876_v38  ;;  %v2614_v38 = vld [vmem:[#allocation8 + $0xa8] sm:$0xf0] }
  0x5e   :  { %911 = vmatpush.bf16.msra.mxu0 %v2309_v63  ;;  %v3098_v63 = vld [vmem:[#allocation7 + $0x2e4] sm:$0xf] }
  0x5f   :  { %924 = vmatpush.bf16.msra.mxu1 %v2501_v0  ;;  %v2530_v0 = vld [vmem:[#allocation7 + $0x2f8] sm:$0xf0] }
  0x60   :  { %v2533_v9 = vor.u32 %v3098_v63, %v2530_v0  ;;  %v2218_v63 = vld [vmem:[#allocation7 + $0x88] sm:$0xf0]  ;;  %v3068_v0 = vld [vmem:[#allocation7 + $0x1f4] sm:$0xf] }
  0x62   :  { %912 = vmatpush.bf16.msra.mxu0 %v2285_v5  ;;  %v2312_v5 = vld [vmem:[#allocation7 + $0x130] sm:$0xf] }
  0x63   :  { %925 = vmatpush.bf16.msra.mxu1 %v2477_v6  ;;  %v3047_v6 = vld [vmem:[#allocation7 + $0x144] sm:$0xf0] }
  0x66   :  { %913 = vmatpush.bf16.msra.mxu0 %v2261_v11  ;;  %v3095_v11 = vld [vmem:[#allocation7 + $0x2c4] sm:$0xf0] }
  0x67   :  { %926 = vmatpush.bf16.msra.mxu1 %v2453_v12  ;;  %v3044_v12 = vld [vmem:[#allocation7 + $0x134] sm:$0xf]  ;;  %v2505_v19 = vor.u32 %v3095_v11, %v2504_v10  ;;  %v2384_v10 = vld [vmem:[#allocation7 + $0x1c0] sm:$0xf]  ;;  %v3065_v11 = vld [vmem:[#allocation7 + $0x1d4] sm:$0xf0] }
  0x68   :  { %v2317_v22 = vor.u32 %v3044_v12, %v2314_v13  ;;  %v3014_v12 = vld [vmem:[#allocation7 + $0x44] sm:$0xf]  ;;  %v2194_v13 = vld [vmem:[#allocation7 + $0x58] sm:$0xf0] }
  0x69   :  { %v2197_v20 = vor.u32 %v3014_v12, %v2194_v13  ;;  %v3171_v12 = vld [vmem:[#allocation8 + $0x224] sm:$0xf0]  ;;  %v3168_v13 = vld [vmem:[#allocation8 + $0x214] sm:$0xf] }
  0x6a   :  { %914 = vmatpush.bf16.msra.mxu0 %v2237_v17 }
  0x6b   :  { %927 = vmatpush.bf16.msra.mxu1 %v2429_v18  ;;  %v2313_v18 = vor.u32 %v3047_v6, %v2312_v5  ;;  %v2192_v5 = vld [vmem:[#allocation7 + $0x40] sm:$0xf]  ;;  %v3017_v6 = vld [vmem:[#allocation7 + $0x54] sm:$0xf0] }
  0x6e   :  { %915 = vmatpush.bf16.msra.mxu0 %v2213_v23  ;;  %v2509_v23 = vor.u32 %v3092_v14, %v2506_v15  ;;  %v3062_v14 = vld [vmem:[#allocation7 + $0x1c4] sm:$0xf]  ;;  %v2386_v15 = vld [vmem:[#allocation7 + $0x1d8] sm:$0xf0] }
  0x6f   :  { %928 = vmatpush.bf16.msra.mxu1 %v2405_v24  ;;  %v2480_v24 = vld [vmem:[#allocation7 + $0x280] sm:$0xf]  ;;  %v2389_v21 = vor.u32 %v3062_v14, %v2386_v15 }
  0x70   :  { %v2481_v31 = vor.u32 %v3089_v25, %v2480_v24  ;;  %v3008_v24 = vld [vmem:[#allocation7 + $0x14] sm:$0xf]  ;;  %v2170_v25 = vld [vmem:[#allocation7 + $0x28] sm:$0xf0] }
  0x72   :  { %916 = vmatpush.bf16.msra.mxu0 %v2189_v33  ;;  %v3035_v33 = vld [vmem:[#allocation7 + $0xe4] sm:$0xf0] }
  0x73   :  { %929 = vmatpush.bf16.msra.mxu1 %v2381_v36  ;;  %v2456_v36 = vld [vmem:[#allocation7 + $0x250] sm:$0xf]  ;;  %v2265_v42 = vor.u32 %v3035_v33, %v2264_v32  ;;  %v3195_v33 = vld [vmem:[#allocation8 + $0x2e4] sm:$0xf0] }
  0x74   :  { %v2457_v43 = vor.u32 %v3083_v37, %v2456_v36  ;;  %v2900_v32 = vld [vmem:[#allocation8 + $0x2d0] sm:$0xf]  ;;  %v2902_v36 = vld [vmem:[#allocation8 + $0x2e8] sm:$0xf0] }
  0x76   :  { %917 = vmatpush.bf16.msra.mxu0 %v2165_v45  ;;  %v3029_v45 = vld [vmem:[#allocation7 + $0xb4] sm:$0xf0] }
  0x77   :  { %930 = vmatpush.bf16.msra.mxu1 %v2357_v48  ;;  %v2432_v48 = vld [vmem:[#allocation7 + $0x220] sm:$0xf] }
  0x78   :  { %v2433_v55 = vor.u32 %v3077_v49, %v2432_v48  ;;  %v2852_v48 = vld [vmem:[#allocation8 + $0x270] sm:$0xf]  ;;  %v3183_v49 = vld [vmem:[#allocation8 + $0x284] sm:$0xf0] }
  0xb6   :  { %v221_v52 = vpop.f32.mrf.mxu0 }
  0xb7   :  { %v222_v53 = vadd.f32 %v221_v52, %v128_v50  ;;  %v234_v54 = vpop.f32.mrf.mxu1  ;;  %v3026_v50 = vld [vmem:[#allocation7 + $0xa4] sm:$0xf] }
  0xb8   :  { %v235_v58 = vadd.f32 %v234_v54, %v129_v51  ;;  %v2242_v51 = vld [vmem:[#allocation7 + $0xb8] sm:$0xf0]  ;;  %v3074_v52 = vld [vmem:[#allocation7 + $0x224] sm:$0xf]  ;;  %v2241_v54 = vor.u32 %v3029_v45, %v2240_v44  ;;  %v2708_v44 = vld [vmem:[#allocation8 + $0x150] sm:$0xf] }
  0xb9   :  { %v238_v62 = vmax.f32 %v222_v53, 0.0  ;;  %v2434_v53 = vld [vmem:[#allocation7 + $0x238] sm:$0xf0]  ;;  %v3147_v45 = vld [vmem:[#allocation8 + $0x164] sm:$0xf0] }
  0xba   :  { %v239_v1 = vmax.f32 %v235_v58, 0.0  ;;  %v2245_v58 = vor.u32 %v3026_v50, %v2242_v51  ;;  %v2437_v59 = vor.u32 %v3074_v52, %v2434_v53  ;;  %v3180_v50 = vld [vmem:[#allocation8 + $0x274] sm:$0xf]  ;;  %v2853_v51 = vor.u32 %v3183_v49, %v2852_v48  ;;  %v2854_v52 = vld [vmem:[#allocation8 + $0x288] sm:$0xf0] }
  0xbb   :  { %v3509_v2 = vpack.c.bf16 %v238_v62, %v238_v62  ;;  %v3020_v62 = vld [vmem:[#allocation7 + $0x74] sm:$0xf]  ;;  %v2857_v53 = vor.u32 %v3180_v50, %v2854_v52  ;;  %v3114_v48 = vld [vmem:[#allocation8 + $0x64] sm:$0xf]  ;;  %v2590_v52 = vld [vmem:[#allocation8 + $0x78] sm:$0xf0] }
  0xbc   :  { %v3511_v7 = vpack.c.bf16 %v239_v1, %v239_v1  ;;  %v2410_v1 = vld [vmem:[#allocation7 + $0x208] sm:$0xf0] }
  0xbd   :  { %840 = vmatmul.bf16.vlgmr.msra.gmra.mxu2 %v3509_v2  ;;  %866 = vmatmul.bf16.vlgmr.msrb.gmra.mxu0 %v3509_v2 }
  0xbe   :  { %853 = vmatmul.bf16.vlgmr.msra.gmra.mxu3 %v3511_v7  ;;  %879 = vmatmul.bf16.vlgmr.msrb.gmra.mxu1 %v3511_v7  ;;  %v223_v16 = vpop.f32.mrf.mxu0 }
  0xbf   :  { %v236_v17 = vpop.f32.mrf.mxu1  ;;  %936 = vmatpush.bf16.msra.mxu2 %v2337_v3  ;;  %949 = vmatpush.bf16.msra.mxu3 %v2529_v4  ;;  %v2217_v3 = vor.u32 %v3023_v57, %v2216_v56  ;;  %v2409_v4 = vor.u32 %v3071_v61, %v2408_v60  ;;  %v2193_v16 = vor.u32 %v3017_v6, %v2192_v5  ;;  %v3138_v56 = vld [vmem:[#allocation8 + $0x124] sm:$0xf]  ;;  %v2828_v60 = vld [vmem:[#allocation8 + $0x240] sm:$0xf]  ;;  %v3177_v61 = vld [vmem:[#allocation8 + $0x254] sm:$0xf0] }
  0xc0   :  { %962 = vmatpush.bf16.msrb.mxu0 %v2341_v8  ;;  %975 = vmatpush.bf16.msrb.mxu1 %v2533_v9  ;;  %v2221_v8 = vor.u32 %v3020_v62, %v2218_v63  ;;  %v2413_v9 = vor.u32 %v3068_v0, %v2410_v1  ;;  %v2385_v17 = vor.u32 %v3065_v11, %v2384_v10  ;;  %v3528_v62 = vld [vmem:[%s3633_s4] sm:$0x3f]  ;;  %v3174_v0 = vld [vmem:[#allocation8 + $0x244] sm:$0xf]  ;;  %v3135_v5 = vld [vmem:[#allocation8 + $0x104] sm:$0xf0] }
  0xc1   :  { %v2829_v63 = vor.u32 %v3177_v61, %v2828_v60  ;;  %v2830_v1 = vld [vmem:[#allocation8 + $0x258] sm:$0xf0]  ;;  %v3132_v6 = vld [vmem:[#allocation8 + $0xf4] sm:$0xf]  ;;  %v2804_v11 = vld [vmem:[#allocation8 + $0x210] sm:$0xf] }
  0xc2   :  { %v341_v14 = vperm.slane %v3528_v62, 1  ;;  %v2805_v15 = vor.u32 %v3171_v12, %v2804_v11  ;;  %v3150_v61 = vld [vmem:[#allocation8 + $0x184] sm:$0xf] }
  0xc3   :  { %937 = vmatpush.bf16.msra.mxu2 %v2313_v18  ;;  %950 = vmatpush.bf16.msra.mxu3 %v2505_v19  ;;  %v2168_v18 = vld [vmem:[#allocation7 + $0x10] sm:$0xf]  ;;  %v3011_v19 = vld [vmem:[#allocation7 + $0x24] sm:$0xf0] }
  0xc4   :  { %963 = vmatpush.bf16.msrb.mxu0 %v2317_v22  ;;  %976 = vmatpush.bf16.msrb.mxu1 %v2509_v23  ;;  %v2360_v22 = vld [vmem:[#allocation7 + $0x190] sm:$0xf]  ;;  %v3059_v23 = vld [vmem:[#allocation7 + $0x1a4] sm:$0xf0]  ;;  %v2169_v28 = vor.u32 %v3011_v19, %v2168_v18  ;;  %v2636_v18 = vld [vmem:[#allocation8 + $0xc0] sm:$0xf] }
  0xc5   :  { %v2361_v29 = vor.u32 %v3059_v23, %v2360_v22  ;;  %v3129_v19 = vld [vmem:[#allocation8 + $0xd4] sm:$0xf0]  ;;  %v2638_v22 = vld [vmem:[#allocation8 + $0xd8] sm:$0xf0] }
  0xc7   :  { %938 = vmatpush.bf16.msra.mxu2 %v2289_v30  ;;  %951 = vmatpush.bf16.msra.mxu3 %v2481_v31  ;;  %v2173_v30 = vor.u32 %v3008_v24, %v2170_v25  ;;  %v2365_v31 = vor.u32 %v3056_v26, %v2362_v27  ;;  %v2780_v25 = vld [vmem:[#allocation8 + $0x1e0] sm:$0xf]  ;;  %v3165_v26 = vld [vmem:[#allocation8 + $0x1f4] sm:$0xf0]  ;;  %v3162_v27 = vld [vmem:[#allocation8 + $0x1e4] sm:$0xf] }
  0xc8   :  { %964 = vmatpush.bf16.msrb.mxu0 %v2293_v34  ;;  %977 = vmatpush.bf16.msrb.mxu1 %v2485_v35  ;;  %v3192_v34 = vld [vmem:[#allocation8 + $0x2d4] sm:$0xf]  ;;  %v2901_v35 = vor.u32 %v3195_v33, %v2900_v32  ;;  %v2612_v33 = vld [vmem:[#allocation8 + $0x90] sm:$0xf] }
  0xc9   :  { %v2905_v37 = vor.u32 %v3192_v34, %v2902_v36  ;;  %v3123_v34 = vld [vmem:[#allocation8 + $0xa4] sm:$0xf0]  ;;  %v340_v36 = vperm.slane %v3528_v62, 0 }
  0xcb   :  { %939 = vmatpush.bf16.msra.mxu2 %v2265_v42  ;;  %952 = vmatpush.bf16.msra.mxu3 %v2457_v43  ;;  %v2878_v42 = vld [vmem:[#allocation8 + $0x2b8] sm:$0xf0] }
  0xcc   :  { %965 = vmatpush.bf16.msrb.mxu0 %v2269_v46  ;;  %978 = vmatpush.bf16.msrb.mxu1 %v2461_v47  ;;  %v2881_v43 = vor.u32 %v3186_v40, %v2878_v42  ;;  %v3144_v46 = vld [vmem:[#allocation8 + $0x154] sm:$0xf]  ;;  %v3159_v42 = vld [vmem:[#allocation8 + $0x1c4] sm:$0xf0] }
  0xcd   :  { %892 = vmatmul.bf16.vlgmr.msrb.gmra.mxu2 %v3509_v2  ;;  %918 = vmatmul.bf16.vlgmr.msra.gmra.mxu0 %v3509_v2 }
  0xce   :  { %905 = vmatmul.bf16.vlgmr.msrb.gmra.mxu3 %v3511_v7  ;;  %931 = vmatmul.bf16.vlgmr.msra.gmra.mxu1 %v3511_v7 }
  0xcf   :  { %940 = vmatpush.bf16.msra.mxu2 %v2241_v54  ;;  %953 = vmatpush.bf16.msra.mxu3 %v2433_v55  ;;  %v2684_v54 = vld [vmem:[#allocation8 + $0x120] sm:$0xf]  ;;  %v3141_v55 = vld [vmem:[#allocation8 + $0x134] sm:$0xf0] }
  0xd0   :  { %966 = vmatpush.bf16.msrb.mxu0 %v2245_v58  ;;  %979 = vmatpush.bf16.msrb.mxu1 %v2437_v59  ;;  %v2685_v57 = vor.u32 %v3141_v55, %v2684_v54  ;;  %v2686_v58 = vld [vmem:[#allocation8 + $0x138] sm:$0xf0]  ;;  %v2593_v55 = vor.u32 %v3114_v48, %v2590_v52  ;;  %v2836_v48 = vld [vmem:[#allocation8 + $0x248] sm:$0xf] }
  0xd1   :  { %v2689_v59 = vor.u32 %v3138_v56, %v2686_v58  ;;  %v2732_v56 = vld [vmem:[#allocation8 + $0x180] sm:$0xf] }
  0xd3   :  { %941 = vmatpush.bf16.msra.mxu2 %v2217_v3  ;;  %954 = vmatpush.bf16.msra.mxu3 %v2409_v4  ;;  %v2833_v3 = vor.u32 %v3174_v0, %v2830_v1  ;;  %v2660_v4 = vld [vmem:[#allocation8 + $0xf0] sm:$0xf]  ;;  %v2908_v0 = vld [vmem:[#allocation8 + $0x2d8] sm:$0xf] }
  0xd4   :  { %967 = vmatpush.bf16.msrb.mxu0 %v2221_v8  ;;  %980 = vmatpush.bf16.msrb.mxu1 %v2413_v9  ;;  %v2661_v8 = vor.u32 %v3135_v5, %v2660_v4  ;;  %v2662_v9 = vld [vmem:[#allocation8 + $0x108] sm:$0xf0]  ;;  %v3193_v4 = vld [vmem:[#allocation8 + $0x2dc] sm:$0xf]  ;;  %v2910_v5 = vld [vmem:[#allocation8 + $0x2f0] sm:$0xf0] }
  0xd5   :  { %v2665_v10 = vor.u32 %v3132_v6, %v2662_v9  ;;  %v2564_v9 = vld [vmem:[#allocation8 + $0x30] sm:$0xf] }
  0xd7   :  { %942 = vmatpush.bf16.msra.mxu2 %v2193_v16  ;;  %955 = vmatpush.bf16.msra.mxu3 %v2385_v17  ;;  %v2806_v16 = vld [vmem:[#allocation8 + $0x228] sm:$0xf0] }
  0xd8   :  { %968 = vmatpush.bf16.msrb.mxu0 %v2197_v20  ;;  %981 = vmatpush.bf16.msrb.mxu1 %v2389_v21  ;;  %v2809_v17 = vor.u32 %v3168_v13, %v2806_v16  ;;  %v3126_v20 = vld [vmem:[#allocation8 + $0xc4] sm:$0xf]  ;;  %v2637_v21 = vor.u32 %v3129_v19, %v2636_v18  ;;  %v3108_v13 = vld [vmem:[#allocation8 + $0x34] sm:$0xf]  ;;  %v2884_v16 = vld [vmem:[#allocation8 + $0x2a8] sm:$0xf] }
  0xd9   :  { %v2641_v23 = vor.u32 %v3126_v20, %v2638_v22  ;;  %v3187_v18 = vld [vmem:[#allocation8 + $0x2ac] sm:$0xf]  ;;  %v2540_v22 = vld [vmem:[#allocation8] sm:$0xf] }
  0xdb   :  { %943 = vmatpush.bf16.msra.mxu2 %v2169_v28  ;;  %956 = vmatpush.bf16.msra.mxu3 %v2361_v29 }
  0xdc   :  { %969 = vmatpush.bf16.msrb.mxu0 %v2173_v30  ;;  %982 = vmatpush.bf16.msrb.mxu1 %v2365_v31  ;;  %v2781_v30 = vor.u32 %v3165_v26, %v2780_v25  ;;  %v2782_v31 = vld [vmem:[#allocation8 + $0x1f8] sm:$0xf0]  ;;  %v3105_v25 = vld [vmem:[#allocation8 + $0x14] sm:$0xf0]  ;;  %v3102_v26 = vld [vmem:[#allocation8 + $0x4] sm:$0xf] }
  0xdd   :  { %v2785_v32 = vor.u32 %v3162_v27, %v2782_v31  ;;  %v2542_v27 = vld [vmem:[#allocation8 + $0x18] sm:$0xf0]  ;;  %v2541_v31 = vor.u32 %v3105_v25, %v2540_v22 }
  0xde   :  { %944 = vmatmul.bf16.vlgmr.msra.gmra.mxu2 %v3509_v2  ;;  %957 = vmatmul.bf16.vlgmr.msra.gmra.mxu3 %v3511_v7 }
  0xdf   :  { %970 = vmatmul.bf16.vlgmr.msrb.gmra.mxu0 %v3509_v2  ;;  %983 = vmatmul.bf16.vlgmr.msrb.gmra.mxu1 %v3511_v7  ;;  %v2709_v2 = vor.u32 %v3147_v45, %v2708_v44  ;;  %v2710_v7 = vld [vmem:[#allocation8 + $0x168] sm:$0xf0] }
  0xe0   :  { %1677 = vmatpush.bf16.msrb.mxu3 %v2901_v35  ;;  %1703 = vmatpush.bf16.msra.mxu1 %v2905_v37  ;;  %v2713_v47 = vor.u32 %v3144_v46, %v2710_v7  ;;  %v3120_v35 = vld [vmem:[#allocation8 + $0x94] sm:$0xf]  ;;  %v2613_v37 = vor.u32 %v3123_v34, %v2612_v33  ;;  %v2758_v45 = vld [vmem:[#allocation8 + $0x1c8] sm:$0xf0]  ;;  %v2588_v7 = vld [vmem:[#allocation8 + $0x60] sm:$0xf] }
  0xe1   :  { %1664 = vmatpush.bf16.msrb.mxu2 %v2709_v2  ;;  %v2617_v40 = vor.u32 %v3120_v35, %v2614_v38  ;;  %v3148_v33 = vld [vmem:[#allocation8 + $0x16c] sm:$0xf0]  ;;  %v3145_v34 = vld [vmem:[#allocation8 + $0x15c] sm:$0xf]  ;;  %v2718_v35 = vld [vmem:[#allocation8 + $0x170] sm:$0xf0] }
  0xe2   :  { %1690 = vmatpush.bf16.msra.mxu0 %v2713_v47  ;;  %v3117_v47 = vld [vmem:[#allocation8 + $0x74] sm:$0xf0] }
  0xe3   :  { %v2860_v38 = vld [vmem:[#allocation8 + $0x278] sm:$0xf] }
  0xe4   :  { %1678 = vmatpush.bf16.msrb.mxu3 %v2877_v41  ;;  %1704 = vmatpush.bf16.msra.mxu1 %v2881_v43  ;;  %v2756_v41 = vld [vmem:[#allocation8 + $0x1b0] sm:$0xf]  ;;  %v3156_v43 = vld [vmem:[#allocation8 + $0x1b4] sm:$0xf] }
  0xe5   :  { %1665 = vmatpush.bf16.msrb.mxu2 %v2685_v57  ;;  %v2757_v44 = vor.u32 %v3159_v42, %v2756_v41  ;;  %v2761_v46 = vor.u32 %v3156_v43, %v2758_v45  ;;  %v3153_v57 = vld [vmem:[#allocation8 + $0x194] sm:$0xf0]  ;;  %v3181_v42 = vld [vmem:[#allocation8 + $0x27c] sm:$0xf]  ;;  %v2862_v43 = vld [vmem:[#allocation8 + $0x290] sm:$0xf0] }
  0xe6   :  { %1691 = vmatpush.bf16.msra.mxu0 %v2689_v59  ;;  %v2733_v60 = vor.u32 %v3153_v57, %v2732_v56  ;;  %v2865_v45 = vor.u32 %v3181_v42, %v2862_v43  ;;  %v2838_v56 = vld [vmem:[#allocation8 + $0x260] sm:$0xf0]  ;;  %v2668_v57 = vld [vmem:[#allocation8 + $0xf8] sm:$0xf]  ;;  %v2766_v43 = vld [vmem:[#allocation8 + $0x1d0] sm:$0xf0] }
  0xe8   :  { %1679 = vmatpush.bf16.msrb.mxu3 %v2853_v51  ;;  %1705 = vmatpush.bf16.msra.mxu1 %v2857_v53  ;;  %v2589_v51 = vor.u32 %v3117_v47, %v2588_v7  ;;  %v2694_v47 = vld [vmem:[#allocation8 + $0x140] sm:$0xf0] }
  0xe9   :  { %1666 = vmatpush.bf16.msrb.mxu2 %v2661_v8  ;;  %v2913_v8 = vor.u32 %v3193_v4, %v2910_v5 }
  0xea   :  { %1692 = vmatpush.bf16.msra.mxu0 %v2665_v10  ;;  %v3111_v10 = vld [vmem:[#allocation8 + $0x44] sm:$0xf0] }
  0xeb   :  { %v2565_v12 = vor.u32 %v3111_v10, %v2564_v9  ;;  %v3169_v10 = vld [vmem:[#allocation8 + $0x21c] sm:$0xf] }
  0xec   :  { %1680 = vmatpush.bf16.msrb.mxu3 %v2829_v63  ;;  %1706 = vmatpush.bf16.msra.mxu1 %v2833_v3  ;;  %v2734_v63 = vld [vmem:[#allocation8 + $0x198] sm:$0xf0]  ;;  %v3196_v3 = vld [vmem:[#allocation8 + $0x2ec] sm:$0xf0] }
  0xed   :  { %1667 = vmatpush.bf16.msrb.mxu2 %v2637_v21  ;;  %v2737_v1 = vor.u32 %v3150_v61, %v2734_v63  ;;  %v2909_v6 = vor.u32 %v3196_v3, %v2908_v0  ;;  %v2886_v21 = vld [vmem:[#allocation8 + $0x2c0] sm:$0xf0]  ;;  %v3133_v63 = vld [vmem:[#allocation8 + $0xfc] sm:$0xf]  ;;  %v2670_v0 = vld [vmem:[#allocation8 + $0x110] sm:$0xf0] }
  0xee   :  { %1693 = vmatpush.bf16.msra.mxu0 %v2641_v23  ;;  %v2673_v5 = vor.u32 %v3133_v63, %v2670_v0  ;;  %v2742_v0 = vld [vmem:[#allocation8 + $0x1a0] sm:$0xf0] }
  0xf0   :  { %1681 = vmatpush.bf16.msrb.mxu3 %v2805_v15  ;;  %1707 = vmatpush.bf16.msra.mxu1 %v2809_v17  ;;  %v3190_v17 = vld [vmem:[#allocation8 + $0x2bc] sm:$0xf0] }
  0xf1   :  { %1668 = vmatpush.bf16.msrb.mxu2 %v2613_v37  ;;  %v2885_v20 = vor.u32 %v3190_v17, %v2884_v16  ;;  %v2721_v37 = vor.u32 %v3145_v34, %v2718_v35  ;;  %v2646_v17 = vld [vmem:[#allocation8 + $0xe0] sm:$0xf0]  ;;  %v3121_v34 = vld [vmem:[#allocation8 + $0x9c] sm:$0xf]  ;;  %v2622_v35 = vld [vmem:[#allocation8 + $0xb0] sm:$0xf0] }
  0xf2   :  { %1694 = vmatpush.bf16.msra.mxu0 %v2617_v40 }
  0xf4   :  { %1682 = vmatpush.bf16.msrb.mxu3 %v2781_v30  ;;  %1708 = vmatpush.bf16.msra.mxu1 %v2785_v32  ;;  %v2545_v32 = vor.u32 %v3102_v26, %v2542_v27  ;;  %v345_v26 = vperm.slane %v3528_v62, 5 }
  0xf5   :  { %1669 = vmatpush.bf16.msrb.mxu2 %v2589_v51 }
  0xf6   :  { %1695 = vmatpush.bf16.msra.mxu0 %v2593_v55 }
  0xf8   :  { %1683 = vmatpush.bf16.msrb.mxu3 %v2757_v44  ;;  %1709 = vmatpush.bf16.msra.mxu1 %v2761_v46  ;;  %v2692_v44 = vld [vmem:[#allocation8 + $0x128] sm:$0xf]  ;;  %v3139_v46 = vld [vmem:[#allocation8 + $0x12c] sm:$0xf] }
  0xf9   :  { %1670 = vmatpush.bf16.msrb.mxu2 %v2565_v12  ;;  %v2697_v55 = vor.u32 %v3139_v46, %v2694_v47  ;;  %v3118_v47 = vld [vmem:[#allocation8 + $0x7c] sm:$0xf0] }
  0xfc   :  { %1684 = vmatpush.bf16.msrb.mxu3 %v2733_v60  ;;  %1710 = vmatpush.bf16.msra.mxu1 %v2737_v1 }
  0xfd   :  { %1671 = vmatpush.bf16.msrb.mxu2 %v2541_v31  ;;  %v3124_v31 = vld [vmem:[#allocation8 + $0xac] sm:$0xf0] }
 0x100   :  { %1729 = vmatpush.bf16.msra.mxu3 %v2909_v6  ;;  %1755 = vmatpush.bf16.msrb.mxu1 %v2913_v8  ;;  %v2812_v6 = vld [vmem:[#allocation8 + $0x218] sm:$0xf]  ;;  %v3172_v8 = vld [vmem:[#allocation8 + $0x22c] sm:$0xf0] }
 0x101   :  { %v2813_v9 = vor.u32 %v3172_v8, %v2812_v6 }
 0x104   :  { %1730 = vmatpush.bf16.msra.mxu3 %v2885_v20  ;;  %v3166_v20 = vld [vmem:[#allocation8 + $0x1fc] sm:$0xf0] }
 0x13a   :  { %v867_v24 = vpop.f32.mrf.mxu0 }
 0x13b   :  { %v868_v28 = vadd.f32 %v867_v24, %v341_v14  ;;  %v880_v29 = vpop.f32.mrf.mxu1  ;;  %v2566_v14 = vld [vmem:[#allocation8 + $0x48] sm:$0xf0]  ;;  %v2889_v24 = vor.u32 %v3187_v18, %v2886_v21 }
 0x13c   :  { %v2569_v15 = vor.u32 %v3108_v13, %v2566_v14  ;;  %v2644_v13 = vld [vmem:[#allocation8 + $0xc8] sm:$0xf]  ;;  %v3130_v14 = vld [vmem:[#allocation8 + $0xdc] sm:$0xf0]  ;;  %v3163_v21 = vld [vmem:[#allocation8 + $0x1ec] sm:$0xf] }
 0x13d   :  { %v881_v39 = vadd.f32 %v880_v29, %v868_v28  ;;  %v2716_v29 = vld [vmem:[#allocation8 + $0x158] sm:$0xf]  ;;  %1756 = vmatpush.bf16.msrb.mxu1 %v2889_v24  ;;  %v2645_v16 = vor.u32 %v3130_v14, %v2644_v13  ;;  %v2790_v24 = vld [vmem:[#allocation8 + $0x200] sm:$0xf0]  ;;  %v342_v14 = vperm.slane %v3528_v62, 2 }
 0x13e   :  { %1696 = vmatpush.bf16.msra.mxu0 %v2569_v15  ;;  %v3127_v15 = vld [vmem:[#allocation8 + $0xcc] sm:$0xf]  ;;  %v2793_v27 = vor.u32 %v3163_v21, %v2790_v24  ;;  %v3106_v24 = vld [vmem:[#allocation8 + $0x1c] sm:$0xf0] }
 0x13f   :  { %v2535_v53 = vmul.f32 -1.442695, %v881_v39  ;;  %v3184_v39 = vld [vmem:[#allocation8 + $0x28c] sm:$0xf0]  ;;  %v2649_v18 = vor.u32 %v3127_v15, %v2646_v17 }
 0x140   :  { %v841_v2 = vpop.f32.mrf.mxu2  ;;  %v2861_v41 = vor.u32 %v3184_v39, %v2860_v38  ;;  %v3160_v38 = vld [vmem:[#allocation8 + $0x1cc] sm:$0xf0]  ;;  %v3157_v39 = vld [vmem:[#allocation8 + $0x1bc] sm:$0xf] }
 0x141   :  { %v842_v49 = vadd.f32 %v841_v2, %v340_v36  ;;  %v854_v50 = vpop.f32.mrf.mxu3  ;;  %3227 = vpow2.f32 %v2535_v53  ;;  %v2717_v36 = vor.u32 %v3148_v33, %v2716_v29  ;;  %v3142_v2 = vld [vmem:[#allocation8 + $0x13c] sm:$0xf0]  ;;  %1757 = vmatpush.bf16.msrb.mxu1 %v2865_v45  ;;  %v3175_v53 = vld [vmem:[#allocation8 + $0x24c] sm:$0xf]  ;;  %v2620_v29 = vld [vmem:[#allocation8 + $0x98] sm:$0xf]  ;;  %v2769_v46 = vor.u32 %v3157_v39, %v2766_v43 }
 0x142   :  { %v869_v54 = vpop.f32.mrf.mxu0  ;;  %1697 = vmatpush.bf16.msra.mxu0 %v2545_v32  ;;  %1731 = vmatpush.bf16.msra.mxu3 %v2861_v41  ;;  %v2693_v7 = vor.u32 %v3142_v2, %v2692_v44  ;;  %v2841_v61 = vor.u32 %v3175_v53, %v2838_v56  ;;  %v2621_v33 = vor.u32 %v3124_v31, %v2620_v29 }
 0x143   :  { %v855_v58 = vadd.f32 %v854_v50, %v842_v49  ;;  %v882_v59 = vpop.f32.mrf.mxu1  ;;  %1716 = vmatpush.bf16.msra.mxu2 %v2717_v36  ;;  %v3178_v49 = vld [vmem:[#allocation8 + $0x25c] sm:$0xf0]  ;;  %v2625_v36 = vor.u32 %v3121_v34, %v2622_v35 }
 0x144   :  { %v2837_v60 = vor.u32 %v3178_v49, %v2836_v48  ;;  %v3115_v48 = vld [vmem:[#allocation8 + $0x6c] sm:$0xf]  ;;  %v343_v49 = vperm.slane %v3528_v62, 3 }
 0x145   :  { %v2534_v11 = vmul.f32 -1.442695, %v855_v58  ;;  %v3136_v58 = vld [vmem:[#allocation8 + $0x10c] sm:$0xf0]  ;;  %1758 = vmatpush.bf16.msrb.mxu1 %v2841_v61 }
 0x146   :  { %1742 = vmatpush.bf16.msrb.mxu0 %v2721_v37  ;;  %v2669_v4 = vor.u32 %v3136_v58, %v2668_v57  ;;  %1732 = vmatpush.bf16.msra.mxu3 %v2837_v60  ;;  %v2764_v37 = vld [vmem:[#allocation8 + $0x1b8] sm:$0xf]  ;;  %v2740_v58 = vld [vmem:[#allocation8 + $0x188] sm:$0xf]  ;;  %v3151_v60 = vld [vmem:[#allocation8 + $0x18c] sm:$0xf] }
 0x147   :  { %3229 = vpow2.f32 %v2534_v11  ;;  %v3228_v40 = vpop.eup %3227  ;;  %1717 = vmatpush.bf16.msra.mxu2 %v2693_v7  ;;  %v2814_v11 = vld [vmem:[#allocation8 + $0x230] sm:$0xf0]  ;;  %v2765_v42 = vor.u32 %v3160_v38, %v2764_v37  ;;  %v2596_v7 = vld [vmem:[#allocation8 + $0x68] sm:$0xf]  ;;  %v2745_v8 = vor.u32 %v3151_v60, %v2742_v0 }
 0x148   :  { %v843_v19 = vpop.f32.mrf.mxu2  ;;  %v3536_v51 = vadd.f32 1.0, %v3228_v40  ;;  %v2817_v12 = vor.u32 %v3169_v10, %v2814_v11  ;;  %v2597_v53 = vor.u32 %v3118_v47, %v2596_v7  ;;  %v2572_v10 = vld [vmem:[#allocation8 + $0x38] sm:$0xf]  ;;  %v3112_v11 = vld [vmem:[#allocation8 + $0x4c] sm:$0xf0] }
 0x149   :  { %v856_v23 = vpop.f32.mrf.mxu3  ;;  %v2788_v19 = vld [vmem:[#allocation8 + $0x1e8] sm:$0xf]  ;;  %v2573_v15 = vor.u32 %v3112_v11, %v2572_v10  ;;  %v2918_v10 = vld [vmem:[#allocation8 + $0x2f8] sm:$0xf0] }
 0x14a   :  { %v3532_v28 = vpop.f32.mrf.mxu0  ;;  %1743 = vmatpush.bf16.msrb.mxu0 %v2697_v55  ;;  %3231 = vrcp.f32 %v3536_v51  ;;  %1733 = vmatpush.bf16.msra.mxu3 %v2813_v9  ;;  %v2789_v23 = vor.u32 %v3166_v20, %v2788_v19  ;;  %v2598_v55 = vld [vmem:[#allocation8 + $0x80] sm:$0xf0]  ;;  %v1022_v38 = vand.u32 2147483648, %v3536_v51  ;;  %vm1016_vm1 = vweird.f32 %v3536_v51 }
 0x14b   :  { %v3534_v30 = vpop.f32.mrf.mxu1  ;;  %1718 = vmatpush.bf16.msra.mxu2 %v2669_v4  ;;  %1759 = vmatpush.bf16.msrb.mxu1 %v2817_v12  ;;  %v2601_v57 = vor.u32 %v3115_v48, %v2598_v55  ;;  %v3109_v12 = vld [vmem:[#allocation8 + $0x3c] sm:$0xf]  ;;  %v920_v13 = vadd.f32 %v3532_v28, %v343_v49  ;;  %v1020_v39 = vand.u32 2147483647, %v3536_v51 }
 0x14c   :  { %v1023_v43 = vor.u32 1.1754944e-38, %v1022_v38 }
 0x14d   :  { %v3230_v50 = vpop.eup %3229  ;;  %v933_v29 = vadd.f32 %v3534_v30, %v920_v13  ;;  %vm1021_vm4 = vcmp.eq.f32.partialorder %v1020_v39, 8.507059e+37  ;;  %v3182_v39 = vld [vmem:[#allocation8 + $0x284] sm:$0xf] }
 0x14e   :  { %v3542_v1 = vadd.f32 1.0, %v3230_v50  ;;  %1744 = vmatpush.bf16.msrb.mxu0 %v2673_v5  ;;  %1734 = vmatpush.bf16.msra.mxu3 %v2789_v23  ;;  %v344_v50 = vperm.slane %v3528_v62, 4  ;;  %v2548_v23 = vld [vmem:[#allocation8 + $0x8] sm:$0xf]  ;;  %v2550_v62 = vld [vmem:[#allocation8 + $0x20] sm:$0xf0] }
 0x14f   :  { %1719 = vmatpush.bf16.msra.mxu2 %v2645_v16  ;;  %1760 = vmatpush.bf16.msrb.mxu1 %v2793_v27  ;;  %v2574_v16 = vld [vmem:[#allocation8 + $0x50] sm:$0xf0]  ;;  %v2549_v28 = vor.u32 %v3106_v24, %v2548_v23  ;;  %v2894_v23 = vld [vmem:[#allocation8 + $0x2c8] sm:$0xf0]  ;;  %v2724_v24 = vld [vmem:[#allocation8 + $0x160] sm:$0xf] }
 0x150   :  { %v3538_v52 = vpop.f32.mrf.mxu2  ;;  %3233 = vrcp.f32 %v3542_v1  ;;  %v3547_v32 = vpop.eup %3231  ;;  %v2577_v21 = vor.u32 %v3109_v12, %v2574_v16  ;;  %vm1001_vm5 = vweird.f32 %v3542_v1 }
 0x151   :  { %v3540_v54 = vpop.f32.mrf.mxu3  ;;  %v1012_v45 = vmul.f32 %v3547_v32, %v3536_v51  ;;  %v894_v31 = vadd.f32 %v3538_v52, %v342_v14  ;;  %vm1017_vm0 = vweird.f32 %v3547_v32  ;;  %v1005_v51 = vand.u32 2147483647, %v3542_v1 }
 0x152   :  { %v921_v59 = vpop.f32.mrf.mxu0  ;;  %1745 = vmatpush.bf16.msrb.mxu0 %v2649_v18  ;;  %1735 = vmatpush.bf16.msra.mxu3 %v2765_v42  ;;  %vm1018_vm2 = vmor %vm1016_vm1, %vm1017_vm0 }
 0x153   :  { %v934_v3 = vpop.f32.mrf.mxu1  ;;  %1720 = vmatpush.bf16.msra.mxu2 %v2621_v33  ;;  %v3154_v59 = vld [vmem:[#allocation8 + $0x19c] sm:$0xf0]  ;;  %1761 = vmatpush.bf16.msrb.mxu1 %v2769_v46  ;;  %v907_v52 = vadd.f32 %v3540_v54, %v894_v31  ;;  %vm1006_vm7 = vcmp.eq.f32.partialorder %v1005_v51, 8.507059e+37  ;;  %v2844_v51 = vld [vmem:[#allocation8 + $0x250] sm:$0xf] }
 0x154   :  { %v2741_v63 = vor.u32 %v3154_v59, %v2740_v58  ;;  %v1013_v3 = vsub.f32 1.0, %v1012_v45  ;;  %v1007_v45 = vand.u32 2147483648, %v3542_v1 }
 0x156   :  { %v3549_v44 = vpop.eup %3233  ;;  %1746 = vmatpush.bf16.msrb.mxu0 %v2625_v36  ;;  %1736 = vmatpush.bf16.msra.mxu3 %v2741_v63  ;;  %v1008_v7 = vor.u32 1.1754944e-38, %v1007_v45  ;;  %v2916_v63 = vld [vmem:[#allocation8 + $0x2e0] sm:$0xf] }
 0x157   :  { %v997_v61 = vmul.f32 %v3549_v44, %v3542_v1  ;;  %1721 = vmatpush.bf16.msra.mxu2 %v2597_v53  ;;  %1762 = vmatpush.bf16.msrb.mxu1 %v2745_v8  ;;  %vm1002_vm3 = vweird.f32 %v3549_v44 }
 0x158   :  { %v895_v22 = vpop.f32.mrf.mxu2  ;;  %vm1003_vm6 = vmor %vm1001_vm5, %vm1002_vm3 }
 0x159   :  { %v908_v25 = vpop.f32.mrf.mxu3  ;;  %v998_v17 = vsub.f32 1.0, %v997_v61  ;;  %v1014_v22 = vmul.f32 %v3547_v32, %v1013_v3 }
 0x15a   :  { %1747 = vmatpush.bf16.msrb.mxu0 %v2601_v57  ;;  %v3103_v25 = vld [vmem:[#allocation8 + $0xc] sm:$0xf] }
 0x15b   :  { %1722 = vmatpush.bf16.msra.mxu2 %v2573_v15  ;;  %v2553_v27 = vor.u32 %v3103_v25, %v2550_v62  ;;  %v1015_v33 = vadd.f32 %v3547_v32, %v1014_v22  ;;  %v999_v34 = vmul.f32 %v3549_v44, %v998_v17  ;;  %v2892_v15 = vld [vmem:[#allocation8 + $0x2b0] sm:$0xf]  ;;  %v3146_v62 = vld [vmem:[#allocation8 + $0x164] sm:$0xf] }
 0x15c   :  { %v971_v40 = vpop.f32.mrf.mxu0  ;;  %v984_v41 = vpop.f32.mrf.mxu1 }
 0x15d   :  { %v972_v2 = vadd.f32 %v971_v40, %v345_v26  ;;  %v1019_v40 = vsel %vm1018_vm2, %v3547_v32, %v1015_v33 }
 0x15e   :  { %1748 = vmatpush.bf16.msrb.mxu0 %v2577_v21  ;;  %v1024_v46 = vsel %vm1021_vm4, %v1023_v43, %v1019_v40  ;;  %v3143_v40 = vld [vmem:[#allocation8 + $0x144] sm:$0xf0] }
 0x15f   :  { %v985_v56 = vadd.f32 %v984_v41, %v972_v2  ;;  %1723 = vmatpush.bf16.msra.mxu2 %v2549_v28  ;;  %v1000_v41 = vadd.f32 %v3549_v44, %v999_v34  ;;  %v3149_v28 = vld [vmem:[#allocation8 + $0x174] sm:$0xf0]  ;;  %v2868_v34 = vld [vmem:[#allocation8 + $0x280] sm:$0xf] }
 0x161   :  { %v2537_v4 = vmul.f32 -1.442695, %v985_v56  ;;  %v945_v5 = vpop.f32.mrf.mxu2  ;;  %v958_v6 = vpop.f32.mrf.mxu3  ;;  %v1004_v54 = vsel %vm1003_vm6, %v3549_v44, %v1000_v41  ;;  %v3140_v41 = vld [vmem:[#allocation8 + $0x134] sm:$0xf] }
 0x162   :  { %v946_v9 = vadd.f32 %v945_v5, %v344_v50  ;;  %1749 = vmatpush.bf16.msrb.mxu0 %v2553_v27  ;;  %v1009_v49 = vsel %vm1006_vm7, %v1008_v7, %v1004_v54  ;;  %v2726_v27 = vld [vmem:[#allocation8 + $0x178] sm:$0xf0]  ;;  %v2846_v7 = vld [vmem:[#allocation8 + $0x268] sm:$0xf0] }
 0x163   :  { %3235 = vpow2.f32 %v2537_v4  ;;  %v3197_v4 = vld [vmem:[#allocation8 + $0x2f4] sm:$0xf0]  ;;  %v2729_v38 = vor.u32 %v3146_v62, %v2726_v27  ;;  %v2606_v62 = vld [vmem:[#allocation8 + $0x88] sm:$0xf0] }
 0x164   :  { %v959_v18 = vadd.f32 %v958_v6, %v946_v9  ;;  %v973_v19 = vpop.f32.mrf.mxu0  ;;  %v986_v20 = vpop.f32.mrf.mxu1  ;;  %v3194_v9 = vld [vmem:[#allocation8 + $0x2e4] sm:$0xf]  ;;  %v2917_v17 = vor.u32 %v3197_v4, %v2916_v63  ;;  %v3128_v63 = vld [vmem:[#allocation8 + $0xd4] sm:$0xf] }
 0x165   :  { %v3191_v19 = vld [vmem:[#allocation8 + $0x2c4] sm:$0xf0]  ;;  %v3188_v20 = vld [vmem:[#allocation8 + $0x2b4] sm:$0xf] }
 0x166   :  { %v2536_v26 = vmul.f32 -1.442695, %v959_v18  ;;  %v2921_v18 = vor.u32 %v3194_v9, %v2918_v10  ;;  %v2893_v31 = vor.u32 %v3191_v19, %v2892_v15  ;;  %v2897_v33 = vor.u32 %v3188_v20, %v2894_v23  ;;  %v3164_v10 = vld [vmem:[#allocation8 + $0x1f4] sm:$0xf]  ;;  %v2630_v15 = vld [vmem:[#allocation8 + $0xb8] sm:$0xf0] }
 0x167   :  { %v3161_v19 = vld [vmem:[#allocation8 + $0x1d4] sm:$0xf0]  ;;  %v3158_v23 = vld [vmem:[#allocation8 + $0x1c4] sm:$0xf] }
 0x168   :  { %3237 = vpow2.f32 %v2536_v26 }
 0x169   :  { %v947_v35 = vpop.f32.mrf.mxu2  ;;  %v960_v36 = vpop.f32.mrf.mxu3  ;;  %3239 = vtanh.f32 %v933_v29 }
 0x16a   :  { %v3236_v37 = vpop.eup %3235  ;;  %v3185_v35 = vld [vmem:[#allocation8 + $0x294] sm:$0xf0] }
 0x16b   :  { %v1035_v30 = vadd.f32 1.0, %v3236_v37  ;;  %v2725_v37 = vor.u32 %v3149_v28, %v2724_v24  ;;  %v2869_v43 = vor.u32 %v3185_v35, %v2868_v34  ;;  %v2774_v24 = vld [vmem:[#allocation8 + $0x1d8] sm:$0xf0]  ;;  %v3116_v28 = vld [vmem:[#allocation8 + $0x74] sm:$0xf] }
 0x16c   :  { %v2609_v35 = vor.u32 %v3116_v28, %v2606_v62 }
 0x16d   :  { %3241 = vrcp.f32 %v1035_v30  ;;  %v1060_v1 = vand.u32 2147483647, %v1035_v30  ;;  %v1062_v58 = vand.u32 2147483648, %v1035_v30  ;;  %vm1056_vm9 = vweird.f32 %v1035_v30 }
 0x16e   :  { %v3238_v42 = vpop.eup %3237  ;;  %3243 = vtanh.f32 %v907_v52  ;;  %v2700_v52 = vld [vmem:[#allocation8 + $0x130] sm:$0xf] }
 0x16f   :  { %v1034_v2 = vadd.f32 1.0, %v3238_v42  ;;  %v3240_v32 = vpop.eup %3239  ;;  %vm1061_vm11 = vcmp.eq.f32.partialorder %v1060_v1, 8.507059e+37  ;;  %v1063_v0 = vor.u32 1.1754944e-38, %v1062_v58  ;;  %v2702_v42 = vld [vmem:[#allocation8 + $0x148] sm:$0xf0] }
 0x170   :  { %v1067_v48 = vmul.f32 %v3240_v32, %v1024_v46  ;;  %v2701_v46 = vor.u32 %v3143_v40, %v2700_v52  ;;  %v2705_v54 = vor.u32 %v3140_v41, %v2702_v42  ;;  %v3176_v32 = vld [vmem:[#allocation8 + $0x254] sm:$0xf]  ;;  %v3110_v52 = vld [vmem:[#allocation8 + $0x44] sm:$0xf]  ;;  %v2582_v40 = vld [vmem:[#allocation8 + $0x58] sm:$0xf0] }
 0x171   :  { %3245 = vrcp.f32 %v1034_v2  ;;  %v1047_v3 = vand.u32 2147483648, %v1034_v2  ;;  %v1045_v8 = vand.u32 2147483647, %v1034_v2  ;;  %vm1041_vm13 = vweird.f32 %v1034_v2 }
 0x172   :  { %3247 = vtanh.f32 %v1067_v48  ;;  %v3137_v48 = vld [vmem:[#allocation8 + $0x114] sm:$0xf0] }
 0x173   :  { %v3242_v47 = vpop.eup %3241  ;;  %v1048_v16 = vor.u32 1.1754944e-38, %v1047_v3  ;;  %vm1046_vm15 = vcmp.eq.f32.partialorder %v1045_v8, 8.507059e+37 }
 0x174   :  { %v1052_v50 = vmul.f32 %v3242_v47, %v1035_v30  ;;  %v3244_v53 = vpop.eup %3243  ;;  %vm1057_vm8 = vweird.f32 %v3242_v47  ;;  %v2870_v30 = vld [vmem:[#allocation8 + $0x298] sm:$0xf0] }
 0x175   :  { %v1066_v57 = vmul.f32 %v3244_v53, %v1009_v49  ;;  %vm1058_vm10 = vmor %vm1056_vm9, %vm1057_vm8  ;;  %v2873_v45 = vor.u32 %v3182_v39, %v2870_v30  ;;  %v3134_v49 = vld [vmem:[#allocation8 + $0x104] sm:$0xf]  ;;  %v2580_v39 = vld [vmem:[#allocation8 + $0x40] sm:$0xf] }
 0x176   :  { %v1053_v55 = vsub.f32 1.0, %v1052_v50  ;;  %v2678_v50 = vld [vmem:[#allocation8 + $0x118] sm:$0xf0]  ;;  %v3113_v30 = vld [vmem:[#allocation8 + $0x54] sm:$0xf0] }
 0x177   :  { %v3246_v56 = vpop.eup %3245  ;;  %3249 = vtanh.f32 %v1066_v57  ;;  %v3173_v57 = vld [vmem:[#allocation8 + $0x234] sm:$0xf0]  ;;  %v2681_v58 = vor.u32 %v3134_v49, %v2678_v50 }
 0x178   :  { %v1054_v59 = vmul.f32 %v3242_v47, %v1053_v55  ;;  %v1037_v60 = vmul.f32 %v3246_v56, %v1034_v2  ;;  %vm1042_vm12 = vweird.f32 %v3246_v56  ;;  %v3248_v11 = vpop.eup %3247  ;;  %v3179_v2 = vld [vmem:[#allocation8 + $0x264] sm:$0xf0]  ;;  %v2849_v55 = vor.u32 %v3176_v32, %v2846_v7 }
 0x179   :  { %vm1043_vm14 = vmor %vm1041_vm13, %vm1042_vm12  ;;  %v2845_v53 = vor.u32 %v3179_v2, %v2844_v51  ;;  %v2556_v51 = vld [vmem:[#allocation8 + $0x10] sm:$0xf]  ;;  %v3107_v2 = vld [vmem:[#allocation8 + $0x24] sm:$0xf0] }
 0x17a   :  { %v1055_v61 = vadd.f32 %v3242_v47, %v1054_v59  ;;  %v1038_v44 = vsub.f32 1.0, %v1037_v60  ;;  %v3170_v59 = vld [vmem:[#allocation8 + $0x224] sm:$0xf]  ;;  %v2822_v60 = vld [vmem:[#allocation8 + $0x238] sm:$0xf0]  ;;  %v2557_v32 = vor.u32 %v3107_v2, %v2556_v51 }
 0x17b   :  { %v2825_v4 = vor.u32 %v3170_v59, %v2822_v60  ;;  %v3198_v51 = vld [vmem:[#allocation10] sm:$0xff] }
 0x17c   :  { %v1059_v5 = vsel %vm1058_vm10, %v3242_v47, %v1055_v61  ;;  %v1039_v6 = vmul.f32 %v3246_v56, %v1038_v44  ;;  %v2676_v47 = vld [vmem:[#allocation8 + $0x100] sm:$0xf]  ;;  %v2652_v61 = vld [vmem:[#allocation8 + $0xd0] sm:$0xf]  ;;  %v3131_v44 = vld [vmem:[#allocation8 + $0xe4] sm:$0xf0] }
 0x17d   :  { %v1064_v12 = vsel %vm1061_vm11, %v1063_v0, %v1059_v5  ;;  %v3250_v25 = vpop.eup %3249  ;;  %v2677_v1 = vor.u32 %v3137_v48, %v2676_v47  ;;  %v2654_v0 = vld [vmem:[#allocation8 + $0xe8] sm:$0xf0]  ;;  %v2796_v5 = vld [vmem:[#allocation8 + $0x1f0] sm:$0xf]  ;;  %v2653_v8 = vor.u32 %v3131_v44, %v2652_v61  ;;  %v3595_v47 = vld [vmem:[%s3635_s6] sm:$0x3f] }
 0x17e   :  { %v1040_v13 = vadd.f32 %v3246_v56, %v1039_v6  ;;  %v1071_v14 = vmul.f32 %v3248_v11, %v1064_v12  ;;  %v3167_v6 = vld [vmem:[#allocation8 + $0x204] sm:$0xf0]  ;;  %v2657_v9 = vor.u32 %v3128_v63, %v2654_v0  ;;  %v2798_v11 = vld [vmem:[#allocation8 + $0x208] sm:$0xf0]  ;;  %v2628_v12 = vld [vmem:[#allocation8 + $0xa0] sm:$0xf] }
 0x17f   :  { %v1173_v49 = vperm.slane %v3595_v47, 1  ;;  %v3212_v63 = vld [vmem:[#allocation10 + $0x70] sm:$0xff] }
 0x180   :  { %v1044_v21 = vsel %vm1043_vm14, %v3246_v56, %v1040_v13  ;;  %v3576_v22 = vpack.c.bf16 %v1071_v14, %v1071_v14  ;;  %v2820_v56 = vld [vmem:[#allocation8 + $0x220] sm:$0xf]  ;;  %v3125_v13 = vld [vmem:[#allocation8 + $0xb4] sm:$0xf0]  ;;  %v3122_v14 = vld [vmem:[#allocation8 + $0xa4] sm:$0xf] }
 0x181   :  { %v1049_v26 = vsel %vm1046_vm15, %v1048_v16, %v1044_v21  ;;  %v2821_v3 = vor.u32 %v3173_v57, %v2820_v56  ;;  %v2797_v16 = vor.u32 %v3167_v6, %v2796_v5  ;;  %v2629_v20 = vor.u32 %v3125_v13, %v2628_v12  ;;  %v3211_v6 = vld [vmem:[#allocation10 + $0x68] sm:$0xff]  ;;  %v3210_v12 = vld [vmem:[#allocation10 + $0x60] sm:$0xff] }
 0x182   :  { %1685 = vmatmul.bf16.vlgmr.msrb.gmra.mxu3 %v3576_v22  ;;  %1711 = vmatmul.bf16.vlgmr.msra.gmra.mxu1 %v3576_v22  ;;  %v1070_v29 = vmul.f32 %v3250_v25, %v1049_v26  ;;  %v2633_v21 = vor.u32 %v3122_v14, %v2630_v15  ;;  %v2604_v25 = vld [vmem:[#allocation8 + $0x70] sm:$0xf]  ;;  %v3119_v26 = vld [vmem:[#allocation8 + $0x84] sm:$0xf0] }
 0x183   :  { %1781 = vmatpush.bf16.msrb.mxu3 %v2917_v17  ;;  %1807 = vmatpush.bf16.msra.mxu1 %v2921_v18  ;;  %v2801_v17 = vor.u32 %v3164_v10, %v2798_v11  ;;  %v2772_v18 = vld [vmem:[#allocation8 + $0x1c0] sm:$0xf]  ;;  %v2605_v34 = vor.u32 %v3119_v26, %v2604_v25  ;;  %v3203_v15 = vld [vmem:[#allocation10 + $0x28] sm:$0xff]  ;;  %v3201_v26 = vld [vmem:[#allocation10 + $0x18] sm:$0xff] }
 0x184   :  { %v3580_v36 = vpack.c.bf16 %v1070_v29, %v1070_v29  ;;  %v2773_v27 = vor.u32 %v3161_v19, %v2772_v18  ;;  %v2777_v29 = vor.u32 %v3158_v23, %v2774_v24  ;;  %v3208_v24 = vld [vmem:[#allocation10 + $0x50] sm:$0xff] }
 0x186   :  { %1672 = vmatmul.bf16.vlgmr.msrb.gmra.mxu2 %v3580_v36  ;;  %1698 = vmatmul.bf16.vlgmr.msra.gmra.mxu0 %v3580_v36 }
 0x187   :  { %1782 = vmatpush.bf16.msrb.mxu3 %v2893_v31  ;;  %1808 = vmatpush.bf16.msra.mxu1 %v2897_v33  ;;  %v2748_v31 = vld [vmem:[#allocation8 + $0x190] sm:$0xf]  ;;  %v3155_v33 = vld [vmem:[#allocation8 + $0x1a4] sm:$0xf0] }
 0x188   :  { %1768 = vmatpush.bf16.msrb.mxu2 %v2725_v37  ;;  %1794 = vmatpush.bf16.msra.mxu0 %v2729_v38  ;;  %v3152_v37 = vld [vmem:[#allocation8 + $0x194] sm:$0xf]  ;;  %v2750_v38 = vld [vmem:[#allocation8 + $0x1a8] sm:$0xf0]  ;;  %v2749_v41 = vor.u32 %v3155_v33, %v2748_v31  ;;  %v3206_v33 = vld [vmem:[#allocation10 + $0x40] sm:$0xff] }
 0x189   :  { %v2753_v42 = vor.u32 %v3152_v37, %v2750_v38  ;;  %v3200_v31 = vld [vmem:[#allocation10 + $0x10] sm:$0xff] }
 0x18b   :  { %1783 = vmatpush.bf16.msrb.mxu3 %v2869_v43  ;;  %1809 = vmatpush.bf16.msra.mxu1 %v2873_v45  ;;  %v2581_v43 = vor.u32 %v3113_v30, %v2580_v39  ;;  %v2585_v45 = vor.u32 %v3110_v52, %v2582_v40  ;;  %v3199_v39 = vld [vmem:[#allocation10 + $0x8] sm:$0xff]  ;;  %v1175_v52 = vperm.slane %v3595_v47, 3 }
 0x18c   :  { %1769 = vmatpush.bf16.msrb.mxu2 %v2701_v46  ;;  %1795 = vmatpush.bf16.msra.mxu0 %v2705_v54  ;;  %v3104_v46 = vld [vmem:[#allocation8 + $0x14] sm:$0xf]  ;;  %v2558_v54 = vld [vmem:[#allocation8 + $0x28] sm:$0xf0] }
 0x18d   :  { %v2561_v7 = vor.u32 %v3104_v46, %v2558_v54 }
 0x18f   :  { %1784 = vmatpush.bf16.msrb.mxu3 %v2845_v53  ;;  %1810 = vmatpush.bf16.msra.mxu1 %v2849_v55 }
 0x190   :  { %1770 = vmatpush.bf16.msrb.mxu2 %v2677_v1  ;;  %1796 = vmatpush.bf16.msra.mxu0 %v2681_v58  ;;  %v3213_v58 = vld [vmem:[#allocation10 + $0x78] sm:$0xff] }
 0x192   :  { %1737 = vmatmul.bf16.vlgmr.msra.gmra.mxu3 %v3576_v22  ;;  %1763 = vmatmul.bf16.vlgmr.msrb.gmra.mxu1 %v3576_v22 }
 0x193   :  { %1785 = vmatpush.bf16.msrb.mxu3 %v2821_v3  ;;  %1811 = vmatpush.bf16.msra.mxu1 %v2825_v4  ;;  %v3205_v3 = vld [vmem:[#allocation10 + $0x38] sm:$0xff] }
 0x194   :  { %1771 = vmatpush.bf16.msrb.mxu2 %v2653_v8  ;;  %1797 = vmatpush.bf16.msra.mxu0 %v2657_v9  ;;  %v3204_v9 = vld [vmem:[#allocation10 + $0x30] sm:$0xff] }
 0x196   :  { %1724 = vmatmul.bf16.vlgmr.msra.gmra.mxu2 %v3580_v36  ;;  %1750 = vmatmul.bf16.vlgmr.msrb.gmra.mxu0 %v3580_v36 }
 0x197   :  { %1786 = vmatpush.bf16.msrb.mxu3 %v2797_v16  ;;  %1812 = vmatpush.bf16.msra.mxu1 %v2801_v17  ;;  %v3209_v17 = vld [vmem:[#allocation10 + $0x58] sm:$0xff] }
 0x198   :  { %1772 = vmatpush.bf16.msrb.mxu2 %v2629_v20  ;;  %1798 = vmatpush.bf16.msra.mxu0 %v2633_v21  ;;  %v3202_v20 = vld [vmem:[#allocation10 + $0x20] sm:$0xff] }
 0x19b   :  { %1787 = vmatpush.bf16.msrb.mxu3 %v2773_v27  ;;  %1813 = vmatpush.bf16.msra.mxu1 %v2777_v29  ;;  %v1177_v27 = vperm.slane %v3595_v47, 5  ;;  %v3207_v29 = vld [vmem:[#allocation10 + $0x48] sm:$0xff] }
 0x19c   :  { %1773 = vmatpush.bf16.msrb.mxu2 %v2605_v34  ;;  %1799 = vmatpush.bf16.msra.mxu0 %v2609_v35 }
 0x19f   :  { %1788 = vmatpush.bf16.msrb.mxu3 %v2749_v41  ;;  %1814 = vmatpush.bf16.msra.mxu1 %v2753_v42  ;;  %v1176_v42 = vperm.slane %v3595_v47, 4 }
 0x1a0   :  { %1774 = vmatpush.bf16.msrb.mxu2 %v2581_v43  ;;  %1800 = vmatpush.bf16.msra.mxu0 %v2585_v45 }
 0x1a2   :  { %1789 = vmatmul.bf16.vlgmr.msrb.gmra.mxu3 %v3576_v22  ;;  %1815 = vmatmul.bf16.vlgmr.msra.gmra.mxu1 %v3576_v22  ;;  %v1172_v22 = vperm.slane %v3595_v47, 0 }
 0x1a3   :  { %2051 = vmatpush.bf16.msra.mxu3 %v3213_v58 }
 0x1a4   :  { %1775 = vmatpush.bf16.msrb.mxu2 %v2557_v32  ;;  %1801 = vmatpush.bf16.msra.mxu0 %v2561_v7 }
 0x1a7   :  { %1776 = vmatmul.bf16.vlgmr.msrb.gmra.mxu2 %v3580_v36  ;;  %1802 = vmatmul.bf16.vlgmr.msra.gmra.mxu0 %v3580_v36 }
 0x1a8   :  { %2052 = vmatpush.bf16.msra.mxu3 %v3212_v63  ;;  %2038 = vmatpush.bf16.msra.mxu2 %v3205_v3 }
 0x1ac   :  { %2053 = vmatpush.bf16.msra.mxu3 %v3211_v6  ;;  %2039 = vmatpush.bf16.msra.mxu2 %v3204_v9 }
 0x1b0   :  { %2054 = vmatpush.bf16.msra.mxu3 %v3210_v12  ;;  %2040 = vmatpush.bf16.msra.mxu2 %v3203_v15 }
 0x1b4   :  { %2055 = vmatpush.bf16.msra.mxu3 %v3209_v17  ;;  %2041 = vmatpush.bf16.msra.mxu2 %v3202_v20 }
 0x1b8   :  { %2056 = vmatpush.bf16.msra.mxu3 %v3208_v24  ;;  %2042 = vmatpush.bf16.msra.mxu2 %v3201_v26 }
 0x1bc   :  { %2057 = vmatpush.bf16.msra.mxu3 %v3207_v29  ;;  %2043 = vmatpush.bf16.msra.mxu2 %v3200_v31 }
 0x1c0   :  { %2058 = vmatpush.bf16.msra.mxu3 %v3206_v33  ;;  %2044 = vmatpush.bf16.msra.mxu2 %v3199_v39 }
 0x1c4   :  { %2045 = vmatpush.bf16.msra.mxu2 %v3198_v51  ;;  %v3226_v51 = vld [vmem:[%s3637_s8] ss:$0 sm:$0xff] }
 0x1ff   :  { %v1712_v48 = vpop.f32.mrf.mxu1 }
 0x203   :  { %v1699_v50 = vpop.f32.mrf.mxu0 }
 0x204   :  { %v1700_v53 = vadd.f32 %v1699_v50, %v1173_v49  ;;  %v1174_v49 = vperm.slane %v3595_v47, 2 }
 0x205   :  { %v1686_v55 = vpop.f32.mrf.mxu3 }
 0x206   :  { %v1713_v56 = vadd.f32 %v1712_v48, %v1700_v53 }
 0x207   :  { %v1714_v57 = vpop.f32.mrf.mxu1 }
 0x208   :  { %v2923_v59 = vmul.f32 -1.442695, %v1713_v56 }
 0x209   :  { %v1673_v1 = vpop.f32.mrf.mxu2 }
 0x20a   :  { %v1674_v60 = vadd.f32 %v1673_v1, %v1172_v22  ;;  %3251 = vpow2.f32 %v2923_v59 }
 0x20b   :  { %v1701_v36 = vpop.f32.mrf.mxu0 }
 0x20c   :  { %v1687_v61 = vadd.f32 %v1686_v55, %v1674_v60 }
 0x20d   :  { %v1688_v44 = vpop.f32.mrf.mxu3 }
 0x20e   :  { %v2922_v4 = vmul.f32 -1.442695, %v1687_v61 }
 0x20f   :  { %v3599_v0 = vpop.f32.mrf.mxu1 }
 0x210   :  { %v3252_v10 = vpop.eup %3251  ;;  %3253 = vpow2.f32 %v2922_v4 }
 0x211   :  { %v1675_v5 = vpop.f32.mrf.mxu2  ;;  %v3603_v13 = vadd.f32 1.0, %v3252_v10 }
 0x213   :  { %v1751_v8 = vpop.f32.mrf.mxu0  ;;  %3255 = vrcp.f32 %v3603_v13  ;;  %v1854_v58 = vand.u32 2147483648, %v3603_v13  ;;  %vm1848_vm1 = vweird.f32 %v3603_v13  ;;  %v1852_v60 = vand.u32 2147483647, %v3603_v13 }
 0x214   :  { %v1752_v54 = vadd.f32 %v1751_v8, %v1175_v52 }
 0x215   :  { %v3601_v11 = vpop.f32.mrf.mxu3  ;;  %v1855_v63 = vor.u32 1.1754944e-38, %v1854_v58  ;;  %vm1853_vm3 = vcmp.eq.f32.partialorder %v1852_v60, 8.507059e+37 }
 0x216   :  { %v3254_v18 = vpop.eup %3253  ;;  %v1765_v56 = vadd.f32 %v3599_v0, %v1752_v54 }
 0x217   :  { %v1766_v14 = vpop.f32.mrf.mxu1  ;;  %v3606_v21 = vadd.f32 1.0, %v3254_v18 }
 0x219   :  { %v1725_v16 = vpop.f32.mrf.mxu2  ;;  %v3256_v28 = vpop.eup %3255  ;;  %3257 = vrcp.f32 %v3606_v21  ;;  %v1839_v6 = vand.u32 2147483648, %v3606_v21  ;;  %vm1833_vm5 = vweird.f32 %v3606_v21  ;;  %v1837_v8 = vand.u32 2147483647, %v3606_v21 }
 0x21a   :  { %v1844_v34 = vmul.f32 %v3256_v28, %v3603_v13  ;;  %vm1849_vm0 = vweird.f32 %v3256_v28  ;;  %v1726_v59 = vadd.f32 %v1725_v16, %v1174_v49 }
 0x21b   :  { %v1753_v19 = vpop.f32.mrf.mxu0  ;;  %vm1850_vm2 = vmor %vm1848_vm1, %vm1849_vm0  ;;  %vm1838_vm7 = vcmp.eq.f32.partialorder %v1837_v8, 8.507059e+37 }
 0x21c   :  { %v1845_v43 = vsub.f32 1.0, %v1844_v34  ;;  %v1739_v0 = vadd.f32 %v3601_v11, %v1726_v59  ;;  %v1840_v11 = vor.u32 1.1754944e-38, %v1839_v6 }
 0x21d   :  { %v1740_v23 = vpop.f32.mrf.mxu3 }
 0x21e   :  { %v1846_v7 = vmul.f32 %v3256_v28, %v1845_v43 }
 0x21f   :  { %v1816_v25 = vpop.f32.mrf.mxu1  ;;  %v3258_v30 = vpop.eup %3257 }
 0x220   :  { %v1829_v2 = vmul.f32 %v3258_v30, %v3606_v21  ;;  %v1847_v57 = vadd.f32 %v3256_v28, %v1846_v7  ;;  %vm1834_vm4 = vweird.f32 %v3258_v30 }
 0x221   :  { %v1727_v62 = vpop.f32.mrf.mxu2  ;;  %vm1835_vm6 = vmor %vm1833_vm5, %vm1834_vm4 }
 0x222   :  { %v1830_v55 = vsub.f32 1.0, %v1829_v2  ;;  %v1851_v44 = vsel %vm1850_vm2, %v3256_v28, %v1847_v57 }
 0x223   :  { %v1856_v5 = vsel %vm1853_vm3, %v1855_v63, %v1851_v44 }
 0x224   :  { %v1803_v35 = vpop.f32.mrf.mxu0  ;;  %v1831_v36 = vmul.f32 %v3258_v30, %v1830_v55 }
 0x225   :  { %v1790_v37 = vpop.f32.mrf.mxu3  ;;  %v1804_v38 = vadd.f32 %v1803_v35, %v1177_v27 }
 0x226   :  { %v1832_v3 = vadd.f32 %v3258_v30, %v1831_v36 }
 0x227   :  { %v1817_v40 = vadd.f32 %v1816_v25, %v1804_v38  ;;  %v1818_v41 = vpop.f32.mrf.mxu1 }
 0x228   :  { %v1836_v14 = vsel %vm1835_vm6, %v3258_v30, %v1832_v3 }
 0x229   :  { %v2925_v45 = vmul.f32 -1.442695, %v1817_v40  ;;  %v1841_v16 = vsel %vm1838_vm7, %v1840_v11, %v1836_v14 }
 0x22a   :  { %v1777_v46 = vpop.f32.mrf.mxu2 }
 0x22b   :  { %3259 = vpow2.f32 %v2925_v45  ;;  %v1778_v32 = vadd.f32 %v1777_v46, %v1176_v42 }
 0x22c   :  { %v1805_v48 = vpop.f32.mrf.mxu0 }
 0x22d   :  { %v1791_v50 = vadd.f32 %v1790_v37, %v1778_v32  ;;  %v1792_v53 = vpop.f32.mrf.mxu3 }
 0x22f   :  { %v2924_v22 = vmul.f32 -1.442695, %v1791_v50 }
 0x231   :  { %v3260_v1 = vpop.eup %3259  ;;  %3261 = vpow2.f32 %v2924_v22 }
 0x232   :  { %v1867_v47 = vadd.f32 1.0, %v3260_v1  ;;  %v1779_v61 = vpop.f32.mrf.mxu2  ;;  %3263 = vtanh.f32 %v1765_v56 }
 0x234   :  { %3265 = vrcp.f32 %v1867_v47  ;;  %v1894_v18 = vand.u32 2147483648, %v1867_v47  ;;  %v1892_v23 = vand.u32 2147483647, %v1867_v47  ;;  %vm1888_vm9 = vweird.f32 %v1867_v47 }
 0x235   :  { %3267 = vtanh.f32 %v1739_v0 }
 0x236   :  { %v1895_v28 = vor.u32 1.1754944e-38, %v1894_v18  ;;  %vm1893_vm11 = vcmp.eq.f32.partialorder %v1892_v23, 8.507059e+37 }
 0x237   :  { %v3262_v4 = vpop.eup %3261 }
 0x238   :  { %v1866_v9 = vadd.f32 1.0, %v3262_v4  ;;  %v3264_v10 = vpop.eup %3263 }
 0x239   :  { %v1899_v13 = vmul.f32 %v3264_v10, %v1856_v5 }
 0x23a   :  { %v3266_v12 = vpop.eup %3265  ;;  %3269 = vrcp.f32 %v1866_v9  ;;  %v1879_v33 = vand.u32 2147483648, %v1866_v9  ;;  %v1877_v37 = vand.u32 2147483647, %v1866_v9  ;;  %vm1873_vm13 = vweird.f32 %v1866_v9 }
 0x23b   :  { %v1884_v15 = vmul.f32 %v3266_v12, %v1867_v47  ;;  %3271 = vtanh.f32 %v1899_v13  ;;  %v3268_v19 = vpop.eup %3267  ;;  %vm1889_vm8 = vweird.f32 %v3266_v12 }
 0x23c   :  { %v1898_v24 = vmul.f32 %v3268_v19, %v1841_v16  ;;  %vm1890_vm10 = vmor %vm1888_vm9, %vm1889_vm8  ;;  %v1880_v30 = vor.u32 1.1754944e-38, %v1879_v33  ;;  %vm1878_vm15 = vcmp.eq.f32.partialorder %v1877_v37, 8.507059e+37 }
 0x23d   :  { %v1885_v17 = vsub.f32 1.0, %v1884_v15 }
 0x23e   :  { %3273 = vtanh.f32 %v1898_v24 }
 0x23f   :  { %v1886_v20 = vmul.f32 %v3266_v12, %v1885_v17 }
 0x240   :  { %v3270_v21 = vpop.eup %3269 }
 0x241   :  { %v1869_v25 = vmul.f32 %v3270_v21, %v1866_v9  ;;  %v1887_v26 = vadd.f32 %v3266_v12, %v1886_v20  ;;  %v3272_v29 = vpop.eup %3271  ;;  %vm1874_vm12 = vweird.f32 %v3270_v21 }
 0x242   :  { %vm1875_vm14 = vmor %vm1873_vm13, %vm1874_vm12 }
 0x243   :  { %v1870_v62 = vsub.f32 1.0, %v1869_v25  ;;  %v1891_v27 = vsel %vm1890_vm10, %v3266_v12, %v1887_v26 }
 0x244   :  { %v1896_v31 = vsel %vm1893_vm11, %v1895_v28, %v1891_v27  ;;  %v3274_v40 = vpop.eup %3273 }
 0x245   :  { %v1903_v34 = vmul.f32 %v3272_v29, %v1896_v31  ;;  %v1871_v35 = vmul.f32 %v3270_v21, %v1870_v62 }
 0x247   :  { %v1905_v38 = vpack.c.bf16 %v1903_v34, %v1903_v34  ;;  %v1872_v39 = vadd.f32 %v3270_v21, %v1871_v35 }
 0x249   :  { %2059 = vmatmul.bf16.vlgmr.msra.gmra.mxu3 %v1905_v38  ;;  %v1876_v52 = vsel %vm1875_vm14, %v3270_v21, %v1872_v39 }
 0x24a   :  { %v1881_v41 = vsel %vm1878_vm15, %v1880_v30, %v1876_v52 }
 0x24b   :  { %v1902_v42 = vmul.f32 %v3274_v40, %v1881_v41 }
 0x24d   :  { %v1904_v43 = vpack.c.bf16 %v1902_v42, %v1902_v42 }
 0x24f   :  { %2046 = vmatmul.bf16.vlgmr.msra.gmra.mxu2 %v1904_v43 }
 0x2cc   :  { %v2060_v45 = vpop.f32.mrf.mxu3 }
 0x2d2   :  { %v2047_v2 = vpop.f32.mrf.mxu2 }
 0x2d3   :  { %v2048_v46 = vadd.f32 %v3226_v51, %v2047_v2 }
 0x2d4   :  { %v2062_v54 = vpop.f32.mrf.mxu3 }
 0x2d5   :  { %v2061_v32 = vadd.f32 %v2060_v45, %v2048_v46 }
 0x2d7   :  { %3275 = vtanh.f32 %v2061_v32 }
 0x2da   :  { %v2049_v7 = vpop.f32.mrf.mxu2 }
 0x2dd   :  { %v3276_v48 = vpop.eup %3275 }
 0x2de   :  { %v2065_v49 = vpack.c.bf16 %v3276_v48, %v3276_v48 }
 0x2e0   :  { %2066 = vst [vmem:[#allocation11] sm:$0xf] %v2065_v49 }
 0x2e1   :  { %2077 = dma.vmem_to_hbm [thread:$0]  %s2073_s20, 64, %s2075_s22, [#allocation4]  }
 0x2e2   :  { %3427 = dma.done.wait [#allocation4], 64  }
 0x2e3   :  { %3428 = vsyncadd [#allocation4], 4294967232 }
 0x2e4   :  { %2082 = vsyncpa [#allocation3], 1 }
 0x2e5   :  { %2083 = vsyncpa [#allocation6], 1 }
 0x2e6   :  { %2084 = vsyncpa [#allocation9], 1 }
 0x2e7   :  { %2085 = vsyncpa [#allocation4], 1 }

// kernel: _forward.1
= control target key start
LH: loop header
LB: loop body
LE: loop exit
PB: predicated region body
PF: predicated region fallthrough
CT: control target
= control target key end

     0   :  { %14 = vsyncpa [#allocation3], 0  ;;  %s3629_s0 = inlined_call_operand.vmem [shape: bf16[8,128], index: 0, kind: input, shape index: {}]   ;;  %s3630_s1 = inlined_call_operand.hbm [shape: bf16[128,256], index: 1, kind: input, shape index: {}]   ;;  %s3631_s2 = inlined_call_operand.hbm [shape: f32[1,256], index: 2, kind: input, shape index: {}]   ;;  %s3632_s3 = inlined_call_operand.hbm [shape: bf16[256,768], index: 3, kind: input, shape index: {}]   ;;  %s3633_s4 = inlined_call_operand.vmem [shape: f32[1,768], index: 4, kind: input, shape index: {}]   ;;  %s3634_s5 = inlined_call_operand.hbm [shape: bf16[256,768], index: 5, kind: input, shape index: {}]   ;;  %s3635_s6 = inlined_call_operand.vmem [shape: f32[1,768], index: 6, kind: input, shape index: {}]   ;;  %s3636_s7 = inlined_call_operand.hbm [shape: bf16[256,128], index: 7, kind: input, shape index: {}]   ;;  %s3637_s8 = inlined_call_operand.vmem [shape: f32[1,128], index: 8, kind: input, shape index: {}]   ;;  %s3638_s9 = inlined_call_operand.hbm [shape: bf16[8,128], index: 9, kind: output, shape index: {}]  }
   0x1   :  { %15 = vsyncpa [#allocation6], 0 }
   0x2   :  { %16 = vsyncpa [#allocation9], 0  ;;  %s38_s11 = sshll.u32 %s3631_s2, 4  ;;  %s39_s11 = int_to_ptr.hbm [resolvable:$true] %s38_s11 }
   0x3   :  { %17 = vsyncpa [#allocation4], 0  ;;  %s3429_s12 = smov [#allocation5]   ;;  %s63_s16 = sshll.u32 %s3634_s5, 4  ;;  %s64_s16 = int_to_ptr.hbm [resolvable:$true] %s63_s16 }
   0x4   :  { %s40_s13 = sshll.u32 %s3429_s12, 4  ;;  %s3430_s17 = smov [#allocation8]   ;;  %s41_s13 = int_to_ptr.vmem [resolvable:$true] %s40_s13 }
   0x5   :  { %43 = dma.hbm_to_vmem [thread:$0]  %s39_s11, 32, %s41_s13, [#allocation6]  }
   0x6   :  { %s65_s18 = sshll.u32 %s3430_s17, 4  ;;  %s24_s21 = sshll.u32 %s3630_s1, 4  ;;  %s66_s18 = int_to_ptr.vmem [resolvable:$true] %s65_s18  ;;  %s25_s21 = int_to_ptr.hbm [resolvable:$true] %s24_s21 }
   0x7   :  { %s3431_s2 = smov 384   ;;  %s3432_s22 = smov 24  }
   0x8   :  { %71 = dma.hbm_to_vmem [thread:$0]  %s64_s16, 12288, %s66_s18, [#allocation9], %s3431_s2, %s3431_s2, %s3432_s22  }
   0x9   :  { %s3433_s23 = smov [#allocation2]   ;;  %s48_s27 = sshll.u32 %s3632_s3, 4  ;;  %s49_s27 = int_to_ptr.hbm [resolvable:$true] %s48_s27 }
   0xa   :  { %s26_s24 = sshll.u32 %s3433_s23, 4  ;;  %s3434_s5 = smov 128   ;;  %s27_s24 = int_to_ptr.vmem [resolvable:$true] %s26_s24 }
   0xb   :  { %s3435_s28 = smov 8   ;;  %s3436_s29 = smov [#allocation7]  }
   0xc   :  { %32 = dma.hbm_to_vmem [thread:$0]  %s25_s21, 2048, %s27_s24, [#allocation3], %s3434_s5, %s3434_s5, %s3435_s28  }
   0xd   :  { %s50_s30 = sshll.u32 %s3436_s29, 4  ;;  %s78_s11 = sshll.u32 %s3636_s7, 4  ;;  %s51_s30 = int_to_ptr.vmem [resolvable:$true] %s50_s30  ;;  %s79_s11 = int_to_ptr.hbm [resolvable:$true] %s78_s11 }
   0xe   :  { %56 = dma.hbm_to_vmem [thread:$0]  %s49_s27, 12288, %s51_s30, [#allocation6], %s3431_s2, %s3431_s2, %s3432_s22  }
   0xf   :  { %s3437_s12 = smov [#allocation10]   ;;  %s3438_s14 = smov 64  }
  0x10   :  { %s80_s13 = sshll.u32 %s3437_s12, 4  ;;  %s3439_s15 = smov 4   ;;  %s81_s13 = int_to_ptr.vmem [resolvable:$true] %s80_s13 }
  0x11   :  { %86 = dma.hbm_to_vmem [thread:$0]  %s79_s11, 2048, %s81_s13, [#allocation9], %s3438_s14, %s3438_s14, %s3439_s15  }
  0x12   :  { %3421 = dma.done.wait [#allocation3], 2048  }
  0x13   :  { %3422 = vsyncadd [#allocation3], 4294965248 }
  0x14   :  { %3423 = dma.done.wait [#allocation6], 12320  }
  0x15   :  { %3424 = vsyncadd [#allocation6], 4294954976 }
  0x16   :  { %3425 = dma.done.wait [#allocation9], 14336  }
  0x17   :  { %3426 = vsyncadd [#allocation9], 4294952960  ;;  %v2144_v0 = vld [vmem:[#allocation2 + $0x70] sm:$0xf]  ;;  %v3005_v1 = vld [vmem:[#allocation2 + $0x74] sm:$0xf0] }
  0x18   :  { %v3004_v2 = vld [vmem:[#allocation2 + $0x74] sm:$0xf]  ;;  %v2145_v3 = vor.u32 %v3005_v1, %v2144_v0  ;;  %v2146_v4 = vld [vmem:[#allocation2 + $0x78] sm:$0xf0]  ;;  %v2136_v5 = vld [vmem:[#allocation2 + $0x60] sm:$0xf] }
  0x19   :  { %v3003_v6 = vld [vmem:[#allocation2 + $0x64] sm:$0xf0]  ;;  %v2149_v7 = vor.u32 %v3004_v2, %v2146_v4  ;;  %v3002_v8 = vld [vmem:[#allocation2 + $0x64] sm:$0xf]  ;;  %v2138_v9 = vld [vmem:[#allocation2 + $0x68] sm:$0xf0] }
  0x1a   :  { %212 = vmatpush.bf16.msra.mxu0 %v2145_v3  ;;  %v2137_v10 = vor.u32 %v3003_v6, %v2136_v5  ;;  %v2141_v11 = vor.u32 %v3002_v8, %v2138_v9  ;;  %v2128_v12 = vld [vmem:[#allocation2 + $0x50] sm:$0xf]  ;;  %v3001_v13 = vld [vmem:[#allocation2 + $0x54] sm:$0xf0]  ;;  %v3000_v14 = vld [vmem:[#allocation2 + $0x54] sm:$0xf] }
  0x1b   :  { %225 = vmatpush.bf16.msra.mxu1 %v2149_v7  ;;  %v2130_v15 = vld [vmem:[#allocation2 + $0x58] sm:$0xf0]  ;;  %v2129_v16 = vor.u32 %v3001_v13, %v2128_v12  ;;  %v2120_v18 = vld [vmem:[#allocation2 + $0x40] sm:$0xf]  ;;  %v2999_v19 = vld [vmem:[#allocation2 + $0x44] sm:$0xf0] }
  0x1c   :  { %v2133_v17 = vor.u32 %v3000_v14, %v2130_v15  ;;  %v2998_v20 = vld [vmem:[#allocation2 + $0x44] sm:$0xf]  ;;  %v2122_v21 = vld [vmem:[#allocation2 + $0x48] sm:$0xf0]  ;;  %v2121_v22 = vor.u32 %v2999_v19, %v2120_v18  ;;  %v2320_v23 = vld [vmem:[#allocation7 + $0x150] sm:$0xf] }
  0x1d   :  { %v3051_v24 = vld [vmem:[#allocation7 + $0x164] sm:$0xf0]  ;;  %v2512_v25 = vld [vmem:[#allocation7 + $0x2d0] sm:$0xf]  ;;  %v2125_v26 = vor.u32 %v2998_v20, %v2122_v21  ;;  %v2997_v28 = vld [vmem:[#allocation2 + $0x34] sm:$0xf0] }
  0x1e   :  { %213 = vmatpush.bf16.msra.mxu0 %v2137_v10  ;;  %v2112_v27 = vld [vmem:[#allocation2 + $0x30] sm:$0xf]  ;;  %v2321_v29 = vor.u32 %v3051_v24, %v2320_v23  ;;  %v3099_v30 = vld [vmem:[#allocation7 + $0x2e4] sm:$0xf0]  ;;  %v2996_v31 = vld [vmem:[#allocation2 + $0x34] sm:$0xf] }
  0x1f   :  { %226 = vmatpush.bf16.msra.mxu1 %v2141_v11  ;;  %v2114_v32 = vld [vmem:[#allocation2 + $0x38] sm:$0xf0]  ;;  %v2513_v33 = vor.u32 %v3099_v30, %v2512_v25  ;;  %v2296_v34 = vld [vmem:[#allocation7 + $0x120] sm:$0xf]  ;;  %v2113_v38 = vor.u32 %v2997_v28, %v2112_v27  ;;  %v2995_v40 = vld [vmem:[#allocation2 + $0x24] sm:$0xf0] }
  0x20   :  { %832 = vmatpush.bf16.msra.mxu2 %v2321_v29  ;;  %v3045_v35 = vld [vmem:[#allocation7 + $0x134] sm:$0xf0]  ;;  %v2488_v36 = vld [vmem:[#allocation7 + $0x2a0] sm:$0xf]  ;;  %v2117_v43 = vor.u32 %v2996_v31, %v2114_v32  ;;  %v2272_v45 = vld [vmem:[#allocation7 + $0xf0] sm:$0xf] }
  0x21   :  { %v3093_v37 = vld [vmem:[#allocation7 + $0x2b4] sm:$0xf0]  ;;  %v2104_v39 = vld [vmem:[#allocation2 + $0x20] sm:$0xf]  ;;  %845 = vmatpush.bf16.msra.mxu3 %v2513_v33  ;;  %v2297_v41 = vor.u32 %v3045_v35, %v2296_v34  ;;  %v2994_v44 = vld [vmem:[#allocation2 + $0x24] sm:$0xf] }
  0x22   :  { %214 = vmatpush.bf16.msra.mxu0 %v2129_v16  ;;  %v2489_v42 = vor.u32 %v3093_v37, %v2488_v36  ;;  %v3039_v46 = vld [vmem:[#allocation7 + $0x104] sm:$0xf0]  ;;  %v2464_v48 = vld [vmem:[#allocation7 + $0x270] sm:$0xf]  ;;  %v2105_v51 = vor.u32 %v2995_v40, %v2104_v39  ;;  %v2248_v54 = vld [vmem:[#allocation7 + $0xc0] sm:$0xf] }
  0x23   :  { %227 = vmatpush.bf16.msra.mxu1 %v2133_v17  ;;  %v2106_v47 = vld [vmem:[#allocation2 + $0x28] sm:$0xf0]  ;;  %v2273_v50 = vor.u32 %v3039_v46, %v2272_v45  ;;  %v2096_v52 = vld [vmem:[#allocation2 + $0x10] sm:$0xf]  ;;  %v3033_v55 = vld [vmem:[#allocation7 + $0xd4] sm:$0xf0] }
  0x24   :  { %v3087_v49 = vld [vmem:[#allocation7 + $0x284] sm:$0xf0]  ;;  %833 = vmatpush.bf16.msra.mxu2 %v2297_v41  ;;  %v2109_v56 = vor.u32 %v2994_v44, %v2106_v47  ;;  %v2993_v57 = vld [vmem:[#allocation2 + $0x14] sm:$0xf0]  ;;  %v2440_v58 = vld [vmem:[#allocation7 + $0x240] sm:$0xf]  ;;  %v2249_v63 = vor.u32 %v3033_v55, %v2248_v54 }
  0x25   :  { %846 = vmatpush.bf16.msra.mxu3 %v2489_v42  ;;  %v2465_v53 = vor.u32 %v3087_v49, %v2464_v48  ;;  %v3081_v59 = vld [vmem:[#allocation7 + $0x254] sm:$0xf0]  ;;  %v2992_v60 = vld [vmem:[#allocation2 + $0x14] sm:$0xf]  ;;  %v2088_v62 = vld [vmem:[#allocation2] sm:$0xf]  ;;  %v2097_v0 = vor.u32 %v2993_v57, %v2096_v52 }
  0x26   :  { %215 = vmatpush.bf16.msra.mxu0 %v2121_v22  ;;  %v2098_v61 = vld [vmem:[#allocation2 + $0x18] sm:$0xf0]  ;;  %v2991_v1 = vld [vmem:[#allocation2 + $0x4] sm:$0xf0]  ;;  %v2441_v2 = vor.u32 %v3081_v59, %v2440_v58  ;;  %v2224_v3 = vld [vmem:[#allocation7 + $0x90] sm:$0xf] }
  0x27   :  { %228 = vmatpush.bf16.msra.mxu1 %v2125_v26  ;;  %v3027_v4 = vld [vmem:[#allocation7 + $0xa4] sm:$0xf0]  ;;  %v2101_v5 = vor.u32 %v2992_v60, %v2098_v61  ;;  %v2990_v6 = vld [vmem:[#allocation2 + $0x4] sm:$0xf]  ;;  %v2416_v7 = vld [vmem:[#allocation7 + $0x210] sm:$0xf]  ;;  %v2089_v15 = vor.u32 %v2991_v1, %v2088_v62 }
  0x28   :  { %834 = vmatpush.bf16.msra.mxu2 %v2273_v50  ;;  %v3075_v8 = vld [vmem:[#allocation7 + $0x224] sm:$0xf0]  ;;  %v3048_v10 = vld [vmem:[#allocation7 + $0x154] sm:$0xf]  ;;  %v2322_v11 = vld [vmem:[#allocation7 + $0x168] sm:$0xf0]  ;;  %v2225_v14 = vor.u32 %v3027_v4, %v2224_v3 }
  0x29   :  { %847 = vmatpush.bf16.msra.mxu3 %v2465_v53  ;;  %v2090_v9 = vld [vmem:[#allocation2 + $0x8] sm:$0xf0]  ;;  %v3096_v12 = vld [vmem:[#allocation7 + $0x2d4] sm:$0xf]  ;;  %v2417_v16 = vor.u32 %v3075_v8, %v2416_v7  ;;  %v2200_v17 = vld [vmem:[#allocation7 + $0x60] sm:$0xf]  ;;  %v2325_v20 = vor.u32 %v3048_v10, %v2322_v11 }
  0x2a   :  { %216 = vmatpush.bf16.msra.mxu0 %v2113_v38  ;;  %v2514_v13 = vld [vmem:[#allocation7 + $0x2e8] sm:$0xf0]  ;;  %v3021_v18 = vld [vmem:[#allocation7 + $0x74] sm:$0xf0]  ;;  %v2093_v19 = vor.u32 %v2990_v6, %v2090_v9  ;;  %v2392_v21 = vld [vmem:[#allocation7 + $0x1e0] sm:$0xf] }
  0x2b   :  { %229 = vmatpush.bf16.msra.mxu1 %v2117_v43  ;;  %v3069_v22 = vld [vmem:[#allocation7 + $0x1f4] sm:$0xf0]  ;;  %v2517_v23 = vor.u32 %v3096_v12, %v2514_v13  ;;  %v3042_v24 = vld [vmem:[#allocation7 + $0x124] sm:$0xf]  ;;  %v2298_v25 = vld [vmem:[#allocation7 + $0x138] sm:$0xf0]  ;;  %v2201_v28 = vor.u32 %v3021_v18, %v2200_v17 }
  0x2c   :  { %835 = vmatpush.bf16.msra.mxu2 %v2249_v63  ;;  %v3090_v26 = vld [vmem:[#allocation7 + $0x2a4] sm:$0xf]  ;;  %v2490_v27 = vld [vmem:[#allocation7 + $0x2b8] sm:$0xf0]  ;;  %v2393_v30 = vor.u32 %v3069_v22, %v2392_v21  ;;  %v2176_v31 = vld [vmem:[#allocation7 + $0x30] sm:$0xf]  ;;  %v2301_v33 = vor.u32 %v3042_v24, %v2298_v25 }
  0x2d   :  { %848 = vmatpush.bf16.msra.mxu3 %v2441_v2  ;;  %v109_v29 = vld [vmem:[%s3629_s0] sm:$0xf]  ;;  %v3015_v32 = vld [vmem:[#allocation7 + $0x44] sm:$0xf0]  ;;  %v2368_v34 = vld [vmem:[#allocation7 + $0x1b0] sm:$0xf]  ;;  %v2493_v36 = vor.u32 %v3090_v26, %v2490_v27 }
  0x2e   :  { %217 = vmatpush.bf16.msra.mxu0 %v2105_v51  ;;  %v3063_v35 = vld [vmem:[#allocation7 + $0x1c4] sm:$0xf0]  ;;  %v3036_v37 = vld [vmem:[#allocation7 + $0xf4] sm:$0xf]  ;;  %v2274_v38 = vld [vmem:[#allocation7 + $0x108] sm:$0xf0]  ;;  %v2177_v41 = vor.u32 %v3015_v32, %v2176_v31 }
  0x2f   :  { %230 = vmatpush.bf16.msra.mxu1 %v2109_v56  ;;  %v3084_v39 = vld [vmem:[#allocation7 + $0x274] sm:$0xf]  ;;  %v2466_v40 = vld [vmem:[#allocation7 + $0x288] sm:$0xf0]  ;;  %v3030_v42 = vld [vmem:[#allocation7 + $0xc4] sm:$0xf]  ;;  %v2369_v43 = vor.u32 %v3063_v35, %v2368_v34  ;;  %v2277_v47 = vor.u32 %v3036_v37, %v2274_v38 }
  0x30   :  { %836 = vmatpush.bf16.msra.mxu2 %v2225_v14  ;;  %v2152_v44 = vld [vmem:[#allocation7] sm:$0xf]  ;;  %v3009_v45 = vld [vmem:[#allocation7 + $0x14] sm:$0xf0]  ;;  %v3052_v50 = vld [vmem:[#allocation7 + $0x16c] sm:$0xf0]  ;;  %v2469_v51 = vor.u32 %v3084_v39, %v2466_v40 }
  0x31   :  { %849 = vmatpush.bf16.msra.mxu3 %v2417_v16  ;;  %v2344_v46 = vld [vmem:[#allocation7 + $0x180] sm:$0xf]  ;;  %v3057_v48 = vld [vmem:[#allocation7 + $0x194] sm:$0xf0]  ;;  %v2250_v52 = vld [vmem:[#allocation7 + $0xd8] sm:$0xf0]  ;;  %v2153_v57 = vor.u32 %v3009_v45, %v2152_v44 }
  0x32   :  { %218 = vmatpush.bf16.msra.mxu0 %v2097_v0  ;;  %v2328_v49 = vld [vmem:[#allocation7 + $0x158] sm:$0xf]  ;;  %v3100_v54 = vld [vmem:[#allocation7 + $0x2ec] sm:$0xf0]  ;;  %v3078_v55 = vld [vmem:[#allocation7 + $0x244] sm:$0xf]  ;;  %v2345_v58 = vor.u32 %v3057_v48, %v2344_v46  ;;  %v2253_v60 = vor.u32 %v3030_v42, %v2250_v52 }
  0x33   :  { %231 = vmatpush.bf16.msra.mxu1 %v2101_v5  ;;  %v2520_v53 = vld [vmem:[#allocation7 + $0x2d8] sm:$0xf]  ;;  %v2442_v56 = vld [vmem:[#allocation7 + $0x258] sm:$0xf0]  ;;  %v2329_v59 = vor.u32 %v3052_v50, %v2328_v49  ;;  %v3024_v61 = vld [vmem:[#allocation7 + $0x94] sm:$0xf] }
  0x34   :  { %837 = vmatpush.bf16.msra.mxu2 %v2201_v28  ;;  %v2521_v62 = vor.u32 %v3100_v54, %v2520_v53  ;;  %v2304_v63 = vld [vmem:[#allocation7 + $0x128] sm:$0xf]  ;;  %v3046_v0 = vld [vmem:[#allocation7 + $0x13c] sm:$0xf0]  ;;  %v2445_v1 = vor.u32 %v3078_v55, %v2442_v56  ;;  %v2226_v2 = vld [vmem:[#allocation7 + $0xa8] sm:$0xf0] }
  0x35   :  { %850 = vmatpush.bf16.msra.mxu3 %v2393_v30  ;;  %v2496_v3 = vld [vmem:[#allocation7 + $0x2a8] sm:$0xf]  ;;  %v3094_v4 = vld [vmem:[#allocation7 + $0x2bc] sm:$0xf0]  ;;  %v3072_v5 = vld [vmem:[#allocation7 + $0x214] sm:$0xf]  ;;  %v2305_v8 = vor.u32 %v3046_v0, %v2304_v63  ;;  %v2229_v9 = vor.u32 %v3024_v61, %v2226_v2 }
  0x36   :  { %219 = vmatpush.bf16.msra.mxu0 %v2089_v15  ;;  %v2418_v6 = vld [vmem:[#allocation7 + $0x228] sm:$0xf0]  ;;  %v3018_v7 = vld [vmem:[#allocation7 + $0x64] sm:$0xf]  ;;  %v2202_v10 = vld [vmem:[#allocation7 + $0x78] sm:$0xf0]  ;;  %v2497_v11 = vor.u32 %v3094_v4, %v2496_v3 }
  0x37   :  { %232 = vmatpush.bf16.msra.mxu1 %v2093_v19  ;;  %v2280_v12 = vld [vmem:[#allocation7 + $0xf8] sm:$0xf]  ;;  %v3040_v13 = vld [vmem:[#allocation7 + $0x10c] sm:$0xf0]  ;;  %v2421_v14 = vor.u32 %v3072_v5, %v2418_v6  ;;  %v3066_v17 = vld [vmem:[#allocation7 + $0x1e4] sm:$0xf] }
  0x38   :  { %838 = vmatpush.bf16.msra.mxu2 %v2177_v41  ;;  %v2472_v15 = vld [vmem:[#allocation7 + $0x278] sm:$0xf]  ;;  %v3088_v16 = vld [vmem:[#allocation7 + $0x28c] sm:$0xf0]  ;;  %v2394_v18 = vld [vmem:[#allocation7 + $0x1f8] sm:$0xf0]  ;;  %v2281_v19 = vor.u32 %v3040_v13, %v2280_v12 }
  0x39   :  { %220 = vmatmul.bf16.vlgmr.msra.gmra.mxu0 %v109_v29  ;;  %851 = vmatpush.bf16.msra.mxu3 %v2369_v43  ;;  %v3012_v21 = vld [vmem:[#allocation7 + $0x34] sm:$0xf]  ;;  %v2473_v22 = vor.u32 %v3088_v16, %v2472_v15  ;;  %v3034_v24 = vld [vmem:[#allocation7 + $0xdc] sm:$0xf0]  ;;  %v2397_v25 = vor.u32 %v3066_v17, %v2394_v18  ;;  %v2178_v26 = vld [vmem:[#allocation7 + $0x48] sm:$0xf0] }
  0x3a   :  { %858 = vmatpush.bf16.msrb.mxu0 %v2325_v20  ;;  %233 = vmatmul.bf16.vlgmr.msra.gmra.mxu1 %v109_v29  ;;  %v2205_v20 = vor.u32 %v3018_v7, %v2202_v10  ;;  %v2448_v27 = vld [vmem:[#allocation7 + $0x248] sm:$0xf]  ;;  %v3082_v28 = vld [vmem:[#allocation7 + $0x25c] sm:$0xf0]  ;;  %v3060_v29 = vld [vmem:[#allocation7 + $0x1b4] sm:$0xf] }
  0x3b   :  { %871 = vmatpush.bf16.msrb.mxu1 %v2517_v23  ;;  %v2256_v23 = vld [vmem:[#allocation7 + $0xc8] sm:$0xf]  ;;  %v2370_v30 = vld [vmem:[#allocation7 + $0x1c8] sm:$0xf0]  ;;  %v3006_v31 = vld [vmem:[#allocation7 + $0x4] sm:$0xf]  ;;  %v2449_v35 = vor.u32 %v3082_v28, %v2448_v27 }
  0x3c   :  { %839 = vmatpush.bf16.msra.mxu2 %v2153_v57  ;;  %v2257_v32 = vor.u32 %v3034_v24, %v2256_v23  ;;  %v2154_v34 = vld [vmem:[#allocation7 + $0x18] sm:$0xf0]  ;;  %v3028_v37 = vld [vmem:[#allocation7 + $0xac] sm:$0xf0]  ;;  %v2373_v38 = vor.u32 %v3060_v29, %v2370_v30  ;;  %v3054_v39 = vld [vmem:[#allocation7 + $0x184] sm:$0xf] }
  0x3d   :  { %852 = vmatpush.bf16.msra.mxu3 %v2345_v58  ;;  %v2424_v40 = vld [vmem:[#allocation7 + $0x218] sm:$0xf]  ;;  %v3076_v41 = vld [vmem:[#allocation7 + $0x22c] sm:$0xf0]  ;;  %v2346_v42 = vld [vmem:[#allocation7 + $0x198] sm:$0xf0]  ;;  %v2157_v48 = vor.u32 %v3006_v31, %v2154_v34 }
  0x3e   :  { %859 = vmatpush.bf16.msrb.mxu0 %v2301_v33  ;;  %v2181_v33 = vor.u32 %v3012_v21, %v2178_v26  ;;  %v3049_v43 = vld [vmem:[#allocation7 + $0x15c] sm:$0xf]  ;;  %v2330_v44 = vld [vmem:[#allocation7 + $0x170] sm:$0xf0]  ;;  %v2425_v49 = vor.u32 %v3076_v41, %v2424_v40  ;;  %v2208_v50 = vld [vmem:[#allocation7 + $0x68] sm:$0xf]  ;;  %v2349_v52 = vor.u32 %v3054_v39, %v2346_v42 }
  0x3f   :  { %872 = vmatpush.bf16.msrb.mxu1 %v2493_v36  ;;  %v2232_v36 = vld [vmem:[#allocation7 + $0x98] sm:$0xf]  ;;  %v3097_v45 = vld [vmem:[#allocation7 + $0x2dc] sm:$0xf]  ;;  %v2522_v46 = vld [vmem:[#allocation7 + $0x2f0] sm:$0xf0]  ;;  %v2333_v53 = vor.u32 %v3049_v43, %v2330_v44 }
  0x40   :  { %884 = vmatpush.bf16.msrb.mxu2 %v2329_v59  ;;  %v2400_v54 = vld [vmem:[#allocation7 + $0x1e8] sm:$0xf]  ;;  %v3070_v55 = vld [vmem:[#allocation7 + $0x1fc] sm:$0xf0]  ;;  %v2525_v56 = vor.u32 %v3097_v45, %v2522_v46  ;;  %v3043_v57 = vld [vmem:[#allocation7 + $0x12c] sm:$0xf] }
  0x41   :  { %897 = vmatpush.bf16.msrb.mxu3 %v2521_v62  ;;  %v2306_v58 = vld [vmem:[#allocation7 + $0x140] sm:$0xf0]  ;;  %v3091_v59 = vld [vmem:[#allocation7 + $0x2ac] sm:$0xf]  ;;  %v2401_v62 = vor.u32 %v3070_v55, %v2400_v54  ;;  %v2282_v2 = vld [vmem:[#allocation7 + $0x110] sm:$0xf0] }
  0x42   :  { %860 = vmatpush.bf16.msrb.mxu0 %v2277_v47  ;;  %v2233_v47 = vor.u32 %v3028_v37, %v2232_v36  ;;  %v2309_v63 = vor.u32 %v3043_v57, %v2306_v58  ;;  %v3085_v3 = vld [vmem:[#allocation7 + $0x27c] sm:$0xf]  ;;  %v2474_v4 = vld [vmem:[#allocation7 + $0x290] sm:$0xf0]  ;;  %v3031_v7 = vld [vmem:[#allocation7 + $0xcc] sm:$0xf] }
  0x43   :  { %873 = vmatpush.bf16.msrb.mxu1 %v2469_v51  ;;  %v3022_v51 = vld [vmem:[#allocation7 + $0x7c] sm:$0xf0]  ;;  %v2477_v6 = vor.u32 %v3085_v3, %v2474_v4  ;;  %v2450_v10 = vld [vmem:[#allocation7 + $0x260] sm:$0xf0]  ;;  %v3025_v13 = vld [vmem:[#allocation7 + $0x9c] sm:$0xf] }
  0x44   :  { %885 = vmatpush.bf16.msrb.mxu2 %v2305_v8  ;;  %v2209_v61 = vor.u32 %v3022_v51, %v2208_v50  ;;  %v2258_v8 = vld [vmem:[#allocation7 + $0xe0] sm:$0xf0]  ;;  %v3073_v15 = vld [vmem:[#allocation7 + $0x21c] sm:$0xf]  ;;  %v2426_v16 = vld [vmem:[#allocation7 + $0x230] sm:$0xf0] }
  0x45   :  { %898 = vmatpush.bf16.msrb.mxu3 %v2497_v11  ;;  %v2261_v11 = vor.u32 %v3031_v7, %v2258_v8  ;;  %v2429_v18 = vor.u32 %v3073_v15, %v2426_v16  ;;  %v3067_v21 = vld [vmem:[#allocation7 + $0x1ec] sm:$0xf]  ;;  %v3016_v26 = vld [vmem:[#allocation7 + $0x4c] sm:$0xf0]  ;;  %v2376_v27 = vld [vmem:[#allocation7 + $0x1b8] sm:$0xf] }
  0x46   :  { %861 = vmatpush.bf16.msrb.mxu0 %v2253_v60  ;;  %v2498_v60 = vld [vmem:[#allocation7 + $0x2c0] sm:$0xf0]  ;;  %v3064_v29 = vld [vmem:[#allocation7 + $0x1cc] sm:$0xf0]  ;;  %v3013_v30 = vld [vmem:[#allocation7 + $0x3c] sm:$0xf] }
  0x47   :  { %874 = vmatpush.bf16.msrb.mxu1 %v2445_v1  ;;  %v2501_v0 = vor.u32 %v3091_v59, %v2498_v60  ;;  %v3037_v1 = vld [vmem:[#allocation7 + $0xfc] sm:$0xf]  ;;  %v2186_v31 = vld [vmem:[#allocation7 + $0x50] sm:$0xf0]  ;;  %v2160_v37 = vld [vmem:[#allocation7 + $0x8] sm:$0xf] }
  0x48   :  { %886 = vmatpush.bf16.msrb.mxu2 %v2281_v19  ;;  %v2285_v5 = vor.u32 %v3037_v1, %v2282_v2  ;;  %v3019_v19 = vld [vmem:[#allocation7 + $0x6c] sm:$0xf]  ;;  %v3061_v34 = vld [vmem:[#allocation7 + $0x1bc] sm:$0xf]  ;;  %v2352_v39 = vld [vmem:[#allocation7 + $0x188] sm:$0xf] }
  0x49   :  { %899 = vmatpush.bf16.msrb.mxu3 %v2473_v22  ;;  %v2402_v22 = vld [vmem:[#allocation7 + $0x200] sm:$0xf0]  ;;  %v3058_v41 = vld [vmem:[#allocation7 + $0x19c] sm:$0xf0]  ;;  %v3007_v42 = vld [vmem:[#allocation7 + $0xc] sm:$0xf] }
  0x4a   :  { %862 = vmatpush.bf16.msrb.mxu0 %v2229_v9  ;;  %v3079_v9 = vld [vmem:[#allocation7 + $0x24c] sm:$0xf]  ;;  %v2405_v24 = vor.u32 %v3067_v21, %v2402_v22  ;;  %v2162_v43 = vld [vmem:[#allocation7 + $0x20] sm:$0xf0]  ;;  %v2353_v44 = vor.u32 %v3058_v41, %v2352_v39  ;;  %v2336_v55 = vld [vmem:[#allocation7 + $0x160] sm:$0xf] }
  0x4b   :  { %875 = vmatpush.bf16.msrb.mxu1 %v2421_v14  ;;  %v2453_v12 = vor.u32 %v3079_v9, %v2450_v10  ;;  %v2234_v14 = vld [vmem:[#allocation7 + $0xb0] sm:$0xf0]  ;;  %v2165_v45 = vor.u32 %v3007_v42, %v2162_v43  ;;  %v3055_v46 = vld [vmem:[#allocation7 + $0x18c] sm:$0xf]  ;;  %v2528_v57 = vld [vmem:[#allocation7 + $0x2e0] sm:$0xf] }
  0x4c   :  { %887 = vmatpush.bf16.msrb.mxu2 %v2257_v32  ;;  %v2237_v17 = vor.u32 %v3025_v13, %v2234_v14  ;;  %v2377_v32 = vor.u32 %v3064_v29, %v2376_v27  ;;  %v3101_v59 = vld [vmem:[#allocation7 + $0x2f4] sm:$0xf0]  ;;  %v3050_v60 = vld [vmem:[#allocation7 + $0x164] sm:$0xf]  ;;  %v2504_v10 = vld [vmem:[#allocation7 + $0x2b0] sm:$0xf] }
  0x4d   :  { %900 = vmatpush.bf16.msrb.mxu3 %v2449_v35  ;;  %v2378_v35 = vld [vmem:[#allocation7 + $0x1d0] sm:$0xf0]  ;;  %v2529_v4 = vor.u32 %v3101_v59, %v2528_v57  ;;  %v2314_v13 = vld [vmem:[#allocation7 + $0x148] sm:$0xf0]  ;;  %v3041_v21 = vld [vmem:[#allocation7 + $0x114] sm:$0xf0] }
  0x4e   :  { %863 = vmatpush.bf16.msrb.mxu0 %v2205_v20  ;;  %v2210_v20 = vld [vmem:[#allocation7 + $0x80] sm:$0xf0]  ;;  %v2381_v36 = vor.u32 %v3061_v34, %v2378_v35  ;;  %v3092_v14 = vld [vmem:[#allocation7 + $0x2b4] sm:$0xf]  ;;  %v2506_v15 = vld [vmem:[#allocation7 + $0x2c8] sm:$0xf0] }
  0x4f   :  { %876 = vmatpush.bf16.msrb.mxu1 %v2397_v25  ;;  %v2213_v23 = vor.u32 %v3019_v19, %v2210_v20  ;;  %v2184_v25 = vld [vmem:[#allocation7 + $0x38] sm:$0xf]  ;;  %v2288_v20 = vld [vmem:[#allocation7 + $0x100] sm:$0xf]  ;;  %v2290_v27 = vld [vmem:[#allocation7 + $0x118] sm:$0xf0] }
  0x50   :  { %888 = vmatpush.bf16.msrb.mxu2 %v2233_v47  ;;  %v2185_v28 = vor.u32 %v3016_v26, %v2184_v25  ;;  %v2354_v47 = vld [vmem:[#allocation7 + $0x1a0] sm:$0xf0]  ;;  %v3089_v25 = vld [vmem:[#allocation7 + $0x294] sm:$0xf0]  ;;  %v2482_v29 = vld [vmem:[#allocation7 + $0x298] sm:$0xf0] }
  0x51   :  { %901 = vmatpush.bf16.msrb.mxu3 %v2425_v49  ;;  %v126_v49 = vld [vmem:[#allocation5] sm:$0x3]  ;;  %v3038_v26 = vld [vmem:[#allocation7 + $0x104] sm:$0xf]  ;;  %v2266_v39 = vld [vmem:[#allocation7 + $0xe8] sm:$0xf0] }
  0x52   :  { %864 = vmatpush.bf16.msrb.mxu0 %v2181_v33  ;;  %v2189_v33 = vor.u32 %v3013_v30, %v2186_v31  ;;  %v128_v50 = vperm.slane %v126_v49, 0  ;;  %v129_v51 = vperm.slane %v126_v49, 1  ;;  %v2289_v30 = vor.u32 %v3041_v21, %v2288_v20  ;;  %v2458_v41 = vld [vmem:[#allocation7 + $0x268] sm:$0xf0]  ;;  %v3077_v49 = vld [vmem:[#allocation7 + $0x234] sm:$0xf0] }
  0x53   :  { %877 = vmatpush.bf16.msrb.mxu1 %v2373_v38  ;;  %v3010_v38 = vld [vmem:[#allocation7 + $0x1c] sm:$0xf0]  ;;  %v2293_v34 = vor.u32 %v3038_v26, %v2290_v27  ;;  %v3023_v57 = vld [vmem:[#allocation7 + $0x84] sm:$0xf0]  ;;  %v3056_v26 = vld [vmem:[#allocation7 + $0x194] sm:$0xf] }
  0x54   :  { %889 = vmatpush.bf16.msrb.mxu2 %v2209_v61  ;;  %v2161_v40 = vor.u32 %v3010_v38, %v2160_v37  ;;  %v2338_v61 = vld [vmem:[#allocation7 + $0x178] sm:$0xf0]  ;;  %v3083_v37 = vld [vmem:[#allocation7 + $0x264] sm:$0xf0]  ;;  %v3032_v38 = vld [vmem:[#allocation7 + $0xd4] sm:$0xf] }
  0x55   :  { %902 = vmatpush.bf16.msrb.mxu3 %v2401_v62  ;;  %v2341_v8 = vor.u32 %v3050_v60, %v2338_v61  ;;  %v2408_v60 = vld [vmem:[#allocation7 + $0x1f0] sm:$0xf]  ;;  %v3071_v61 = vld [vmem:[#allocation7 + $0x204] sm:$0xf0]  ;;  %v2362_v27 = vld [vmem:[#allocation7 + $0x1a8] sm:$0xf0] }
  0x56   :  { %865 = vmatpush.bf16.msrb.mxu0 %v2157_v48  ;;  %v2357_v48 = vor.u32 %v3055_v46, %v2354_v47  ;;  %v2269_v46 = vor.u32 %v3032_v38, %v2266_v39  ;;  %v2876_v38 = vld [vmem:[#allocation8 + $0x2a0] sm:$0xf]  ;;  %v3189_v39 = vld [vmem:[#allocation8 + $0x2b4] sm:$0xf0]  ;;  %s3440_s19 = smov [#allocation11]   ;;  %s2074_s22 = sshll.u32 %s3638_s9, 4  ;;  %s2075_s22 = int_to_ptr.hbm [resolvable:$true] %s2074_s22 }
  0x57   :  { %878 = vmatpush.bf16.msrb.mxu1 %v2349_v52  ;;  %s2072_s20 = sshll.u32 %s3440_s19, 4  ;;  %s2073_s20 = int_to_ptr.vmem [resolvable:$true] %s2072_s20 }
  0x58   :  { %890 = vmatpush.bf16.msrb.mxu2 %v2185_v28  ;;  %v3086_v28 = vld [vmem:[#allocation7 + $0x284] sm:$0xf] }
  0x59   :  { %903 = vmatpush.bf16.msrb.mxu3 %v2377_v32  ;;  %v2264_v32 = vld [vmem:[#allocation7 + $0xd0] sm:$0xf]  ;;  %v2485_v35 = vor.u32 %v3086_v28, %v2482_v29 }
  0x5a   :  { %910 = vmatpush.bf16.msra.mxu0 %v2333_v53 }
  0x5b   :  { %923 = vmatpush.bf16.msra.mxu1 %v2525_v56  ;;  %v3053_v56 = vld [vmem:[#allocation7 + $0x174] sm:$0xf0] }
  0x5c   :  { %891 = vmatpush.bf16.msrb.mxu2 %v2161_v40  ;;  %v2337_v3 = vor.u32 %v3053_v56, %v2336_v55  ;;  %v3080_v40 = vld [vmem:[#allocation7 + $0x254] sm:$0xf]  ;;  %v2216_v56 = vld [vmem:[#allocation7 + $0x70] sm:$0xf] }
  0x5d   :  { %904 = vmatpush.bf16.msrb.mxu3 %v2353_v44  ;;  %v2240_v44 = vld [vmem:[#allocation7 + $0xa0] sm:$0xf]  ;;  %v2461_v47 = vor.u32 %v3080_v40, %v2458_v41  ;;  %v3186_v40 = vld [vmem:[#allocation8 + $0x2a4] sm:$0xf]  ;;  %v2877_v41 = vor.u32 %v3189_v39, %v2876_v38  ;;  %v2614_v38 = vld [vmem:[#allocation8 + $0xa8] sm:$0xf0] }
  0x5e   :  { %911 = vmatpush.bf16.msra.mxu0 %v2309_v63  ;;  %v3098_v63 = vld [vmem:[#allocation7 + $0x2e4] sm:$0xf] }
  0x5f   :  { %924 = vmatpush.bf16.msra.mxu1 %v2501_v0  ;;  %v2530_v0 = vld [vmem:[#allocation7 + $0x2f8] sm:$0xf0] }
  0x60   :  { %v2533_v9 = vor.u32 %v3098_v63, %v2530_v0  ;;  %v2218_v63 = vld [vmem:[#allocation7 + $0x88] sm:$0xf0]  ;;  %v3068_v0 = vld [vmem:[#allocation7 + $0x1f4] sm:$0xf] }
  0x62   :  { %912 = vmatpush.bf16.msra.mxu0 %v2285_v5  ;;  %v2312_v5 = vld [vmem:[#allocation7 + $0x130] sm:$0xf] }
  0x63   :  { %925 = vmatpush.bf16.msra.mxu1 %v2477_v6  ;;  %v3047_v6 = vld [vmem:[#allocation7 + $0x144] sm:$0xf0] }
  0x66   :  { %913 = vmatpush.bf16.msra.mxu0 %v2261_v11  ;;  %v3095_v11 = vld [vmem:[#allocation7 + $0x2c4] sm:$0xf0] }
  0x67   :  { %926 = vmatpush.bf16.msra.mxu1 %v2453_v12  ;;  %v3044_v12 = vld [vmem:[#allocation7 + $0x134] sm:$0xf]  ;;  %v2505_v19 = vor.u32 %v3095_v11, %v2504_v10  ;;  %v2384_v10 = vld [vmem:[#allocation7 + $0x1c0] sm:$0xf]  ;;  %v3065_v11 = vld [vmem:[#allocation7 + $0x1d4] sm:$0xf0] }
  0x68   :  { %v2317_v22 = vor.u32 %v3044_v12, %v2314_v13  ;;  %v3014_v12 = vld [vmem:[#allocation7 + $0x44] sm:$0xf]  ;;  %v2194_v13 = vld [vmem:[#allocation7 + $0x58] sm:$0xf0] }
  0x69   :  { %v2197_v20 = vor.u32 %v3014_v12, %v2194_v13  ;;  %v3171_v12 = vld [vmem:[#allocation8 + $0x224] sm:$0xf0]  ;;  %v3168_v13 = vld [vmem:[#allocation8 + $0x214] sm:$0xf] }
  0x6a   :  { %914 = vmatpush.bf16.msra.mxu0 %v2237_v17 }
  0x6b   :  { %927 = vmatpush.bf16.msra.mxu1 %v2429_v18  ;;  %v2313_v18 = vor.u32 %v3047_v6, %v2312_v5  ;;  %v2192_v5 = vld [vmem:[#allocation7 + $0x40] sm:$0xf]  ;;  %v3017_v6 = vld [vmem:[#allocation7 + $0x54] sm:$0xf0] }
  0x6e   :  { %915 = vmatpush.bf16.msra.mxu0 %v2213_v23  ;;  %v2509_v23 = vor.u32 %v3092_v14, %v2506_v15  ;;  %v3062_v14 = vld [vmem:[#allocation7 + $0x1c4] sm:$0xf]  ;;  %v2386_v15 = vld [vmem:[#allocation7 + $0x1d8] sm:$0xf0] }
  0x6f   :  { %928 = vmatpush.bf16.msra.mxu1 %v2405_v24  ;;  %v2480_v24 = vld [vmem:[#allocation7 + $0x280] sm:$0xf]  ;;  %v2389_v21 = vor.u32 %v3062_v14, %v2386_v15 }
  0x70   :  { %v2481_v31 = vor.u32 %v3089_v25, %v2480_v24  ;;  %v3008_v24 = vld [vmem:[#allocation7 + $0x14] sm:$0xf]  ;;  %v2170_v25 = vld [vmem:[#allocation7 + $0x28] sm:$0xf0] }
  0x72   :  { %916 = vmatpush.bf16.msra.mxu0 %v2189_v33  ;;  %v3035_v33 = vld [vmem:[#allocation7 + $0xe4] sm:$0xf0] }
  0x73   :  { %929 = vmatpush.bf16.msra.mxu1 %v2381_v36  ;;  %v2456_v36 = vld [vmem:[#allocation7 + $0x250] sm:$0xf]  ;;  %v2265_v42 = vor.u32 %v3035_v33, %v2264_v32  ;;  %v3195_v33 = vld [vmem:[#allocation8 + $0x2e4] sm:$0xf0] }
  0x74   :  { %v2457_v43 = vor.u32 %v3083_v37, %v2456_v36  ;;  %v2900_v32 = vld [vmem:[#allocation8 + $0x2d0] sm:$0xf]  ;;  %v2902_v36 = vld [vmem:[#allocation8 + $0x2e8] sm:$0xf0] }
  0x76   :  { %917 = vmatpush.bf16.msra.mxu0 %v2165_v45  ;;  %v3029_v45 = vld [vmem:[#allocation7 + $0xb4] sm:$0xf0] }
  0x77   :  { %930 = vmatpush.bf16.msra.mxu1 %v2357_v48  ;;  %v2432_v48 = vld [vmem:[#allocation7 + $0x220] sm:$0xf] }
  0x78   :  { %v2433_v55 = vor.u32 %v3077_v49, %v2432_v48  ;;  %v2852_v48 = vld [vmem:[#allocation8 + $0x270] sm:$0xf]  ;;  %v3183_v49 = vld [vmem:[#allocation8 + $0x284] sm:$0xf0] }
  0xb6   :  { %v221_v52 = vpop.f32.mrf.mxu0 }
  0xb7   :  { %v222_v53 = vadd.f32 %v221_v52, %v128_v50  ;;  %v234_v54 = vpop.f32.mrf.mxu1  ;;  %v3026_v50 = vld [vmem:[#allocation7 + $0xa4] sm:$0xf] }
  0xb8   :  { %v235_v58 = vadd.f32 %v234_v54, %v129_v51  ;;  %v2242_v51 = vld [vmem:[#allocation7 + $0xb8] sm:$0xf0]  ;;  %v3074_v52 = vld [vmem:[#allocation7 + $0x224] sm:$0xf]  ;;  %v2241_v54 = vor.u32 %v3029_v45, %v2240_v44  ;;  %v2708_v44 = vld [vmem:[#allocation8 + $0x150] sm:$0xf] }
  0xb9   :  { %v238_v62 = vmax.f32 %v222_v53, 0.0  ;;  %v2434_v53 = vld [vmem:[#allocation7 + $0x238] sm:$0xf0]  ;;  %v3147_v45 = vld [vmem:[#allocation8 + $0x164] sm:$0xf0] }
  0xba   :  { %v239_v1 = vmax.f32 %v235_v58, 0.0  ;;  %v2245_v58 = vor.u32 %v3026_v50, %v2242_v51  ;;  %v2437_v59 = vor.u32 %v3074_v52, %v2434_v53  ;;  %v3180_v50 = vld [vmem:[#allocation8 + $0x274] sm:$0xf]  ;;  %v2853_v51 = vor.u32 %v3183_v49, %v2852_v48  ;;  %v2854_v52 = vld [vmem:[#allocation8 + $0x288] sm:$0xf0] }
  0xbb   :  { %v3509_v2 = vpack.c.bf16 %v238_v62, %v238_v62  ;;  %v3020_v62 = vld [vmem:[#allocation7 + $0x74] sm:$0xf]  ;;  %v2857_v53 = vor.u32 %v3180_v50, %v2854_v52  ;;  %v3114_v48 = vld [vmem:[#allocation8 + $0x64] sm:$0xf]  ;;  %v2590_v52 = vld [vmem:[#allocation8 + $0x78] sm:$0xf0] }
  0xbc   :  { %v3511_v7 = vpack.c.bf16 %v239_v1, %v239_v1  ;;  %v2410_v1 = vld [vmem:[#allocation7 + $0x208] sm:$0xf0] }
  0xbd   :  { %840 = vmatmul.bf16.vlgmr.msra.gmra.mxu2 %v3509_v2  ;;  %866 = vmatmul.bf16.vlgmr.msrb.gmra.mxu0 %v3509_v2 }
  0xbe   :  { %853 = vmatmul.bf16.vlgmr.msra.gmra.mxu3 %v3511_v7  ;;  %879 = vmatmul.bf16.vlgmr.msrb.gmra.mxu1 %v3511_v7  ;;  %v223_v16 = vpop.f32.mrf.mxu0 }
  0xbf   :  { %v236_v17 = vpop.f32.mrf.mxu1  ;;  %936 = vmatpush.bf16.msra.mxu2 %v2337_v3  ;;  %949 = vmatpush.bf16.msra.mxu3 %v2529_v4  ;;  %v2217_v3 = vor.u32 %v3023_v57, %v2216_v56  ;;  %v2409_v4 = vor.u32 %v3071_v61, %v2408_v60  ;;  %v2193_v16 = vor.u32 %v3017_v6, %v2192_v5  ;;  %v3138_v56 = vld [vmem:[#allocation8 + $0x124] sm:$0xf]  ;;  %v2828_v60 = vld [vmem:[#allocation8 + $0x240] sm:$0xf]  ;;  %v3177_v61 = vld [vmem:[#allocation8 + $0x254] sm:$0xf0] }
  0xc0   :  { %962 = vmatpush.bf16.msrb.mxu0 %v2341_v8  ;;  %975 = vmatpush.bf16.msrb.mxu1 %v2533_v9  ;;  %v2221_v8 = vor.u32 %v3020_v62, %v2218_v63  ;;  %v2413_v9 = vor.u32 %v3068_v0, %v2410_v1  ;;  %v2385_v17 = vor.u32 %v3065_v11, %v2384_v10  ;;  %v3528_v62 = vld [vmem:[%s3633_s4] sm:$0x3f]  ;;  %v3174_v0 = vld [vmem:[#allocation8 + $0x244] sm:$0xf]  ;;  %v3135_v5 = vld [vmem:[#allocation8 + $0x104] sm:$0xf0] }
  0xc1   :  { %v2829_v63 = vor.u32 %v3177_v61, %v2828_v60  ;;  %v2830_v1 = vld [vmem:[#allocation8 + $0x258] sm:$0xf0]  ;;  %v3132_v6 = vld [vmem:[#allocation8 + $0xf4] sm:$0xf]  ;;  %v2804_v11 = vld [vmem:[#allocation8 + $0x210] sm:$0xf] }
  0xc2   :  { %v341_v14 = vperm.slane %v3528_v62, 1  ;;  %v2805_v15 = vor.u32 %v3171_v12, %v2804_v11  ;;  %v3150_v61 = vld [vmem:[#allocation8 + $0x184] sm:$0xf] }
  0xc3   :  { %937 = vmatpush.bf16.msra.mxu2 %v2313_v18  ;;  %950 = vmatpush.bf16.msra.mxu3 %v2505_v19  ;;  %v2168_v18 = vld [vmem:[#allocation7 + $0x10] sm:$0xf]  ;;  %v3011_v19 = vld [vmem:[#allocation7 + $0x24] sm:$0xf0] }
  0xc4   :  { %963 = vmatpush.bf16.msrb.mxu0 %v2317_v22  ;;  %976 = vmatpush.bf16.msrb.mxu1 %v2509_v23  ;;  %v2360_v22 = vld [vmem:[#allocation7 + $0x190] sm:$0xf]  ;;  %v3059_v23 = vld [vmem:[#allocation7 + $0x1a4] sm:$0xf0]  ;;  %v2169_v28 = vor.u32 %v3011_v19, %v2168_v18  ;;  %v2636_v18 = vld [vmem:[#allocation8 + $0xc0] sm:$0xf] }
  0xc5   :  { %v2361_v29 = vor.u32 %v3059_v23, %v2360_v22  ;;  %v3129_v19 = vld [vmem:[#allocation8 + $0xd4] sm:$0xf0]  ;;  %v2638_v22 = vld [vmem:[#allocation8 + $0xd8] sm:$0xf0] }
  0xc7   :  { %938 = vmatpush.bf16.msra.mxu2 %v2289_v30  ;;  %951 = vmatpush.bf16.msra.mxu3 %v2481_v31  ;;  %v2173_v30 = vor.u32 %v3008_v24, %v2170_v25  ;;  %v2365_v31 = vor.u32 %v3056_v26, %v2362_v27  ;;  %v2780_v25 = vld [vmem:[#allocation8 + $0x1e0] sm:$0xf]  ;;  %v3165_v26 = vld [vmem:[#allocation8 + $0x1f4] sm:$0xf0]  ;;  %v3162_v27 = vld [vmem:[#allocation8 + $0x1e4] sm:$0xf] }
  0xc8   :  { %964 = vmatpush.bf16.msrb.mxu0 %v2293_v34  ;;  %977 = vmatpush.bf16.msrb.mxu1 %v2485_v35  ;;  %v3192_v34 = vld [vmem:[#allocation8 + $0x2d4] sm:$0xf]  ;;  %v2901_v35 = vor.u32 %v3195_v33, %v2900_v32  ;;  %v2612_v33 = vld [vmem:[#allocation8 + $0x90] sm:$0xf] }
  0xc9   :  { %v2905_v37 = vor.u32 %v3192_v34, %v2902_v36  ;;  %v3123_v34 = vld [vmem:[#allocation8 + $0xa4] sm:$0xf0]  ;;  %v340_v36 = vperm.slane %v3528_v62, 0 }
  0xcb   :  { %939 = vmatpush.bf16.msra.mxu2 %v2265_v42  ;;  %952 = vmatpush.bf16.msra.mxu3 %v2457_v43  ;;  %v2878_v42 = vld [vmem:[#allocation8 + $0x2b8] sm:$0xf0] }
  0xcc   :  { %965 = vmatpush.bf16.msrb.mxu0 %v2269_v46  ;;  %978 = vmatpush.bf16.msrb.mxu1 %v2461_v47  ;;  %v2881_v43 = vor.u32 %v3186_v40, %v2878_v42  ;;  %v3144_v46 = vld [vmem:[#allocation8 + $0x154] sm:$0xf]  ;;  %v3159_v42 = vld [vmem:[#allocation8 + $0x1c4] sm:$0xf0] }
  0xcd   :  { %892 = vmatmul.bf16.vlgmr.msrb.gmra.mxu2 %v3509_v2  ;;  %918 = vmatmul.bf16.vlgmr.msra.gmra.mxu0 %v3509_v2 }
  0xce   :  { %905 = vmatmul.bf16.vlgmr.msrb.gmra.mxu3 %v3511_v7  ;;  %931 = vmatmul.bf16.vlgmr.msra.gmra.mxu1 %v3511_v7 }
  0xcf   :  { %940 = vmatpush.bf16.msra.mxu2 %v2241_v54  ;;  %953 = vmatpush.bf16.msra.mxu3 %v2433_v55  ;;  %v2684_v54 = vld [vmem:[#allocation8 + $0x120] sm:$0xf]  ;;  %v3141_v55 = vld [vmem:[#allocation8 + $0x134] sm:$0xf0] }
  0xd0   :  { %966 = vmatpush.bf16.msrb.mxu0 %v2245_v58  ;;  %979 = vmatpush.bf16.msrb.mxu1 %v2437_v59  ;;  %v2685_v57 = vor.u32 %v3141_v55, %v2684_v54  ;;  %v2686_v58 = vld [vmem:[#allocation8 + $0x138] sm:$0xf0]  ;;  %v2593_v55 = vor.u32 %v3114_v48, %v2590_v52  ;;  %v2836_v48 = vld [vmem:[#allocation8 + $0x248] sm:$0xf] }
  0xd1   :  { %v2689_v59 = vor.u32 %v3138_v56, %v2686_v58  ;;  %v2732_v56 = vld [vmem:[#allocation8 + $0x180] sm:$0xf] }
  0xd3   :  { %941 = vmatpush.bf16.msra.mxu2 %v2217_v3  ;;  %954 = vmatpush.bf16.msra.mxu3 %v2409_v4  ;;  %v2833_v3 = vor.u32 %v3174_v0, %v2830_v1  ;;  %v2660_v4 = vld [vmem:[#allocation8 + $0xf0] sm:$0xf]  ;;  %v2908_v0 = vld [vmem:[#allocation8 + $0x2d8] sm:$0xf] }
  0xd4   :  { %967 = vmatpush.bf16.msrb.mxu0 %v2221_v8  ;;  %980 = vmatpush.bf16.msrb.mxu1 %v2413_v9  ;;  %v2661_v8 = vor.u32 %v3135_v5, %v2660_v4  ;;  %v2662_v9 = vld [vmem:[#allocation8 + $0x108] sm:$0xf0]  ;;  %v3193_v4 = vld [vmem:[#allocation8 + $0x2dc] sm:$0xf]  ;;  %v2910_v5 = vld [vmem:[#allocation8 + $0x2f0] sm:$0xf0] }
  0xd5   :  { %v2665_v10 = vor.u32 %v3132_v6, %v2662_v9  ;;  %v2564_v9 = vld [vmem:[#allocation8 + $0x30] sm:$0xf] }
  0xd7   :  { %942 = vmatpush.bf16.msra.mxu2 %v2193_v16  ;;  %955 = vmatpush.bf16.msra.mxu3 %v2385_v17  ;;  %v2806_v16 = vld [vmem:[#allocation8 + $0x228] sm:$0xf0] }
  0xd8   :  { %968 = vmatpush.bf16.msrb.mxu0 %v2197_v20  ;;  %981 = vmatpush.bf16.msrb.mxu1 %v2389_v21  ;;  %v2809_v17 = vor.u32 %v3168_v13, %v2806_v16  ;;  %v3126_v20 = vld [vmem:[#allocation8 + $0xc4] sm:$0xf]  ;;  %v2637_v21 = vor.u32 %v3129_v19, %v2636_v18  ;;  %v3108_v13 = vld [vmem:[#allocation8 + $0x34] sm:$0xf]  ;;  %v2884_v16 = vld [vmem:[#allocation8 + $0x2a8] sm:$0xf] }
  0xd9   :  { %v2641_v23 = vor.u32 %v3126_v20, %v2638_v22  ;;  %v3187_v18 = vld [vmem:[#allocation8 + $0x2ac] sm:$0xf]  ;;  %v2540_v22 = vld [vmem:[#allocation8] sm:$0xf] }
  0xdb   :  { %943 = vmatpush.bf16.msra.mxu2 %v2169_v28  ;;  %956 = vmatpush.bf16.msra.mxu3 %v2361_v29 }
  0xdc   :  { %969 = vmatpush.bf16.msrb.mxu0 %v2173_v30  ;;  %982 = vmatpush.bf16.msrb.mxu1 %v2365_v31  ;;  %v2781_v30 = vor.u32 %v3165_v26, %v2780_v25  ;;  %v2782_v31 = vld [vmem:[#allocation8 + $0x1f8] sm:$0xf0]  ;;  %v3105_v25 = vld [vmem:[#allocation8 + $0x14] sm:$0xf0]  ;;  %v3102_v26 = vld [vmem:[#allocation8 + $0x4] sm:$0xf] }
  0xdd   :  { %v2785_v32 = vor.u32 %v3162_v27, %v2782_v31  ;;  %v2542_v27 = vld [vmem:[#allocation8 + $0x18] sm:$0xf0]  ;;  %v2541_v31 = vor.u32 %v3105_v25, %v2540_v22 }
  0xde   :  { %944 = vmatmul.bf16.vlgmr.msra.gmra.mxu2 %v3509_v2  ;;  %957 = vmatmul.bf16.vlgmr.msra.gmra.mxu3 %v3511_v7 }
  0xdf   :  { %970 = vmatmul.bf16.vlgmr.msrb.gmra.mxu0 %v3509_v2  ;;  %983 = vmatmul.bf16.vlgmr.msrb.gmra.mxu1 %v3511_v7  ;;  %v2709_v2 = vor.u32 %v3147_v45, %v2708_v44  ;;  %v2710_v7 = vld [vmem:[#allocation8 + $0x168] sm:$0xf0] }
  0xe0   :  { %1677 = vmatpush.bf16.msrb.mxu3 %v2901_v35  ;;  %1703 = vmatpush.bf16.msra.mxu1 %v2905_v37  ;;  %v2713_v47 = vor.u32 %v3144_v46, %v2710_v7  ;;  %v3120_v35 = vld [vmem:[#allocation8 + $0x94] sm:$0xf]  ;;  %v2613_v37 = vor.u32 %v3123_v34, %v2612_v33  ;;  %v2758_v45 = vld [vmem:[#allocation8 + $0x1c8] sm:$0xf0]  ;;  %v2588_v7 = vld [vmem:[#allocation8 + $0x60] sm:$0xf] }
  0xe1   :  { %1664 = vmatpush.bf16.msrb.mxu2 %v2709_v2  ;;  %v2617_v40 = vor.u32 %v3120_v35, %v2614_v38  ;;  %v3148_v33 = vld [vmem:[#allocation8 + $0x16c] sm:$0xf0]  ;;  %v3145_v34 = vld [vmem:[#allocation8 + $0x15c] sm:$0xf]  ;;  %v2718_v35 = vld [vmem:[#allocation8 + $0x170] sm:$0xf0] }
  0xe2   :  { %1690 = vmatpush.bf16.msra.mxu0 %v2713_v47  ;;  %v3117_v47 = vld [vmem:[#allocation8 + $0x74] sm:$0xf0] }
  0xe3   :  { %v2860_v38 = vld [vmem:[#allocation8 + $0x278] sm:$0xf] }
  0xe4   :  { %1678 = vmatpush.bf16.msrb.mxu3 %v2877_v41  ;;  %1704 = vmatpush.bf16.msra.mxu1 %v2881_v43  ;;  %v2756_v41 = vld [vmem:[#allocation8 + $0x1b0] sm:$0xf]  ;;  %v3156_v43 = vld [vmem:[#allocation8 + $0x1b4] sm:$0xf] }
  0xe5   :  { %1665 = vmatpush.bf16.msrb.mxu2 %v2685_v57  ;;  %v2757_v44 = vor.u32 %v3159_v42, %v2756_v41  ;;  %v2761_v46 = vor.u32 %v3156_v43, %v2758_v45  ;;  %v3153_v57 = vld [vmem:[#allocation8 + $0x194] sm:$0xf0]  ;;  %v3181_v42 = vld [vmem:[#allocation8 + $0x27c] sm:$0xf]  ;;  %v2862_v43 = vld [vmem:[#allocation8 + $0x290] sm:$0xf0] }
  0xe6   :  { %1691 = vmatpush.bf16.msra.mxu0 %v2689_v59  ;;  %v2733_v60 = vor.u32 %v3153_v57, %v2732_v56  ;;  %v2865_v45 = vor.u32 %v3181_v42, %v2862_v43  ;;  %v2838_v56 = vld [vmem:[#allocation8 + $0x260] sm:$0xf0]  ;;  %v2668_v57 = vld [vmem:[#allocation8 + $0xf8] sm:$0xf]  ;;  %v2766_v43 = vld [vmem:[#allocation8 + $0x1d0] sm:$0xf0] }
  0xe8   :  { %1679 = vmatpush.bf16.msrb.mxu3 %v2853_v51  ;;  %1705 = vmatpush.bf16.msra.mxu1 %v2857_v53  ;;  %v2589_v51 = vor.u32 %v3117_v47, %v2588_v7  ;;  %v2694_v47 = vld [vmem:[#allocation8 + $0x140] sm:$0xf0] }
  0xe9   :  { %1666 = vmatpush.bf16.msrb.mxu2 %v2661_v8  ;;  %v2913_v8 = vor.u32 %v3193_v4, %v2910_v5 }
  0xea   :  { %1692 = vmatpush.bf16.msra.mxu0 %v2665_v10  ;;  %v3111_v10 = vld [vmem:[#allocation8 + $0x44] sm:$0xf0] }
  0xeb   :  { %v2565_v12 = vor.u32 %v3111_v10, %v2564_v9  ;;  %v3169_v10 = vld [vmem:[#allocation8 + $0x21c] sm:$0xf] }
  0xec   :  { %1680 = vmatpush.bf16.msrb.mxu3 %v2829_v63  ;;  %1706 = vmatpush.bf16.msra.mxu1 %v2833_v3  ;;  %v2734_v63 = vld [vmem:[#allocation8 + $0x198] sm:$0xf0]  ;;  %v3196_v3 = vld [vmem:[#allocation8 + $0x2ec] sm:$0xf0] }
  0xed   :  { %1667 = vmatpush.bf16.msrb.mxu2 %v2637_v21  ;;  %v2737_v1 = vor.u32 %v3150_v61, %v2734_v63  ;;  %v2909_v6 = vor.u32 %v3196_v3, %v2908_v0  ;;  %v2886_v21 = vld [vmem:[#allocation8 + $0x2c0] sm:$0xf0]  ;;  %v3133_v63 = vld [vmem:[#allocation8 + $0xfc] sm:$0xf]  ;;  %v2670_v0 = vld [vmem:[#allocation8 + $0x110] sm:$0xf0] }
  0xee   :  { %1693 = vmatpush.bf16.msra.mxu0 %v2641_v23  ;;  %v2673_v5 = vor.u32 %v3133_v63, %v2670_v0  ;;  %v2742_v0 = vld [vmem:[#allocation8 + $0x1a0] sm:$0xf0] }
  0xf0   :  { %1681 = vmatpush.bf16.msrb.mxu3 %v2805_v15  ;;  %1707 = vmatpush.bf16.msra.mxu1 %v2809_v17  ;;  %v3190_v17 = vld [vmem:[#allocation8 + $0x2bc] sm:$0xf0] }
  0xf1   :  { %1668 = vmatpush.bf16.msrb.mxu2 %v2613_v37  ;;  %v2885_v20 = vor.u32 %v3190_v17, %v2884_v16  ;;  %v2721_v37 = vor.u32 %v3145_v34, %v2718_v35  ;;  %v2646_v17 = vld [vmem:[#allocation8 + $0xe0] sm:$0xf0]  ;;  %v3121_v34 = vld [vmem:[#allocation8 + $0x9c] sm:$0xf]  ;;  %v2622_v35 = vld [vmem:[#allocation8 + $0xb0] sm:$0xf0] }
  0xf2   :  { %1694 = vmatpush.bf16.msra.mxu0 %v2617_v40 }
  0xf4   :  { %1682 = vmatpush.bf16.msrb.mxu3 %v2781_v30  ;;  %1708 = vmatpush.bf16.msra.mxu1 %v2785_v32  ;;  %v2545_v32 = vor.u32 %v3102_v26, %v2542_v27  ;;  %v345_v26 = vperm.slane %v3528_v62, 5 }
  0xf5   :  { %1669 = vmatpush.bf16.msrb.mxu2 %v2589_v51 }
  0xf6   :  { %1695 = vmatpush.bf16.msra.mxu0 %v2593_v55 }
  0xf8   :  { %1683 = vmatpush.bf16.msrb.mxu3 %v2757_v44  ;;  %1709 = vmatpush.bf16.msra.mxu1 %v2761_v46  ;;  %v2692_v44 = vld [vmem:[#allocation8 + $0x128] sm:$0xf]  ;;  %v3139_v46 = vld [vmem:[#allocation8 + $0x12c] sm:$0xf] }
  0xf9   :  { %1670 = vmatpush.bf16.msrb.mxu2 %v2565_v12  ;;  %v2697_v55 = vor.u32 %v3139_v46, %v2694_v47  ;;  %v3118_v47 = vld [vmem:[#allocation8 + $0x7c] sm:$0xf0] }
  0xfc   :  { %1684 = vmatpush.bf16.msrb.mxu3 %v2733_v60  ;;  %1710 = vmatpush.bf16.msra.mxu1 %v2737_v1 }
  0xfd   :  { %1671 = vmatpush.bf16.msrb.mxu2 %v2541_v31  ;;  %v3124_v31 = vld [vmem:[#allocation8 + $0xac] sm:$0xf0] }
 0x100   :  { %1729 = vmatpush.bf16.msra.mxu3 %v2909_v6  ;;  %1755 = vmatpush.bf16.msrb.mxu1 %v2913_v8  ;;  %v2812_v6 = vld [vmem:[#allocation8 + $0x218] sm:$0xf]  ;;  %v3172_v8 = vld [vmem:[#allocation8 + $0x22c] sm:$0xf0] }
 0x101   :  { %v2813_v9 = vor.u32 %v3172_v8, %v2812_v6 }
 0x104   :  { %1730 = vmatpush.bf16.msra.mxu3 %v2885_v20  ;;  %v3166_v20 = vld [vmem:[#allocation8 + $0x1fc] sm:$0xf0] }
 0x13a   :  { %v867_v24 = vpop.f32.mrf.mxu0 }
 0x13b   :  { %v868_v28 = vadd.f32 %v867_v24, %v341_v14  ;;  %v880_v29 = vpop.f32.mrf.mxu1  ;;  %v2566_v14 = vld [vmem:[#allocation8 + $0x48] sm:$0xf0]  ;;  %v2889_v24 = vor.u32 %v3187_v18, %v2886_v21 }
 0x13c   :  { %v2569_v15 = vor.u32 %v3108_v13, %v2566_v14  ;;  %v2644_v13 = vld [vmem:[#allocation8 + $0xc8] sm:$0xf]  ;;  %v3130_v14 = vld [vmem:[#allocation8 + $0xdc] sm:$0xf0]  ;;  %v3163_v21 = vld [vmem:[#allocation8 + $0x1ec] sm:$0xf] }
 0x13d   :  { %v881_v39 = vadd.f32 %v880_v29, %v868_v28  ;;  %v2716_v29 = vld [vmem:[#allocation8 + $0x158] sm:$0xf]  ;;  %1756 = vmatpush.bf16.msrb.mxu1 %v2889_v24  ;;  %v2645_v16 = vor.u32 %v3130_v14, %v2644_v13  ;;  %v2790_v24 = vld [vmem:[#allocation8 + $0x200] sm:$0xf0]  ;;  %v342_v14 = vperm.slane %v3528_v62, 2 }
 0x13e   :  { %1696 = vmatpush.bf16.msra.mxu0 %v2569_v15  ;;  %v3127_v15 = vld [vmem:[#allocation8 + $0xcc] sm:$0xf]  ;;  %v2793_v27 = vor.u32 %v3163_v21, %v2790_v24  ;;  %v3106_v24 = vld [vmem:[#allocation8 + $0x1c] sm:$0xf0] }
 0x13f   :  { %v2535_v53 = vmul.f32 -1.442695, %v881_v39  ;;  %v3184_v39 = vld [vmem:[#allocation8 + $0x28c] sm:$0xf0]  ;;  %v2649_v18 = vor.u32 %v3127_v15, %v2646_v17 }
 0x140   :  { %v841_v2 = vpop.f32.mrf.mxu2  ;;  %v2861_v41 = vor.u32 %v3184_v39, %v2860_v38  ;;  %v3160_v38 = vld [vmem:[#allocation8 + $0x1cc] sm:$0xf0]  ;;  %v3157_v39 = vld [vmem:[#allocation8 + $0x1bc] sm:$0xf] }
 0x141   :  { %v842_v49 = vadd.f32 %v841_v2, %v340_v36  ;;  %v854_v50 = vpop.f32.mrf.mxu3  ;;  %3227 = vpow2.f32 %v2535_v53  ;;  %v2717_v36 = vor.u32 %v3148_v33, %v2716_v29  ;;  %v3142_v2 = vld [vmem:[#allocation8 + $0x13c] sm:$0xf0]  ;;  %1757 = vmatpush.bf16.msrb.mxu1 %v2865_v45  ;;  %v3175_v53 = vld [vmem:[#allocation8 + $0x24c] sm:$0xf]  ;;  %v2620_v29 = vld [vmem:[#allocation8 + $0x98] sm:$0xf]  ;;  %v2769_v46 = vor.u32 %v3157_v39, %v2766_v43 }
 0x142   :  { %v869_v54 = vpop.f32.mrf.mxu0  ;;  %1697 = vmatpush.bf16.msra.mxu0 %v2545_v32  ;;  %1731 = vmatpush.bf16.msra.mxu3 %v2861_v41  ;;  %v2693_v7 = vor.u32 %v3142_v2, %v2692_v44  ;;  %v2841_v61 = vor.u32 %v3175_v53, %v2838_v56  ;;  %v2621_v33 = vor.u32 %v3124_v31, %v2620_v29 }
 0x143   :  { %v855_v58 = vadd.f32 %v854_v50, %v842_v49  ;;  %v882_v59 = vpop.f32.mrf.mxu1  ;;  %1716 = vmatpush.bf16.msra.mxu2 %v2717_v36  ;;  %v3178_v49 = vld [vmem:[#allocation8 + $0x25c] sm:$0xf0]  ;;  %v2625_v36 = vor.u32 %v3121_v34, %v2622_v35 }
 0x144   :  { %v2837_v60 = vor.u32 %v3178_v49, %v2836_v48  ;;  %v3115_v48 = vld [vmem:[#allocation8 + $0x6c] sm:$0xf]  ;;  %v343_v49 = vperm.slane %v3528_v62, 3 }
 0x145   :  { %v2534_v11 = vmul.f32 -1.442695, %v855_v58  ;;  %v3136_v58 = vld [vmem:[#allocation8 + $0x10c] sm:$0xf0]  ;;  %1758 = vmatpush.bf16.msrb.mxu1 %v2841_v61 }
 0x146   :  { %1742 = vmatpush.bf16.msrb.mxu0 %v2721_v37  ;;  %v2669_v4 = vor.u32 %v3136_v58, %v2668_v57  ;;  %1732 = vmatpush.bf16.msra.mxu3 %v2837_v60  ;;  %v2764_v37 = vld [vmem:[#allocation8 + $0x1b8] sm:$0xf]  ;;  %v2740_v58 = vld [vmem:[#allocation8 + $0x188] sm:$0xf]  ;;  %v3151_v60 = vld [vmem:[#allocation8 + $0x18c] sm:$0xf] }
 0x147   :  { %3229 = vpow2.f32 %v2534_v11  ;;  %v3228_v40 = vpop.eup %3227  ;;  %1717 = vmatpush.bf16.msra.mxu2 %v2693_v7  ;;  %v2814_v11 = vld [vmem:[#allocation8 + $0x230] sm:$0xf0]  ;;  %v2765_v42 = vor.u32 %v3160_v38, %v2764_v37  ;;  %v2596_v7 = vld [vmem:[#allocation8 + $0x68] sm:$0xf]  ;;  %v2745_v8 = vor.u32 %v3151_v60, %v2742_v0 }
 0x148   :  { %v843_v19 = vpop.f32.mrf.mxu2  ;;  %v3536_v51 = vadd.f32 1.0, %v3228_v40  ;;  %v2817_v12 = vor.u32 %v3169_v10, %v2814_v11  ;;  %v2597_v53 = vor.u32 %v3118_v47, %v2596_v7  ;;  %v2572_v10 = vld [vmem:[#allocation8 + $0x38] sm:$0xf]  ;;  %v3112_v11 = vld [vmem:[#allocation8 + $0x4c] sm:$0xf0] }
 0x149   :  { %v856_v23 = vpop.f32.mrf.mxu3  ;;  %v2788_v19 = vld [vmem:[#allocation8 + $0x1e8] sm:$0xf]  ;;  %v2573_v15 = vor.u32 %v3112_v11, %v2572_v10  ;;  %v2918_v10 = vld [vmem:[#allocation8 + $0x2f8] sm:$0xf0] }
 0x14a   :  { %v3532_v28 = vpop.f32.mrf.mxu0  ;;  %1743 = vmatpush.bf16.msrb.mxu0 %v2697_v55  ;;  %3231 = vrcp.f32 %v3536_v51  ;;  %1733 = vmatpush.bf16.msra.mxu3 %v2813_v9  ;;  %v2789_v23 = vor.u32 %v3166_v20, %v2788_v19  ;;  %v2598_v55 = vld [vmem:[#allocation8 + $0x80] sm:$0xf0]  ;;  %v1022_v38 = vand.u32 2147483648, %v3536_v51  ;;  %vm1016_vm1 = vweird.f32 %v3536_v51 }
 0x14b   :  { %v3534_v30 = vpop.f32.mrf.mxu1  ;;  %1718 = vmatpush.bf16.msra.mxu2 %v2669_v4  ;;  %1759 = vmatpush.bf16.msrb.mxu1 %v2817_v12  ;;  %v2601_v57 = vor.u32 %v3115_v48, %v2598_v55  ;;  %v3109_v12 = vld [vmem:[#allocation8 + $0x3c] sm:$0xf]  ;;  %v920_v13 = vadd.f32 %v3532_v28, %v343_v49  ;;  %v1020_v39 = vand.u32 2147483647, %v3536_v51 }
 0x14c   :  { %v1023_v43 = vor.u32 1.1754944e-38, %v1022_v38 }
 0x14d   :  { %v3230_v50 = vpop.eup %3229  ;;  %v933_v29 = vadd.f32 %v3534_v30, %v920_v13  ;;  %vm1021_vm4 = vcmp.eq.f32.partialorder %v1020_v39, 8.507059e+37  ;;  %v3182_v39 = vld [vmem:[#allocation8 + $0x284] sm:$0xf] }
 0x14e   :  { %v3542_v1 = vadd.f32 1.0, %v3230_v50  ;;  %1744 = vmatpush.bf16.msrb.mxu0 %v2673_v5  ;;  %1734 = vmatpush.bf16.msra.mxu3 %v2789_v23  ;;  %v344_v50 = vperm.slane %v3528_v62, 4  ;;  %v2548_v23 = vld [vmem:[#allocation8 + $0x8] sm:$0xf]  ;;  %v2550_v62 = vld [vmem:[#allocation8 + $0x20] sm:$0xf0] }
 0x14f   :  { %1719 = vmatpush.bf16.msra.mxu2 %v2645_v16  ;;  %1760 = vmatpush.bf16.msrb.mxu1 %v2793_v27  ;;  %v2574_v16 = vld [vmem:[#allocation8 + $0x50] sm:$0xf0]  ;;  %v2549_v28 = vor.u32 %v3106_v24, %v2548_v23  ;;  %v2894_v23 = vld [vmem:[#allocation8 + $0x2c8] sm:$0xf0]  ;;  %v2724_v24 = vld [vmem:[#allocation8 + $0x160] sm:$0xf] }
 0x150   :  { %v3538_v52 = vpop.f32.mrf.mxu2  ;;  %3233 = vrcp.f32 %v3542_v1  ;;  %v3547_v32 = vpop.eup %3231  ;;  %v2577_v21 = vor.u32 %v3109_v12, %v2574_v16  ;;  %vm1001_vm5 = vweird.f32 %v3542_v1 }
 0x151   :  { %v3540_v54 = vpop.f32.mrf.mxu3  ;;  %v1012_v45 = vmul.f32 %v3547_v32, %v3536_v51  ;;  %v894_v31 = vadd.f32 %v3538_v52, %v342_v14  ;;  %vm1017_vm0 = vweird.f32 %v3547_v32  ;;  %v1005_v51 = vand.u32 2147483647, %v3542_v1 }
 0x152   :  { %v921_v59 = vpop.f32.mrf.mxu0  ;;  %1745 = vmatpush.bf16.msrb.mxu0 %v2649_v18  ;;  %1735 = vmatpush.bf16.msra.mxu3 %v2765_v42  ;;  %vm1018_vm2 = vmor %vm1016_vm1, %vm1017_vm0 }
 0x153   :  { %v934_v3 = vpop.f32.mrf.mxu1  ;;  %1720 = vmatpush.bf16.msra.mxu2 %v2621_v33  ;;  %v3154_v59 = vld [vmem:[#allocation8 + $0x19c] sm:$0xf0]  ;;  %1761 = vmatpush.bf16.msrb.mxu1 %v2769_v46  ;;  %v907_v52 = vadd.f32 %v3540_v54, %v894_v31  ;;  %vm1006_vm7 = vcmp.eq.f32.partialorder %v1005_v51, 8.507059e+37  ;;  %v2844_v51 = vld [vmem:[#allocation8 + $0x250] sm:$0xf] }
 0x154   :  { %v2741_v63 = vor.u32 %v3154_v59, %v2740_v58  ;;  %v1013_v3 = vsub.f32 1.0, %v1012_v45  ;;  %v1007_v45 = vand.u32 2147483648, %v3542_v1 }
 0x156   :  { %v3549_v44 = vpop.eup %3233  ;;  %1746 = vmatpush.bf16.msrb.mxu0 %v2625_v36  ;;  %1736 = vmatpush.bf16.msra.mxu3 %v2741_v63  ;;  %v1008_v7 = vor.u32 1.1754944e-38, %v1007_v45  ;;  %v2916_v63 = vld [vmem:[#allocation8 + $0x2e0] sm:$0xf] }
 0x157   :  { %v997_v61 = vmul.f32 %v3549_v44, %v3542_v1  ;;  %1721 = vmatpush.bf16.msra.mxu2 %v2597_v53  ;;  %1762 = vmatpush.bf16.msrb.mxu1 %v2745_v8  ;;  %vm1002_vm3 = vweird.f32 %v3549_v44 }
 0x158   :  { %v895_v22 = vpop.f32.mrf.mxu2  ;;  %vm1003_vm6 = vmor %vm1001_vm5, %vm1002_vm3 }
 0x159   :  { %v908_v25 = vpop.f32.mrf.mxu3  ;;  %v998_v17 = vsub.f32 1.0, %v997_v61  ;;  %v1014_v22 = vmul.f32 %v3547_v32, %v1013_v3 }
 0x15a   :  { %1747 = vmatpush.bf16.msrb.mxu0 %v2601_v57  ;;  %v3103_v25 = vld [vmem:[#allocation8 + $0xc] sm:$0xf] }
 0x15b   :  { %1722 = vmatpush.bf16.msra.mxu2 %v2573_v15  ;;  %v2553_v27 = vor.u32 %v3103_v25, %v2550_v62  ;;  %v1015_v33 = vadd.f32 %v3547_v32, %v1014_v22  ;;  %v999_v34 = vmul.f32 %v3549_v44, %v998_v17  ;;  %v2892_v15 = vld [vmem:[#allocation8 + $0x2b0] sm:$0xf]  ;;  %v3146_v62 = vld [vmem:[#allocation8 + $0x164] sm:$0xf] }
 0x15c   :  { %v971_v40 = vpop.f32.mrf.mxu0  ;;  %v984_v41 = vpop.f32.mrf.mxu1 }
 0x15d   :  { %v972_v2 = vadd.f32 %v971_v40, %v345_v26  ;;  %v1019_v40 = vsel %vm1018_vm2, %v3547_v32, %v1015_v33 }
 0x15e   :  { %1748 = vmatpush.bf16.msrb.mxu0 %v2577_v21  ;;  %v1024_v46 = vsel %vm1021_vm4, %v1023_v43, %v1019_v40  ;;  %v3143_v40 = vld [vmem:[#allocation8 + $0x144] sm:$0xf0] }
 0x15f   :  { %v985_v56 = vadd.f32 %v984_v41, %v972_v2  ;;  %1723 = vmatpush.bf16.msra.mxu2 %v2549_v28  ;;  %v1000_v41 = vadd.f32 %v3549_v44, %v999_v34  ;;  %v3149_v28 = vld [vmem:[#allocation8 + $0x174] sm:$0xf0]  ;;  %v2868_v34 = vld [vmem:[#allocation8 + $0x280] sm:$0xf] }
 0x161   :  { %v2537_v4 = vmul.f32 -1.442695, %v985_v56  ;;  %v945_v5 = vpop.f32.mrf.mxu2  ;;  %v958_v6 = vpop.f32.mrf.mxu3  ;;  %v1004_v54 = vsel %vm1003_vm6, %v3549_v44, %v1000_v41  ;;  %v3140_v41 = vld [vmem:[#allocation8 + $0x134] sm:$0xf] }
 0x162   :  { %v946_v9 = vadd.f32 %v945_v5, %v344_v50  ;;  %1749 = vmatpush.bf16.msrb.mxu0 %v2553_v27  ;;  %v1009_v49 = vsel %vm1006_vm7, %v1008_v7, %v1004_v54  ;;  %v2726_v27 = vld [vmem:[#allocation8 + $0x178] sm:$0xf0]  ;;  %v2846_v7 = vld [vmem:[#allocation8 + $0x268] sm:$0xf0] }
 0x163   :  { %3235 = vpow2.f32 %v2537_v4  ;;  %v3197_v4 = vld [vmem:[#allocation8 + $0x2f4] sm:$0xf0]  ;;  %v2729_v38 = vor.u32 %v3146_v62, %v2726_v27  ;;  %v2606_v62 = vld [vmem:[#allocation8 + $0x88] sm:$0xf0] }
 0x164   :  { %v959_v18 = vadd.f32 %v958_v6, %v946_v9  ;;  %v973_v19 = vpop.f32.mrf.mxu0  ;;  %v986_v20 = vpop.f32.mrf.mxu1  ;;  %v3194_v9 = vld [vmem:[#allocation8 + $0x2e4] sm:$0xf]  ;;  %v2917_v17 = vor.u32 %v3197_v4, %v2916_v63  ;;  %v3128_v63 = vld [vmem:[#allocation8 + $0xd4] sm:$0xf] }
 0x165   :  { %v3191_v19 = vld [vmem:[#allocation8 + $0x2c4] sm:$0xf0]  ;;  %v3188_v20 = vld [vmem:[#allocation8 + $0x2b4] sm:$0xf] }
 0x166   :  { %v2536_v26 = vmul.f32 -1.442695, %v959_v18  ;;  %v2921_v18 = vor.u32 %v3194_v9, %v2918_v10  ;;  %v2893_v31 = vor.u32 %v3191_v19, %v2892_v15  ;;  %v2897_v33 = vor.u32 %v3188_v20, %v2894_v23  ;;  %v3164_v10 = vld [vmem:[#allocation8 + $0x1f4] sm:$0xf]  ;;  %v2630_v15 = vld [vmem:[#allocation8 + $0xb8] sm:$0xf0] }
 0x167   :  { %v3161_v19 = vld [vmem:[#allocation8 + $0x1d4] sm:$0xf0]  ;;  %v3158_v23 = vld [vmem:[#allocation8 + $0x1c4] sm:$0xf] }
 0x168   :  { %3237 = vpow2.f32 %v2536_v26 }
 0x169   :  { %v947_v35 = vpop.f32.mrf.mxu2  ;;  %v960_v36 = vpop.f32.mrf.mxu3  ;;  %3239 = vtanh.f32 %v933_v29 }
 0x16a   :  { %v3236_v37 = vpop.eup %3235  ;;  %v3185_v35 = vld [vmem:[#allocation8 + $0x294] sm:$0xf0] }
 0x16b   :  { %v1035_v30 = vadd.f32 1.0, %v3236_v37  ;;  %v2725_v37 = vor.u32 %v3149_v28, %v2724_v24  ;;  %v2869_v43 = vor.u32 %v3185_v35, %v2868_v34  ;;  %v2774_v24 = vld [vmem:[#allocation8 + $0x1d8] sm:$0xf0]  ;;  %v3116_v28 = vld [vmem:[#allocation8 + $0x74] sm:$0xf] }
 0x16c   :  { %v2609_v35 = vor.u32 %v3116_v28, %v2606_v62 }
 0x16d   :  { %3241 = vrcp.f32 %v1035_v30  ;;  %v1060_v1 = vand.u32 2147483647, %v1035_v30  ;;  %v1062_v58 = vand.u32 2147483648, %v1035_v30  ;;  %vm1056_vm9 = vweird.f32 %v1035_v30 }
 0x16e   :  { %v3238_v42 = vpop.eup %3237  ;;  %3243 = vtanh.f32 %v907_v52  ;;  %v2700_v52 = vld [vmem:[#allocation8 + $0x130] sm:$0xf] }
 0x16f   :  { %v1034_v2 = vadd.f32 1.0, %v3238_v42  ;;  %v3240_v32 = vpop.eup %3239  ;;  %vm1061_vm11 = vcmp.eq.f32.partialorder %v1060_v1, 8.507059e+37  ;;  %v1063_v0 = vor.u32 1.1754944e-38, %v1062_v58  ;;  %v2702_v42 = vld [vmem:[#allocation8 + $0x148] sm:$0xf0] }
 0x170   :  { %v1067_v48 = vmul.f32 %v3240_v32, %v1024_v46  ;;  %v2701_v46 = vor.u32 %v3143_v40, %v2700_v52  ;;  %v2705_v54 = vor.u32 %v3140_v41, %v2702_v42  ;;  %v3176_v32 = vld [vmem:[#allocation8 + $0x254] sm:$0xf]  ;;  %v3110_v52 = vld [vmem:[#allocation8 + $0x44] sm:$0xf]  ;;  %v2582_v40 = vld [vmem:[#allocation8 + $0x58] sm:$0xf0] }
 0x171   :  { %3245 = vrcp.f32 %v1034_v2  ;;  %v1047_v3 = vand.u32 2147483648, %v1034_v2  ;;  %v1045_v8 = vand.u32 2147483647, %v1034_v2  ;;  %vm1041_vm13 = vweird.f32 %v1034_v2 }
 0x172   :  { %3247 = vtanh.f32 %v1067_v48  ;;  %v3137_v48 = vld [vmem:[#allocation8 + $0x114] sm:$0xf0] }
 0x173   :  { %v3242_v47 = vpop.eup %3241  ;;  %v1048_v16 = vor.u32 1.1754944e-38, %v1047_v3  ;;  %vm1046_vm15 = vcmp.eq.f32.partialorder %v1045_v8, 8.507059e+37 }
 0x174   :  { %v1052_v50 = vmul.f32 %v3242_v47, %v1035_v30  ;;  %v3244_v53 = vpop.eup %3243  ;;  %vm1057_vm8 = vweird.f32 %v3242_v47  ;;  %v2870_v30 = vld [vmem:[#allocation8 + $0x298] sm:$0xf0] }
 0x175   :  { %v1066_v57 = vmul.f32 %v3244_v53, %v1009_v49  ;;  %vm1058_vm10 = vmor %vm1056_vm9, %vm1057_vm8  ;;  %v2873_v45 = vor.u32 %v3182_v39, %v2870_v30  ;;  %v3134_v49 = vld [vmem:[#allocation8 + $0x104] sm:$0xf]  ;;  %v2580_v39 = vld [vmem:[#allocation8 + $0x40] sm:$0xf] }
 0x176   :  { %v1053_v55 = vsub.f32 1.0, %v1052_v50  ;;  %v2678_v50 = vld [vmem:[#allocation8 + $0x118] sm:$0xf0]  ;;  %v3113_v30 = vld [vmem:[#allocation8 + $0x54] sm:$0xf0] }
 0x177   :  { %v3246_v56 = vpop.eup %3245  ;;  %3249 = vtanh.f32 %v1066_v57  ;;  %v3173_v57 = vld [vmem:[#allocation8 + $0x234] sm:$0xf0]  ;;  %v2681_v58 = vor.u32 %v3134_v49, %v2678_v50 }
 0x178   :  { %v1054_v59 = vmul.f32 %v3242_v47, %v1053_v55  ;;  %v1037_v60 = vmul.f32 %v3246_v56, %v1034_v2  ;;  %vm1042_vm12 = vweird.f32 %v3246_v56  ;;  %v3248_v11 = vpop.eup %3247  ;;  %v3179_v2 = vld [vmem:[#allocation8 + $0x264] sm:$0xf0]  ;;  %v2849_v55 = vor.u32 %v3176_v32, %v2846_v7 }
 0x179   :  { %vm1043_vm14 = vmor %vm1041_vm13, %vm1042_vm12  ;;  %v2845_v53 = vor.u32 %v3179_v2, %v2844_v51  ;;  %v2556_v51 = vld [vmem:[#allocation8 + $0x10] sm:$0xf]  ;;  %v3107_v2 = vld [vmem:[#allocation8 + $0x24] sm:$0xf0] }
 0x17a   :  { %v1055_v61 = vadd.f32 %v3242_v47, %v1054_v59  ;;  %v1038_v44 = vsub.f32 1.0, %v1037_v60  ;;  %v3170_v59 = vld [vmem:[#allocation8 + $0x224] sm:$0xf]  ;;  %v2822_v60 = vld [vmem:[#allocation8 + $0x238] sm:$0xf0]  ;;  %v2557_v32 = vor.u32 %v3107_v2, %v2556_v51 }
 0x17b   :  { %v2825_v4 = vor.u32 %v3170_v59, %v2822_v60  ;;  %v3198_v51 = vld [vmem:[#allocation10] sm:$0xff] }
 0x17c   :  { %v1059_v5 = vsel %vm1058_vm10, %v3242_v47, %v1055_v61  ;;  %v1039_v6 = vmul.f32 %v3246_v56, %v1038_v44  ;;  %v2676_v47 = vld [vmem:[#allocation8 + $0x100] sm:$0xf]  ;;  %v2652_v61 = vld [vmem:[#allocation8 + $0xd0] sm:$0xf]  ;;  %v3131_v44 = vld [vmem:[#allocation8 + $0xe4] sm:$0xf0] }
 0x17d   :  { %v1064_v12 = vsel %vm1061_vm11, %v1063_v0, %v1059_v5  ;;  %v3250_v25 = vpop.eup %3249  ;;  %v2677_v1 = vor.u32 %v3137_v48, %v2676_v47  ;;  %v2654_v0 = vld [vmem:[#allocation8 + $0xe8] sm:$0xf0]  ;;  %v2796_v5 = vld [vmem:[#allocation8 + $0x1f0] sm:$0xf]  ;;  %v2653_v8 = vor.u32 %v3131_v44, %v2652_v61  ;;  %v3595_v47 = vld [vmem:[%s3635_s6] sm:$0x3f] }
 0x17e   :  { %v1040_v13 = vadd.f32 %v3246_v56, %v1039_v6  ;;  %v1071_v14 = vmul.f32 %v3248_v11, %v1064_v12  ;;  %v3167_v6 = vld [vmem:[#allocation8 + $0x204] sm:$0xf0]  ;;  %v2657_v9 = vor.u32 %v3128_v63, %v2654_v0  ;;  %v2798_v11 = vld [vmem:[#allocation8 + $0x208] sm:$0xf0]  ;;  %v2628_v12 = vld [vmem:[#allocation8 + $0xa0] sm:$0xf] }
 0x17f   :  { %v1173_v49 = vperm.slane %v3595_v47, 1  ;;  %v3212_v63 = vld [vmem:[#allocation10 + $0x70] sm:$0xff] }
 0x180   :  { %v1044_v21 = vsel %vm1043_vm14, %v3246_v56, %v1040_v13  ;;  %v3576_v22 = vpack.c.bf16 %v1071_v14, %v1071_v14  ;;  %v2820_v56 = vld [vmem:[#allocation8 + $0x220] sm:$0xf]  ;;  %v3125_v13 = vld [vmem:[#allocation8 + $0xb4] sm:$0xf0]  ;;  %v3122_v14 = vld [vmem:[#allocation8 + $0xa4] sm:$0xf] }
 0x181   :  { %v1049_v26 = vsel %vm1046_vm15, %v1048_v16, %v1044_v21  ;;  %v2821_v3 = vor.u32 %v3173_v57, %v2820_v56  ;;  %v2797_v16 = vor.u32 %v3167_v6, %v2796_v5  ;;  %v2629_v20 = vor.u32 %v3125_v13, %v2628_v12  ;;  %v3211_v6 = vld [vmem:[#allocation10 + $0x68] sm:$0xff]  ;;  %v3210_v12 = vld [vmem:[#allocation10 + $0x60] sm:$0xff] }
 0x182   :  { %1685 = vmatmul.bf16.vlgmr.msrb.gmra.mxu3 %v3576_v22  ;;  %1711 = vmatmul.bf16.vlgmr.msra.gmra.mxu1 %v3576_v22  ;;  %v1070_v29 = vmul.f32 %v3250_v25, %v1049_v26  ;;  %v2633_v21 = vor.u32 %v3122_v14, %v2630_v15  ;;  %v2604_v25 = vld [vmem:[#allocation8 + $0x70] sm:$0xf]  ;;  %v3119_v26 = vld [vmem:[#allocation8 + $0x84] sm:$0xf0] }
 0x183   :  { %1781 = vmatpush.bf16.msrb.mxu3 %v2917_v17  ;;  %1807 = vmatpush.bf16.msra.mxu1 %v2921_v18  ;;  %v2801_v17 = vor.u32 %v3164_v10, %v2798_v11  ;;  %v2772_v18 = vld [vmem:[#allocation8 + $0x1c0] sm:$0xf]  ;;  %v2605_v34 = vor.u32 %v3119_v26, %v2604_v25  ;;  %v3203_v15 = vld [vmem:[#allocation10 + $0x28] sm:$0xff]  ;;  %v3201_v26 = vld [vmem:[#allocation10 + $0x18] sm:$0xff] }
 0x184   :  { %v3580_v36 = vpack.c.bf16 %v1070_v29, %v1070_v29  ;;  %v2773_v27 = vor.u32 %v3161_v19, %v2772_v18  ;;  %v2777_v29 = vor.u32 %v3158_v23, %v2774_v24  ;;  %v3208_v24 = vld [vmem:[#allocation10 + $0x50] sm:$0xff] }
 0x186   :  { %1672 = vmatmul.bf16.vlgmr.msrb.gmra.mxu2 %v3580_v36  ;;  %1698 = vmatmul.bf16.vlgmr.msra.gmra.mxu0 %v3580_v36 }
 0x187   :  { %1782 = vmatpush.bf16.msrb.mxu3 %v2893_v31  ;;  %1808 = vmatpush.bf16.msra.mxu1 %v2897_v33  ;;  %v2748_v31 = vld [vmem:[#allocation8 + $0x190] sm:$0xf]  ;;  %v3155_v33 = vld [vmem:[#allocation8 + $0x1a4] sm:$0xf0] }
 0x188   :  { %1768 = vmatpush.bf16.msrb.mxu2 %v2725_v37  ;;  %1794 = vmatpush.bf16.msra.mxu0 %v2729_v38  ;;  %v3152_v37 = vld [vmem:[#allocation8 + $0x194] sm:$0xf]  ;;  %v2750_v38 = vld [vmem:[#allocation8 + $0x1a8] sm:$0xf0]  ;;  %v2749_v41 = vor.u32 %v3155_v33, %v2748_v31  ;;  %v3206_v33 = vld [vmem:[#allocation10 + $0x40] sm:$0xff] }
 0x189   :  { %v2753_v42 = vor.u32 %v3152_v37, %v2750_v38  ;;  %v3200_v31 = vld [vmem:[#allocation10 + $0x10] sm:$0xff] }
 0x18b   :  { %1783 = vmatpush.bf16.msrb.mxu3 %v2869_v43  ;;  %1809 = vmatpush.bf16.msra.mxu1 %v2873_v45  ;;  %v2581_v43 = vor.u32 %v3113_v30, %v2580_v39  ;;  %v2585_v45 = vor.u32 %v3110_v52, %v2582_v40  ;;  %v3199_v39 = vld [vmem:[#allocation10 + $0x8] sm:$0xff]  ;;  %v1175_v52 = vperm.slane %v3595_v47, 3 }
 0x18c   :  { %1769 = vmatpush.bf16.msrb.mxu2 %v2701_v46  ;;  %1795 = vmatpush.bf16.msra.mxu0 %v2705_v54  ;;  %v3104_v46 = vld [vmem:[#allocation8 + $0x14] sm:$0xf]  ;;  %v2558_v54 = vld [vmem:[#allocation8 + $0x28] sm:$0xf0] }
 0x18d   :  { %v2561_v7 = vor.u32 %v3104_v46, %v2558_v54 }
 0x18f   :  { %1784 = vmatpush.bf16.msrb.mxu3 %v2845_v53  ;;  %1810 = vmatpush.bf16.msra.mxu1 %v2849_v55 }
 0x190   :  { %1770 = vmatpush.bf16.msrb.mxu2 %v2677_v1  ;;  %1796 = vmatpush.bf16.msra.mxu0 %v2681_v58  ;;  %v3213_v58 = vld [vmem:[#allocation10 + $0x78] sm:$0xff] }
 0x192   :  { %1737 = vmatmul.bf16.vlgmr.msra.gmra.mxu3 %v3576_v22  ;;  %1763 = vmatmul.bf16.vlgmr.msrb.gmra.mxu1 %v3576_v22 }
 0x193   :  { %1785 = vmatpush.bf16.msrb.mxu3 %v2821_v3  ;;  %1811 = vmatpush.bf16.msra.mxu1 %v2825_v4  ;;  %v3205_v3 = vld [vmem:[#allocation10 + $0x38] sm:$0xff] }
 0x194   :  { %1771 = vmatpush.bf16.msrb.mxu2 %v2653_v8  ;;  %1797 = vmatpush.bf16.msra.mxu0 %v2657_v9  ;;  %v3204_v9 = vld [vmem:[#allocation10 + $0x30] sm:$0xff] }
 0x196   :  { %1724 = vmatmul.bf16.vlgmr.msra.gmra.mxu2 %v3580_v36  ;;  %1750 = vmatmul.bf16.vlgmr.msrb.gmra.mxu0 %v3580_v36 }
 0x197   :  { %1786 = vmatpush.bf16.msrb.mxu3 %v2797_v16  ;;  %1812 = vmatpush.bf16.msra.mxu1 %v2801_v17  ;;  %v3209_v17 = vld [vmem:[#allocation10 + $0x58] sm:$0xff] }
 0x198   :  { %1772 = vmatpush.bf16.msrb.mxu2 %v2629_v20  ;;  %1798 = vmatpush.bf16.msra.mxu0 %v2633_v21  ;;  %v3202_v20 = vld [vmem:[#allocation10 + $0x20] sm:$0xff] }
 0x19b   :  { %1787 = vmatpush.bf16.msrb.mxu3 %v2773_v27  ;;  %1813 = vmatpush.bf16.msra.mxu1 %v2777_v29  ;;  %v1177_v27 = vperm.slane %v3595_v47, 5  ;;  %v3207_v29 = vld [vmem:[#allocation10 + $0x48] sm:$0xff] }
 0x19c   :  { %1773 = vmatpush.bf16.msrb.mxu2 %v2605_v34  ;;  %1799 = vmatpush.bf16.msra.mxu0 %v2609_v35 }
 0x19f   :  { %1788 = vmatpush.bf16.msrb.mxu3 %v2749_v41  ;;  %1814 = vmatpush.bf16.msra.mxu1 %v2753_v42  ;;  %v1176_v42 = vperm.slane %v3595_v47, 4 }
 0x1a0   :  { %1774 = vmatpush.bf16.msrb.mxu2 %v2581_v43  ;;  %1800 = vmatpush.bf16.msra.mxu0 %v2585_v45 }
 0x1a2   :  { %1789 = vmatmul.bf16.vlgmr.msrb.gmra.mxu3 %v3576_v22  ;;  %1815 = vmatmul.bf16.vlgmr.msra.gmra.mxu1 %v3576_v22  ;;  %v1172_v22 = vperm.slane %v3595_v47, 0 }
 0x1a3   :  { %2051 = vmatpush.bf16.msra.mxu3 %v3213_v58 }
 0x1a4   :  { %1775 = vmatpush.bf16.msrb.mxu2 %v2557_v32  ;;  %1801 = vmatpush.bf16.msra.mxu0 %v2561_v7 }
 0x1a7   :  { %1776 = vmatmul.bf16.vlgmr.msrb.gmra.mxu2 %v3580_v36  ;;  %1802 = vmatmul.bf16.vlgmr.msra.gmra.mxu0 %v3580_v36 }
 0x1a8   :  { %2052 = vmatpush.bf16.msra.mxu3 %v3212_v63  ;;  %2038 = vmatpush.bf16.msra.mxu2 %v3205_v3 }
 0x1ac   :  { %2053 = vmatpush.bf16.msra.mxu3 %v3211_v6  ;;  %2039 = vmatpush.bf16.msra.mxu2 %v3204_v9 }
 0x1b0   :  { %2054 = vmatpush.bf16.msra.mxu3 %v3210_v12  ;;  %2040 = vmatpush.bf16.msra.mxu2 %v3203_v15 }
 0x1b4   :  { %2055 = vmatpush.bf16.msra.mxu3 %v3209_v17  ;;  %2041 = vmatpush.bf16.msra.mxu2 %v3202_v20 }
 0x1b8   :  { %2056 = vmatpush.bf16.msra.mxu3 %v3208_v24  ;;  %2042 = vmatpush.bf16.msra.mxu2 %v3201_v26 }
 0x1bc   :  { %2057 = vmatpush.bf16.msra.mxu3 %v3207_v29  ;;  %2043 = vmatpush.bf16.msra.mxu2 %v3200_v31 }
 0x1c0   :  { %2058 = vmatpush.bf16.msra.mxu3 %v3206_v33  ;;  %2044 = vmatpush.bf16.msra.mxu2 %v3199_v39 }
 0x1c4   :  { %2045 = vmatpush.bf16.msra.mxu2 %v3198_v51  ;;  %v3226_v51 = vld [vmem:[%s3637_s8] ss:$0 sm:$0xff] }
 0x1ff   :  { %v1712_v48 = vpop.f32.mrf.mxu1 }
 0x203   :  { %v1699_v50 = vpop.f32.mrf.mxu0 }
 0x204   :  { %v1700_v53 = vadd.f32 %v1699_v50, %v1173_v49  ;;  %v1174_v49 = vperm.slane %v3595_v47, 2 }
 0x205   :  { %v1686_v55 = vpop.f32.mrf.mxu3 }
 0x206   :  { %v1713_v56 = vadd.f32 %v1712_v48, %v1700_v53 }
 0x207   :  { %v1714_v57 = vpop.f32.mrf.mxu1 }
 0x208   :  { %v2923_v59 = vmul.f32 -1.442695, %v1713_v56 }
 0x209   :  { %v1673_v1 = vpop.f32.mrf.mxu2 }
 0x20a   :  { %v1674_v60 = vadd.f32 %v1673_v1, %v1172_v22  ;;  %3251 = vpow2.f32 %v2923_v59 }
 0x20b   :  { %v1701_v36 = vpop.f32.mrf.mxu0 }
 0x20c   :  { %v1687_v61 = vadd.f32 %v1686_v55, %v1674_v60 }
 0x20d   :  { %v1688_v44 = vpop.f32.mrf.mxu3 }
 0x20e   :  { %v2922_v4 = vmul.f32 -1.442695, %v1687_v61 }
 0x20f   :  { %v3599_v0 = vpop.f32.mrf.mxu1 }
 0x210   :  { %v3252_v10 = vpop.eup %3251  ;;  %3253 = vpow2.f32 %v2922_v4 }
 0x211   :  { %v1675_v5 = vpop.f32.mrf.mxu2  ;;  %v3603_v13 = vadd.f32 1.0, %v3252_v10 }
 0x213   :  { %v1751_v8 = vpop.f32.mrf.mxu0  ;;  %3255 = vrcp.f32 %v3603_v13  ;;  %v1854_v58 = vand.u32 2147483648, %v3603_v13  ;;  %vm1848_vm1 = vweird.f32 %v3603_v13  ;;  %v1852_v60 = vand.u32 2147483647, %v3603_v13 }
 0x214   :  { %v1752_v54 = vadd.f32 %v1751_v8, %v1175_v52 }
 0x215   :  { %v3601_v11 = vpop.f32.mrf.mxu3  ;;  %v1855_v63 = vor.u32 1.1754944e-38, %v1854_v58  ;;  %vm1853_vm3 = vcmp.eq.f32.partialorder %v1852_v60, 8.507059e+37 }
 0x216   :  { %v3254_v18 = vpop.eup %3253  ;;  %v1765_v56 = vadd.f32 %v3599_v0, %v1752_v54 }
 0x217   :  { %v1766_v14 = vpop.f32.mrf.mxu1  ;;  %v3606_v21 = vadd.f32 1.0, %v3254_v18 }
 0x219   :  { %v1725_v16 = vpop.f32.mrf.mxu2  ;;  %v3256_v28 = vpop.eup %3255  ;;  %3257 = vrcp.f32 %v3606_v21  ;;  %v1839_v6 = vand.u32 2147483648, %v3606_v21  ;;  %vm1833_vm5 = vweird.f32 %v3606_v21  ;;  %v1837_v8 = vand.u32 2147483647, %v3606_v21 }
 0x21a   :  { %v1844_v34 = vmul.f32 %v3256_v28, %v3603_v13  ;;  %vm1849_vm0 = vweird.f32 %v3256_v28  ;;  %v1726_v59 = vadd.f32 %v1725_v16, %v1174_v49 }
 0x21b   :  { %v1753_v19 = vpop.f32.mrf.mxu0  ;;  %vm1850_vm2 = vmor %vm1848_vm1, %vm1849_vm0  ;;  %vm1838_vm7 = vcmp.eq.f32.partialorder %v1837_v8, 8.507059e+37 }
 0x21c   :  { %v1845_v43 = vsub.f32 1.0, %v1844_v34  ;;  %v1739_v0 = vadd.f32 %v3601_v11, %v1726_v59  ;;  %v1840_v11 = vor.u32 1.1754944e-38, %v1839_v6 }
 0x21d   :  { %v1740_v23 = vpop.f32.mrf.mxu3 }
 0x21e   :  { %v1846_v7 = vmul.f32 %v3256_v28, %v1845_v43 }
 0x21f   :  { %v1816_v25 = vpop.f32.mrf.mxu1  ;;  %v3258_v30 = vpop.eup %3257 }
 0x220   :  { %v1829_v2 = vmul.f32 %v3258_v30, %v3606_v21  ;;  %v1847_v57 = vadd.f32 %v3256_v28, %v1846_v7  ;;  %vm1834_vm4 = vweird.f32 %v3258_v30 }
 0x221   :  { %v1727_v62 = vpop.f32.mrf.mxu2  ;;  %vm1835_vm6 = vmor %vm1833_vm5, %vm1834_vm4 }
 0x222   :  { %v1830_v55 = vsub.f32 1.0, %v1829_v2  ;;  %v1851_v44 = vsel %vm1850_vm2, %v3256_v28, %v1847_v57 }
 0x223   :  { %v1856_v5 = vsel %vm1853_vm3, %v1855_v63, %v1851_v44 }
 0x224   :  { %v1803_v35 = vpop.f32.mrf.mxu0  ;;  %v1831_v36 = vmul.f32 %v3258_v30, %v1830_v55 }
 0x225   :  { %v1790_v37 = vpop.f32.mrf.mxu3  ;;  %v1804_v38 = vadd.f32 %v1803_v35, %v1177_v27 }
 0x226   :  { %v1832_v3 = vadd.f32 %v3258_v30, %v1831_v36 }
 0x227   :  { %v1817_v40 = vadd.f32 %v1816_v25, %v1804_v38  ;;  %v1818_v41 = vpop.f32.mrf.mxu1 }
 0x228   :  { %v1836_v14 = vsel %vm1835_vm6, %v3258_v30, %v1832_v3 }
 0x229   :  { %v2925_v45 = vmul.f32 -1.442695, %v1817_v40  ;;  %v1841_v16 = vsel %vm1838_vm7, %v1840_v11, %v1836_v14 }
 0x22a   :  { %v1777_v46 = vpop.f32.mrf.mxu2 }
 0x22b   :  { %3259 = vpow2.f32 %v2925_v45  ;;  %v1778_v32 = vadd.f32 %v1777_v46, %v1176_v42 }
 0x22c   :  { %v1805_v48 = vpop.f32.mrf.mxu0 }
 0x22d   :  { %v1791_v50 = vadd.f32 %v1790_v37, %v1778_v32  ;;  %v1792_v53 = vpop.f32.mrf.mxu3 }
 0x22f   :  { %v2924_v22 = vmul.f32 -1.442695, %v1791_v50 }
 0x231   :  { %v3260_v1 = vpop.eup %3259  ;;  %3261 = vpow2.f32 %v2924_v22 }
 0x232   :  { %v1867_v47 = vadd.f32 1.0, %v3260_v1  ;;  %v1779_v61 = vpop.f32.mrf.mxu2  ;;  %3263 = vtanh.f32 %v1765_v56 }
 0x234   :  { %3265 = vrcp.f32 %v1867_v47  ;;  %v1894_v18 = vand.u32 2147483648, %v1867_v47  ;;  %v1892_v23 = vand.u32 2147483647, %v1867_v47  ;;  %vm1888_vm9 = vweird.f32 %v1867_v47 }
 0x235   :  { %3267 = vtanh.f32 %v1739_v0 }
 0x236   :  { %v1895_v28 = vor.u32 1.1754944e-38, %v1894_v18  ;;  %vm1893_vm11 = vcmp.eq.f32.partialorder %v1892_v23, 8.507059e+37 }
 0x237   :  { %v3262_v4 = vpop.eup %3261 }
 0x238   :  { %v1866_v9 = vadd.f32 1.0, %v3262_v4  ;;  %v3264_v10 = vpop.eup %3263 }
 0x239   :  { %v1899_v13 = vmul.f32 %v3264_v10, %v1856_v5 }
 0x23a   :  { %v3266_v12 = vpop.eup %3265  ;;  %3269 = vrcp.f32 %v1866_v9  ;;  %v1879_v33 = vand.u32 2147483648, %v1866_v9  ;;  %v1877_v37 = vand.u32 2147483647, %v1866_v9  ;;  %vm1873_vm13 = vweird.f32 %v1866_v9 }
 0x23b   :  { %v1884_v15 = vmul.f32 %v3266_v12, %v1867_v47  ;;  %3271 = vtanh.f32 %v1899_v13  ;;  %v3268_v19 = vpop.eup %3267  ;;  %vm1889_vm8 = vweird.f32 %v3266_v12 }
 0x23c   :  { %v1898_v24 = vmul.f32 %v3268_v19, %v1841_v16  ;;  %vm1890_vm10 = vmor %vm1888_vm9, %vm1889_vm8  ;;  %v1880_v30 = vor.u32 1.1754944e-38, %v1879_v33  ;;  %vm1878_vm15 = vcmp.eq.f32.partialorder %v1877_v37, 8.507059e+37 }
 0x23d   :  { %v1885_v17 = vsub.f32 1.0, %v1884_v15 }
 0x23e   :  { %3273 = vtanh.f32 %v1898_v24 }
 0x23f   :  { %v1886_v20 = vmul.f32 %v3266_v12, %v1885_v17 }
 0x240   :  { %v3270_v21 = vpop.eup %3269 }
 0x241   :  { %v1869_v25 = vmul.f32 %v3270_v21, %v1866_v9  ;;  %v1887_v26 = vadd.f32 %v3266_v12, %v1886_v20  ;;  %v3272_v29 = vpop.eup %3271  ;;  %vm1874_vm12 = vweird.f32 %v3270_v21 }
 0x242   :  { %vm1875_vm14 = vmor %vm1873_vm13, %vm1874_vm12 }
 0x243   :  { %v1870_v62 = vsub.f32 1.0, %v1869_v25  ;;  %v1891_v27 = vsel %vm1890_vm10, %v3266_v12, %v1887_v26 }
 0x244   :  { %v1896_v31 = vsel %vm1893_vm11, %v1895_v28, %v1891_v27  ;;  %v3274_v40 = vpop.eup %3273 }
 0x245   :  { %v1903_v34 = vmul.f32 %v3272_v29, %v1896_v31  ;;  %v1871_v35 = vmul.f32 %v3270_v21, %v1870_v62 }
 0x247   :  { %v1905_v38 = vpack.c.bf16 %v1903_v34, %v1903_v34  ;;  %v1872_v39 = vadd.f32 %v3270_v21, %v1871_v35 }
 0x249   :  { %2059 = vmatmul.bf16.vlgmr.msra.gmra.mxu3 %v1905_v38  ;;  %v1876_v52 = vsel %vm1875_vm14, %v3270_v21, %v1872_v39 }
 0x24a   :  { %v1881_v41 = vsel %vm1878_vm15, %v1880_v30, %v1876_v52 }
 0x24b   :  { %v1902_v42 = vmul.f32 %v3274_v40, %v1881_v41 }
 0x24d   :  { %v1904_v43 = vpack.c.bf16 %v1902_v42, %v1902_v42 }
 0x24f   :  { %2046 = vmatmul.bf16.vlgmr.msra.gmra.mxu2 %v1904_v43 }
 0x2cc   :  { %v2060_v45 = vpop.f32.mrf.mxu3 }
 0x2d2   :  { %v2047_v2 = vpop.f32.mrf.mxu2 }
 0x2d3   :  { %v2048_v46 = vadd.f32 %v3226_v51, %v2047_v2 }
 0x2d4   :  { %v2062_v54 = vpop.f32.mrf.mxu3 }
 0x2d5   :  { %v2061_v32 = vadd.f32 %v2060_v45, %v2048_v46 }
 0x2d7   :  { %3275 = vtanh.f32 %v2061_v32 }
 0x2da   :  { %v2049_v7 = vpop.f32.mrf.mxu2 }
 0x2dd   :  { %v3276_v48 = vpop.eup %3275 }
 0x2de   :  { %v2065_v49 = vpack.c.bf16 %v3276_v48, %v3276_v48 }
 0x2e0   :  { %2066 = vst [vmem:[#allocation11] sm:$0xf] %v2065_v49 }
 0x2e1   :  { %2077 = dma.vmem_to_hbm [thread:$0]  %s2073_s20, 64, %s2075_s22, [#allocation4]  }
 0x2e2   :  { %3427 = dma.done.wait [#allocation4], 64  }
 0x2e3   :  { %3428 = vsyncadd [#allocation4], 4294967232 }
 0x2e4   :  { %2082 = vsyncpa [#allocation3], 1 }
 0x2e5   :  { %2083 = vsyncpa [#allocation6], 1 }
 0x2e6   :  { %2084 = vsyncpa [#allocation9], 1 }
 0x2e7   :  { %2085 = vsyncpa [#allocation4], 1 }

</bundles_post_ra>
